<compile_context>
chip_gen: v7x
topology: tpu7x:2x2x1
jax: 0.10.0
libtpu: 0.0.40
codegen_flags: <defaults>
</compile_context>

<pallas_src>
import functools

import jax
import jax.numpy as jnp
import numpy as np
from jax import lax
from jax.experimental import pallas as pl
from jax.experimental.pallas import tpu as pltpu


def dblock_kernel(x_ref, w_ref, b_ref, o_ref, *, num_res, img_h, mm_dtype):
    NH, WC = x_ref.shape

    # Per-image row masks: the batch is fused along the sublane axis, so the
    # kh taps must not wrap around or leak across image boundaries.
    row = lax.broadcasted_iota(jnp.int32, (NH, 1), 0)
    keep_dn = (row % img_h) != 0               # row h-1 exists inside image
    keep_up = (row % img_h) != (img_h - 1)     # row h+1 exists inside image

    def conv3x3(x2d, widx):
        """SAME 3x3 conv on the lane-dense (N*H, W*C) slab.

        w_ref[widx] is a (3*WC, WC) block-banded matrix: the kw taps and the
        W-border zeros are folded into it, and the three kh taps are stacked
        along K.  The kh shift is applied on the input side (roll + mask),
        so each conv is a single K=3*WC MXU matmul.
        """
        x_dn = jnp.where(keep_dn, pltpu.roll(x2d, shift=1, axis=0), 0.0)
        x_up = jnp.where(keep_up, pltpu.roll(x2d, shift=NH - 1, axis=0), 0.0)
        xin = jnp.concatenate([x_dn, x2d, x_up], axis=-1).astype(mm_dtype)
        return jnp.dot(xin, w_ref[widx], preferred_element_type=jnp.float32)

    cur = x_ref[...].astype(jnp.float32)                  # (N*H, W*C) f32
    for r in range(num_res):                              # static unroll
        h = conv3x3(cur, r) + b_ref[pl.ds(r, 1), :]
        h = jnp.maximum(h, 0.0)
        cur = cur + conv3x3(h, num_res + r) + b_ref[pl.ds(num_res + r, 1), :]
    o_ref[...] = cur.astype(o_ref.dtype)


def _stacked_banded_weights(w, W):
    """(R, 3, 3, Cin, Cout) HWIO weights -> (R, 3*W*Cin, W*Cout) banded mats.

    Row kh*W*Cin + wi*Cin + ci, column wo*Cout + co holds w[r, kh, kw, ci, co]
    with kw = wi - wo + 1 when 0 <= kw < 3, else 0 (this also encodes the zero
    padding at the W border).  The three kh blocks are stacked along K.
    """
    R, KH, KW, Cin, Cout = w.shape
    sel = np.zeros((KW, W, W), np.float32)
    for kw in range(KW):
        for wo in range(W):
            wi = wo + kw - 1
            if 0 <= wi < W:
                sel[kw, wi, wo] = 1.0
    banded = jnp.einsum("kab,rhkio->rhaibo", jnp.asarray(sel, w.dtype), w)
    return banded.reshape(R, KH * W * Cin, W * Cout)


def dblock_pallas(x_nhwc, w1, b1, w2, b2, use_bf16_matmul=True):
    N, H, W, C = x_nhwc.shape
    R = w1.shape[0]
    WC = W * C
    NH = N * H
    # Lane-dense layout assumes W*C is a multiple of 128 (here exactly 128)
    # and the fused row count a multiple of 8.
    # TODO(synk): pad W*C up to a multiple of 128 / N*H up to a multiple of 8
    # for arbitrary shapes.
    assert WC % 128 == 0 and NH % 8 == 0

    mm_dtype = jnp.bfloat16 if use_bf16_matmul else jnp.float32

    x2d = x_nhwc.reshape(NH, WC)
    # Banded weights shipped in bf16 by default (halves the dominant weight
    # DMA and weight VMEM residency); both convs' weights / biases merged so
    # the weight prologue is one contiguous DMA each.
    w_all = jnp.concatenate(
        [_stacked_banded_weights(w1, W), _stacked_banded_weights(w2, W)],
        axis=0).astype(mm_dtype)                              # (2R, 3*WC, WC)
    b_all = jnp.concatenate(
        [jnp.tile(b1, (1, W)), jnp.tile(b2, (1, W))], axis=0)  # (2R, WC) f32

    kernel = functools.partial(dblock_kernel, num_res=R, img_h=H,
                               mm_dtype=mm_dtype)

    flops = 2 * NH * (3 * WC) * WC * (2 * R)
    bytes_accessed = (2 * x2d.size * x2d.dtype.itemsize
                      + w_all.size * w_all.dtype.itemsize
                      + b_all.size * b_all.dtype.itemsize)

    out2d = pl.pallas_call(
        kernel,
        out_shape=jax.ShapeDtypeStruct((NH, WC), x_nhwc.dtype),
        # Whole (tiny) batch fused into one step: no per-step pipeline
        # overhead on single-TC v5e/v6e, weights DMA'd exactly once, and no
        # duplicated per-TC weight copy on v7x.
        grid=(1,),
        in_specs=[
            pl.BlockSpec((NH, WC), lambda i: (0, 0)),
            pl.BlockSpec((2 * R, 3 * WC, WC), lambda i: (0, 0, 0)),
            pl.BlockSpec((2 * R, WC), lambda i: (0, 0)),
        ],
        out_specs=pl.BlockSpec((NH, WC), lambda i: (0, 0)),
        compiler_params=pltpu.CompilerParams(
            dimension_semantics=("arbitrary",)),
        cost_estimate=pl.CostEstimate(flops=flops, transcendentals=0,
                                      bytes_accessed=bytes_accessed),
    )(x2d, w_all, b_all)

    return out2d.reshape(N, H, W, C)


def dblock_ref(x_nhwc, w1, b1, w2, b2):
    """Pure-JAX reference (matches the PyTorch DBlock forward, NHWC layout)."""
    def conv(x, w, b):
        y = lax.conv_general_dilated(
            x, w, window_strides=(1, 1), padding="SAME",
            dimension_numbers=("NHWC", "HWIO", "NHWC"))
        return y + b[None, None, None, :]

    cur = x_nhwc
    for r in range(w1.shape[0]):
        h = jax.nn.relu(conv(cur, w1[r], b1[r]))
        cur = conv(h, w2[r], b2[r]) + cur
    return cur


if __name__ == "__main__":
    # DBlock(channel=8, num_res=8) on a (N=2, C=8, H=16, W=16) NCHW input
    # (channel=8 so W*C exactly fills the 128-lane dimension).
    N, C, H, W = 2, 8, 16, 16
    num_res = 8

    key = jax.random.PRNGKey(0)
    k = jax.random.split(key, 5)
    x_nchw = jax.random.normal(k[0], (N, C, H, W), dtype=jnp.float32)

    # Deterministic synthetic parameters (uniform, Conv2d-style fan-in scale).
    scale = 1.0 / float((3 * 3 * C) ** 0.5)
    w1 = jax.random.uniform(k[1], (num_res, 3, 3, C, C), jnp.float32, -scale, scale)
    b1 = jax.random.uniform(k[2], (num_res, C), jnp.float32, -scale, scale)
    w2 = jax.random.uniform(k[3], (num_res, 3, 3, C, C), jnp.float32, -scale, scale)
    b2 = jax.random.uniform(k[4], (num_res, C), jnp.float32, -scale, scale)

    # NCHW (PyTorch convention) -> NHWC for the kernel.
    x_nhwc = jnp.transpose(x_nchw, (0, 2, 3, 1))
    ref = dblock_ref(x_nhwc, w1, b1, w2, b2)

    # f32-matmul path: algorithmic correctness at tight tolerance.
    out_f32 = jax.block_until_ready(
        dblock_pallas(x_nhwc, w1, b1, w2, b2, use_bf16_matmul=False))
    np.testing.assert_allclose(np.asarray(out_f32), np.asarray(ref),
                               rtol=1e-4, atol=1e-4)

    # Default bf16-MXU path (f32 accumulation / biases / residual chain):
    # tolerance relaxed per review for the 16 stacked bf16 matmuls.
    out = jax.block_until_ready(dblock_pallas(x_nhwc, w1, b1, w2, b2))
    np.testing.assert_allclose(np.asarray(out), np.asarray(ref),
                               rtol=5e-2, atol=5e-2)
    print("KERNEL_OK")
</pallas_src>

<mosaic_0001>
module attributes {stable_mosaic.version = 11 : i64} {
  func.func @dblock_kernel(%arg0: i32, %arg1: memref<32x128xf32, #tpu.memory_space<vmem>>, %arg2: memref<16x384x128xf32, #tpu.memory_space<vmem>>, %arg3: memref<16x128xf32, #tpu.memory_space<vmem>>, %arg4: memref<32x128xf32, #tpu.memory_space<vmem>>) attributes {dimension_semantics = [#tpu.dimension_semantics<arbitrary>], iteration_bounds = array<i64: 1>, scalar_prefetch = 0 : i64, scratch_operands = 0 : i64, tpu.core_type = #tpu.core_type<tc>, window_params = [{pipeline_mode = #tpu.pipeline_mode<synchronous>, transform_indices = @transform_0, window_bounds = array<i64: 32, 128>}, {pipeline_mode = #tpu.pipeline_mode<synchronous>, transform_indices = @transform_1, window_bounds = array<i64: 16, 384, 128>}, {pipeline_mode = #tpu.pipeline_mode<synchronous>, transform_indices = @transform_2, window_bounds = array<i64: 16, 128>}, {pipeline_mode = #tpu.pipeline_mode<synchronous>, transform_indices = @transform_3, window_bounds = array<i64: 32, 128>}]} {
    %0 = tpu.iota {dimensions = array<i32: 0>} : vector<32x1xi32>
    %c16_i32 = arith.constant 16 : i32
    %c0_i32 = arith.constant 0 : i32
    %1 = arith.cmpi eq, %c16_i32, %c0_i32 : i32
    %c1_i32 = arith.constant 1 : i32
    %2 = arith.select %1, %c1_i32, %c16_i32 : i32
    %3 = vector.broadcast %2 : i32 to vector<32x1xi32>
    %4 = arith.remsi %0, %3 : vector<32x1xi32>
    %c0_i32_0 = arith.constant 0 : i32
    %5 = vector.broadcast %c0_i32_0 : i32 to vector<32x1xi32>
    %6 = arith.cmpi ne, %4, %5 : vector<32x1xi32>
    %c0_i32_1 = arith.constant 0 : i32
    %7 = vector.broadcast %c0_i32_1 : i32 to vector<32x1xi32>
    %8 = arith.cmpi slt, %4, %7 : vector<32x1xi32>
    %c0_i32_2 = arith.constant 0 : i32
    %9 = arith.cmpi slt, %2, %c0_i32_2 : i32
    %10 = vector.broadcast %9 : i1 to vector<32x1xi1>
    %11 = vector.broadcast %10 : vector<32x1xi1> to vector<32x1xi1>
    %12 = arith.xori %8, %11 : vector<32x1xi1>
    %13 = arith.andi %12, %6 : vector<32x1xi1>
    %14 = vector.broadcast %2 : i32 to vector<32x1xi32>
    %15 = arith.addi %4, %14 : vector<32x1xi32>
    %16 = arith.select %13, %15, %4 : vector<32x1xi1>, vector<32x1xi32>
    %c0_i32_3 = arith.constant 0 : i32
    %17 = vector.broadcast %c0_i32_3 : i32 to vector<32x1xi32>
    %18 = arith.cmpi ne, %16, %17 : vector<32x1xi32>
    %c16_i32_4 = arith.constant 16 : i32
    %c0_i32_5 = arith.constant 0 : i32
    %19 = arith.cmpi eq, %c16_i32_4, %c0_i32_5 : i32
    %c1_i32_6 = arith.constant 1 : i32
    %20 = arith.select %19, %c1_i32_6, %c16_i32_4 : i32
    %21 = vector.broadcast %20 : i32 to vector<32x1xi32>
    %22 = arith.remsi %0, %21 : vector<32x1xi32>
    %c0_i32_7 = arith.constant 0 : i32
    %23 = vector.broadcast %c0_i32_7 : i32 to vector<32x1xi32>
    %24 = arith.cmpi ne, %22, %23 : vector<32x1xi32>
    %c0_i32_8 = arith.constant 0 : i32
    %25 = vector.broadcast %c0_i32_8 : i32 to vector<32x1xi32>
    %26 = arith.cmpi slt, %22, %25 : vector<32x1xi32>
    %c0_i32_9 = arith.constant 0 : i32
    %27 = arith.cmpi slt, %20, %c0_i32_9 : i32
    %28 = vector.broadcast %27 : i1 to vector<32x1xi1>
    %29 = vector.broadcast %28 : vector<32x1xi1> to vector<32x1xi1>
    %30 = arith.xori %26, %29 : vector<32x1xi1>
    %31 = arith.andi %30, %24 : vector<32x1xi1>
    %32 = vector.broadcast %20 : i32 to vector<32x1xi32>
    %33 = arith.addi %22, %32 : vector<32x1xi32>
    %34 = arith.select %31, %33, %22 : vector<32x1xi1>, vector<32x1xi32>
    %c15_i32 = arith.constant 15 : i32
    %35 = vector.broadcast %c15_i32 : i32 to vector<32x1xi32>
    %36 = arith.cmpi ne, %34, %35 : vector<32x1xi32>
    %c0 = arith.constant 0 : index
    %c0_10 = arith.constant 0 : index
    %37 = vector.load %arg1[%c0, %c0_10] : memref<32x128xf32, #tpu.memory_space<vmem>>, vector<32x128xf32>
    %c1_i32_11 = arith.constant 1 : i32
    %38 = tpu.dynamic_rotate %37 by %c1_i32_11 dim 0 : vector<32x128xf32>, i32 -> vector<32x128xf32>
    %cst = arith.constant 0.000000e+00 : f32
    %39 = vector.shape_cast %18 : vector<32x1xi1> to vector<32x1xi1>
    %40 = vector.broadcast %39 : vector<32x1xi1> to vector<32x128xi1>
    %41 = vector.broadcast %cst : f32 to vector<32x128xf32>
    %42 = arith.select %40, %38, %41 : vector<32x128xi1>, vector<32x128xf32>
    %c31_i32 = arith.constant 31 : i32
    %43 = tpu.dynamic_rotate %37 by %c31_i32 dim 0 : vector<32x128xf32>, i32 -> vector<32x128xf32>
    %cst_12 = arith.constant 0.000000e+00 : f32
    %44 = vector.shape_cast %36 : vector<32x1xi1> to vector<32x1xi1>
    %45 = vector.broadcast %44 : vector<32x1xi1> to vector<32x128xi1>
    %46 = vector.broadcast %cst_12 : f32 to vector<32x128xf32>
    %47 = arith.select %45, %43, %46 : vector<32x128xi1>, vector<32x128xf32>
    %48 = tpu.concatenate %42, %37, %47 in 1 : vector<32x128xf32>, vector<32x128xf32>, vector<32x128xf32> -> vector<32x384xf32>
    %c0_13 = arith.constant 0 : index
    %c0_14 = arith.constant 0 : index
    %c0_15 = arith.constant 0 : index
    %49 = vector.load %arg2[%c0_13, %c0_14, %c0_15] : memref<16x384x128xf32, #tpu.memory_space<vmem>>, vector<1x384x128xf32>
    %50 = vector.shape_cast %49 : vector<1x384x128xf32> to vector<384x128xf32>
    %cst_16 = arith.constant dense<0.000000e+00> : vector<32x128xf32>
    %51 = tpu.matmul %48, %50, %cst_16 {dimension_numbers = #tpu.dot_dimension_numbers<[1], [0], [0], [1], [0, 0, 1, 1], [], []>} : vector<32x384xf32>, vector<384x128xf32>, vector<32x128xf32> -> vector<32x128xf32>
    %c0_17 = arith.constant 0 : index
    %c0_18 = arith.constant 0 : index
    %52 = vector.load %arg3[%c0_17, %c0_18] : memref<16x128xf32, #tpu.memory_space<vmem>>, vector<1x128xf32>
    %53 = vector.broadcast %52 : vector<1x128xf32> to vector<32x128xf32>
    %54 = arith.addf %51, %53 : vector<32x128xf32>
    %cst_19 = arith.constant 0.000000e+00 : f32
    %55 = vector.broadcast %cst_19 : f32 to vector<32x128xf32>
    %56 = arith.maximumf %54, %55 : vector<32x128xf32>
    %c1_i32_20 = arith.constant 1 : i32
    %57 = tpu.dynamic_rotate %56 by %c1_i32_20 dim 0 : vector<32x128xf32>, i32 -> vector<32x128xf32>
    %cst_21 = arith.constant 0.000000e+00 : f32
    %58 = vector.shape_cast %18 : vector<32x1xi1> to vector<32x1xi1>
    %59 = vector.broadcast %58 : vector<32x1xi1> to vector<32x128xi1>
    %60 = vector.broadcast %cst_21 : f32 to vector<32x128xf32>
    %61 = arith.select %59, %57, %60 : vector<32x128xi1>, vector<32x128xf32>
    %c31_i32_22 = arith.constant 31 : i32
    %62 = tpu.dynamic_rotate %56 by %c31_i32_22 dim 0 : vector<32x128xf32>, i32 -> vector<32x128xf32>
    %cst_23 = arith.constant 0.000000e+00 : f32
    %63 = vector.shape_cast %36 : vector<32x1xi1> to vector<32x1xi1>
    %64 = vector.broadcast %63 : vector<32x1xi1> to vector<32x128xi1>
    %65 = vector.broadcast %cst_23 : f32 to vector<32x128xf32>
    %66 = arith.select %64, %62, %65 : vector<32x128xi1>, vector<32x128xf32>
    %67 = tpu.concatenate %61, %56, %66 in 1 : vector<32x128xf32>, vector<32x128xf32>, vector<32x128xf32> -> vector<32x384xf32>
    %c8 = arith.constant 8 : index
    %c0_24 = arith.constant 0 : index
    %c0_25 = arith.constant 0 : index
    %68 = vector.load %arg2[%c8, %c0_24, %c0_25] : memref<16x384x128xf32, #tpu.memory_space<vmem>>, vector<1x384x128xf32>
    %69 = vector.shape_cast %68 : vector<1x384x128xf32> to vector<384x128xf32>
    %cst_26 = arith.constant dense<0.000000e+00> : vector<32x128xf32>
    %70 = tpu.matmul %67, %69, %cst_26 {dimension_numbers = #tpu.dot_dimension_numbers<[1], [0], [0], [1], [0, 0, 1, 1], [], []>} : vector<32x384xf32>, vector<384x128xf32>, vector<32x128xf32> -> vector<32x128xf32>
    %71 = arith.addf %37, %70 : vector<32x128xf32>
    %c8_27 = arith.constant 8 : index
    %c0_28 = arith.constant 0 : index
    %72 = vector.load %arg3[%c8_27, %c0_28] : memref<16x128xf32, #tpu.memory_space<vmem>>, vector<1x128xf32>
    %73 = vector.broadcast %72 : vector<1x128xf32> to vector<32x128xf32>
    %74 = arith.addf %71, %73 : vector<32x128xf32>
    %c1_i32_29 = arith.constant 1 : i32
    %75 = tpu.dynamic_rotate %74 by %c1_i32_29 dim 0 : vector<32x128xf32>, i32 -> vector<32x128xf32>
    %cst_30 = arith.constant 0.000000e+00 : f32
    %76 = vector.shape_cast %18 : vector<32x1xi1> to vector<32x1xi1>
    %77 = vector.broadcast %76 : vector<32x1xi1> to vector<32x128xi1>
    %78 = vector.broadcast %cst_30 : f32 to vector<32x128xf32>
    %79 = arith.select %77, %75, %78 : vector<32x128xi1>, vector<32x128xf32>
    %c31_i32_31 = arith.constant 31 : i32
    %80 = tpu.dynamic_rotate %74 by %c31_i32_31 dim 0 : vector<32x128xf32>, i32 -> vector<32x128xf32>
    %cst_32 = arith.constant 0.000000e+00 : f32
    %81 = vector.shape_cast %36 : vector<32x1xi1> to vector<32x1xi1>
    %82 = vector.broadcast %81 : vector<32x1xi1> to vector<32x128xi1>
    %83 = vector.broadcast %cst_32 : f32 to vector<32x128xf32>
    %84 = arith.select %82, %80, %83 : vector<32x128xi1>, vector<32x128xf32>
    %85 = tpu.concatenate %79, %74, %84 in 1 : vector<32x128xf32>, vector<32x128xf32>, vector<32x128xf32> -> vector<32x384xf32>
    %c1 = arith.constant 1 : index
    %c0_33 = arith.constant 0 : index
    %c0_34 = arith.constant 0 : index
    %86 = vector.load %arg2[%c1, %c0_33, %c0_34] : memref<16x384x128xf32, #tpu.memory_space<vmem>>, vector<1x384x128xf32>
    %87 = vector.shape_cast %86 : vector<1x384x128xf32> to vector<384x128xf32>
    %cst_35 = arith.constant dense<0.000000e+00> : vector<32x128xf32>
    %88 = tpu.matmul %85, %87, %cst_35 {dimension_numbers = #tpu.dot_dimension_numbers<[1], [0], [0], [1], [0, 0, 1, 1], [], []>} : vector<32x384xf32>, vector<384x128xf32>, vector<32x128xf32> -> vector<32x128xf32>
    %c1_36 = arith.constant 1 : index
    %c0_37 = arith.constant 0 : index
    %89 = vector.load %arg3[%c1_36, %c0_37] : memref<16x128xf32, #tpu.memory_space<vmem>>, vector<1x128xf32>
    %90 = vector.broadcast %89 : vector<1x128xf32> to vector<32x128xf32>
    %91 = arith.addf %88, %90 : vector<32x128xf32>
    %cst_38 = arith.constant 0.000000e+00 : f32
    %92 = vector.broadcast %cst_38 : f32 to vector<32x128xf32>
    %93 = arith.maximumf %91, %92 : vector<32x128xf32>
    %c1_i32_39 = arith.constant 1 : i32
    %94 = tpu.dynamic_rotate %93 by %c1_i32_39 dim 0 : vector<32x128xf32>, i32 -> vector<32x128xf32>
    %cst_40 = arith.constant 0.000000e+00 : f32
    %95 = vector.shape_cast %18 : vector<32x1xi1> to vector<32x1xi1>
    %96 = vector.broadcast %95 : vector<32x1xi1> to vector<32x128xi1>
    %97 = vector.broadcast %cst_40 : f32 to vector<32x128xf32>
    %98 = arith.select %96, %94, %97 : vector<32x128xi1>, vector<32x128xf32>
    %c31_i32_41 = arith.constant 31 : i32
    %99 = tpu.dynamic_rotate %93 by %c31_i32_41 dim 0 : vector<32x128xf32>, i32 -> vector<32x128xf32>
    %cst_42 = arith.constant 0.000000e+00 : f32
    %100 = vector.shape_cast %36 : vector<32x1xi1> to vector<32x1xi1>
    %101 = vector.broadcast %100 : vector<32x1xi1> to vector<32x128xi1>
    %102 = vector.broadcast %cst_42 : f32 to vector<32x128xf32>
    %103 = arith.select %101, %99, %102 : vector<32x128xi1>, vector<32x128xf32>
    %104 = tpu.concatenate %98, %93, %103 in 1 : vector<32x128xf32>, vector<32x128xf32>, vector<32x128xf32> -> vector<32x384xf32>
    %c9 = arith.constant 9 : index
    %c0_43 = arith.constant 0 : index
    %c0_44 = arith.constant 0 : index
    %105 = vector.load %arg2[%c9, %c0_43, %c0_44] : memref<16x384x128xf32, #tpu.memory_space<vmem>>, vector<1x384x128xf32>
    %106 = vector.shape_cast %105 : vector<1x384x128xf32> to vector<384x128xf32>
    %cst_45 = arith.constant dense<0.000000e+00> : vector<32x128xf32>
    %107 = tpu.matmul %104, %106, %cst_45 {dimension_numbers = #tpu.dot_dimension_numbers<[1], [0], [0], [1], [0, 0, 1, 1], [], []>} : vector<32x384xf32>, vector<384x128xf32>, vector<32x128xf32> -> vector<32x128xf32>
    %108 = arith.addf %74, %107 : vector<32x128xf32>
    %c9_46 = arith.constant 9 : index
    %c0_47 = arith.constant 0 : index
    %109 = vector.load %arg3[%c9_46, %c0_47] : memref<16x128xf32, #tpu.memory_space<vmem>>, vector<1x128xf32>
    %110 = vector.broadcast %109 : vector<1x128xf32> to vector<32x128xf32>
    %111 = arith.addf %108, %110 : vector<32x128xf32>
    %c1_i32_48 = arith.constant 1 : i32
    %112 = tpu.dynamic_rotate %111 by %c1_i32_48 dim 0 : vector<32x128xf32>, i32 -> vector<32x128xf32>
    %cst_49 = arith.constant 0.000000e+00 : f32
    %113 = vector.shape_cast %18 : vector<32x1xi1> to vector<32x1xi1>
    %114 = vector.broadcast %113 : vector<32x1xi1> to vector<32x128xi1>
    %115 = vector.broadcast %cst_49 : f32 to vector<32x128xf32>
    %116 = arith.select %114, %112, %115 : vector<32x128xi1>, vector<32x128xf32>
    %c31_i32_50 = arith.constant 31 : i32
    %117 = tpu.dynamic_rotate %111 by %c31_i32_50 dim 0 : vector<32x128xf32>, i32 -> vector<32x128xf32>
    %cst_51 = arith.constant 0.000000e+00 : f32
    %118 = vector.shape_cast %36 : vector<32x1xi1> to vector<32x1xi1>
    %119 = vector.broadcast %118 : vector<32x1xi1> to vector<32x128xi1>
    %120 = vector.broadcast %cst_51 : f32 to vector<32x128xf32>
    %121 = arith.select %119, %117, %120 : vector<32x128xi1>, vector<32x128xf32>
    %122 = tpu.concatenate %116, %111, %121 in 1 : vector<32x128xf32>, vector<32x128xf32>, vector<32x128xf32> -> vector<32x384xf32>
    %c2 = arith.constant 2 : index
    %c0_52 = arith.constant 0 : index
    %c0_53 = arith.constant 0 : index
    %123 = vector.load %arg2[%c2, %c0_52, %c0_53] : memref<16x384x128xf32, #tpu.memory_space<vmem>>, vector<1x384x128xf32>
    %124 = vector.shape_cast %123 : vector<1x384x128xf32> to vector<384x128xf32>
    %cst_54 = arith.constant dense<0.000000e+00> : vector<32x128xf32>
    %125 = tpu.matmul %122, %124, %cst_54 {dimension_numbers = #tpu.dot_dimension_numbers<[1], [0], [0], [1], [0, 0, 1, 1], [], []>} : vector<32x384xf32>, vector<384x128xf32>, vector<32x128xf32> -> vector<32x128xf32>
    %c2_55 = arith.constant 2 : index
    %c0_56 = arith.constant 0 : index
    %126 = vector.load %arg3[%c2_55, %c0_56] : memref<16x128xf32, #tpu.memory_space<vmem>>, vector<1x128xf32>
    %127 = vector.broadcast %126 : vector<1x128xf32> to vector<32x128xf32>
    %128 = arith.addf %125, %127 : vector<32x128xf32>
    %cst_57 = arith.constant 0.000000e+00 : f32
    %129 = vector.broadcast %cst_57 : f32 to vector<32x128xf32>
    %130 = arith.maximumf %128, %129 : vector<32x128xf32>
    %c1_i32_58 = arith.constant 1 : i32
    %131 = tpu.dynamic_rotate %130 by %c1_i32_58 dim 0 : vector<32x128xf32>, i32 -> vector<32x128xf32>
    %cst_59 = arith.constant 0.000000e+00 : f32
    %132 = vector.shape_cast %18 : vector<32x1xi1> to vector<32x1xi1>
    %133 = vector.broadcast %132 : vector<32x1xi1> to vector<32x128xi1>
    %134 = vector.broadcast %cst_59 : f32 to vector<32x128xf32>
    %135 = arith.select %133, %131, %134 : vector<32x128xi1>, vector<32x128xf32>
    %c31_i32_60 = arith.constant 31 : i32
    %136 = tpu.dynamic_rotate %130 by %c31_i32_60 dim 0 : vector<32x128xf32>, i32 -> vector<32x128xf32>
    %cst_61 = arith.constant 0.000000e+00 : f32
    %137 = vector.shape_cast %36 : vector<32x1xi1> to vector<32x1xi1>
    %138 = vector.broadcast %137 : vector<32x1xi1> to vector<32x128xi1>
    %139 = vector.broadcast %cst_61 : f32 to vector<32x128xf32>
    %140 = arith.select %138, %136, %139 : vector<32x128xi1>, vector<32x128xf32>
    %141 = tpu.concatenate %135, %130, %140 in 1 : vector<32x128xf32>, vector<32x128xf32>, vector<32x128xf32> -> vector<32x384xf32>
    %c10 = arith.constant 10 : index
    %c0_62 = arith.constant 0 : index
    %c0_63 = arith.constant 0 : index
    %142 = vector.load %arg2[%c10, %c0_62, %c0_63] : memref<16x384x128xf32, #tpu.memory_space<vmem>>, vector<1x384x128xf32>
    %143 = vector.shape_cast %142 : vector<1x384x128xf32> to vector<384x128xf32>
    %cst_64 = arith.constant dense<0.000000e+00> : vector<32x128xf32>
    %144 = tpu.matmul %141, %143, %cst_64 {dimension_numbers = #tpu.dot_dimension_numbers<[1], [0], [0], [1], [0, 0, 1, 1], [], []>} : vector<32x384xf32>, vector<384x128xf32>, vector<32x128xf32> -> vector<32x128xf32>
    %145 = arith.addf %111, %144 : vector<32x128xf32>
    %c10_65 = arith.constant 10 : index
    %c0_66 = arith.constant 0 : index
    %146 = vector.load %arg3[%c10_65, %c0_66] : memref<16x128xf32, #tpu.memory_space<vmem>>, vector<1x128xf32>
    %147 = vector.broadcast %146 : vector<1x128xf32> to vector<32x128xf32>
    %148 = arith.addf %145, %147 : vector<32x128xf32>
    %c1_i32_67 = arith.constant 1 : i32
    %149 = tpu.dynamic_rotate %148 by %c1_i32_67 dim 0 : vector<32x128xf32>, i32 -> vector<32x128xf32>
    %cst_68 = arith.constant 0.000000e+00 : f32
    %150 = vector.shape_cast %18 : vector<32x1xi1> to vector<32x1xi1>
    %151 = vector.broadcast %150 : vector<32x1xi1> to vector<32x128xi1>
    %152 = vector.broadcast %cst_68 : f32 to vector<32x128xf32>
    %153 = arith.select %151, %149, %152 : vector<32x128xi1>, vector<32x128xf32>
    %c31_i32_69 = arith.constant 31 : i32
    %154 = tpu.dynamic_rotate %148 by %c31_i32_69 dim 0 : vector<32x128xf32>, i32 -> vector<32x128xf32>
    %cst_70 = arith.constant 0.000000e+00 : f32
    %155 = vector.shape_cast %36 : vector<32x1xi1> to vector<32x1xi1>
    %156 = vector.broadcast %155 : vector<32x1xi1> to vector<32x128xi1>
    %157 = vector.broadcast %cst_70 : f32 to vector<32x128xf32>
    %158 = arith.select %156, %154, %157 : vector<32x128xi1>, vector<32x128xf32>
    %159 = tpu.concatenate %153, %148, %158 in 1 : vector<32x128xf32>, vector<32x128xf32>, vector<32x128xf32> -> vector<32x384xf32>
    %c3 = arith.constant 3 : index
    %c0_71 = arith.constant 0 : index
    %c0_72 = arith.constant 0 : index
    %160 = vector.load %arg2[%c3, %c0_71, %c0_72] : memref<16x384x128xf32, #tpu.memory_space<vmem>>, vector<1x384x128xf32>
    %161 = vector.shape_cast %160 : vector<1x384x128xf32> to vector<384x128xf32>
    %cst_73 = arith.constant dense<0.000000e+00> : vector<32x128xf32>
    %162 = tpu.matmul %159, %161, %cst_73 {dimension_numbers = #tpu.dot_dimension_numbers<[1], [0], [0], [1], [0, 0, 1, 1], [], []>} : vector<32x384xf32>, vector<384x128xf32>, vector<32x128xf32> -> vector<32x128xf32>
    %c3_74 = arith.constant 3 : index
    %c0_75 = arith.constant 0 : index
    %163 = vector.load %arg3[%c3_74, %c0_75] : memref<16x128xf32, #tpu.memory_space<vmem>>, vector<1x128xf32>
    %164 = vector.broadcast %163 : vector<1x128xf32> to vector<32x128xf32>
    %165 = arith.addf %162, %164 : vector<32x128xf32>
    %cst_76 = arith.constant 0.000000e+00 : f32
    %166 = vector.broadcast %cst_76 : f32 to vector<32x128xf32>
    %167 = arith.maximumf %165, %166 : vector<32x128xf32>
    %c1_i32_77 = arith.constant 1 : i32
    %168 = tpu.dynamic_rotate %167 by %c1_i32_77 dim 0 : vector<32x128xf32>, i32 -> vector<32x128xf32>
    %cst_78 = arith.constant 0.000000e+00 : f32
    %169 = vector.shape_cast %18 : vector<32x1xi1> to vector<32x1xi1>
    %170 = vector.broadcast %169 : vector<32x1xi1> to vector<32x128xi1>
    %171 = vector.broadcast %cst_78 : f32 to vector<32x128xf32>
    %172 = arith.select %170, %168, %171 : vector<32x128xi1>, vector<32x128xf32>
    %c31_i32_79 = arith.constant 31 : i32
    %173 = tpu.dynamic_rotate %167 by %c31_i32_79 dim 0 : vector<32x128xf32>, i32 -> vector<32x128xf32>
    %cst_80 = arith.constant 0.000000e+00 : f32
    %174 = vector.shape_cast %36 : vector<32x1xi1> to vector<32x1xi1>
    %175 = vector.broadcast %174 : vector<32x1xi1> to vector<32x128xi1>
    %176 = vector.broadcast %cst_80 : f32 to vector<32x128xf32>
    %177 = arith.select %175, %173, %176 : vector<32x128xi1>, vector<32x128xf32>
    %178 = tpu.concatenate %172, %167, %177 in 1 : vector<32x128xf32>, vector<32x128xf32>, vector<32x128xf32> -> vector<32x384xf32>
    %c11 = arith.constant 11 : index
    %c0_81 = arith.constant 0 : index
    %c0_82 = arith.constant 0 : index
    %179 = vector.load %arg2[%c11, %c0_81, %c0_82] : memref<16x384x128xf32, #tpu.memory_space<vmem>>, vector<1x384x128xf32>
    %180 = vector.shape_cast %179 : vector<1x384x128xf32> to vector<384x128xf32>
    %cst_83 = arith.constant dense<0.000000e+00> : vector<32x128xf32>
    %181 = tpu.matmul %178, %180, %cst_83 {dimension_numbers = #tpu.dot_dimension_numbers<[1], [0], [0], [1], [0, 0, 1, 1], [], []>} : vector<32x384xf32>, vector<384x128xf32>, vector<32x128xf32> -> vector<32x128xf32>
    %182 = arith.addf %148, %181 : vector<32x128xf32>
    %c11_84 = arith.constant 11 : index
    %c0_85 = arith.constant 0 : index
    %183 = vector.load %arg3[%c11_84, %c0_85] : memref<16x128xf32, #tpu.memory_space<vmem>>, vector<1x128xf32>
    %184 = vector.broadcast %183 : vector<1x128xf32> to vector<32x128xf32>
    %185 = arith.addf %182, %184 : vector<32x128xf32>
    %c1_i32_86 = arith.constant 1 : i32
    %186 = tpu.dynamic_rotate %185 by %c1_i32_86 dim 0 : vector<32x128xf32>, i32 -> vector<32x128xf32>
    %cst_87 = arith.constant 0.000000e+00 : f32
    %187 = vector.shape_cast %18 : vector<32x1xi1> to vector<32x1xi1>
    %188 = vector.broadcast %187 : vector<32x1xi1> to vector<32x128xi1>
    %189 = vector.broadcast %cst_87 : f32 to vector<32x128xf32>
    %190 = arith.select %188, %186, %189 : vector<32x128xi1>, vector<32x128xf32>
    %c31_i32_88 = arith.constant 31 : i32
    %191 = tpu.dynamic_rotate %185 by %c31_i32_88 dim 0 : vector<32x128xf32>, i32 -> vector<32x128xf32>
    %cst_89 = arith.constant 0.000000e+00 : f32
    %192 = vector.shape_cast %36 : vector<32x1xi1> to vector<32x1xi1>
    %193 = vector.broadcast %192 : vector<32x1xi1> to vector<32x128xi1>
    %194 = vector.broadcast %cst_89 : f32 to vector<32x128xf32>
    %195 = arith.select %193, %191, %194 : vector<32x128xi1>, vector<32x128xf32>
    %196 = tpu.concatenate %190, %185, %195 in 1 : vector<32x128xf32>, vector<32x128xf32>, vector<32x128xf32> -> vector<32x384xf32>
    %c4 = arith.constant 4 : index
    %c0_90 = arith.constant 0 : index
    %c0_91 = arith.constant 0 : index
    %197 = vector.load %arg2[%c4, %c0_90, %c0_91] : memref<16x384x128xf32, #tpu.memory_space<vmem>>, vector<1x384x128xf32>
    %198 = vector.shape_cast %197 : vector<1x384x128xf32> to vector<384x128xf32>
    %cst_92 = arith.constant dense<0.000000e+00> : vector<32x128xf32>
    %199 = tpu.matmul %196, %198, %cst_92 {dimension_numbers = #tpu.dot_dimension_numbers<[1], [0], [0], [1], [0, 0, 1, 1], [], []>} : vector<32x384xf32>, vector<384x128xf32>, vector<32x128xf32> -> vector<32x128xf32>
    %c4_93 = arith.constant 4 : index
    %c0_94 = arith.constant 0 : index
    %200 = vector.load %arg3[%c4_93, %c0_94] : memref<16x128xf32, #tpu.memory_space<vmem>>, vector<1x128xf32>
    %201 = vector.broadcast %200 : vector<1x128xf32> to vector<32x128xf32>
    %202 = arith.addf %199, %201 : vector<32x128xf32>
    %cst_95 = arith.constant 0.000000e+00 : f32
    %203 = vector.broadcast %cst_95 : f32 to vector<32x128xf32>
    %204 = arith.maximumf %202, %203 : vector<32x128xf32>
    %c1_i32_96 = arith.constant 1 : i32
    %205 = tpu.dynamic_rotate %204 by %c1_i32_96 dim 0 : vector<32x128xf32>, i32 -> vector<32x128xf32>
    %cst_97 = arith.constant 0.000000e+00 : f32
    %206 = vector.shape_cast %18 : vector<32x1xi1> to vector<32x1xi1>
    %207 = vector.broadcast %206 : vector<32x1xi1> to vector<32x128xi1>
    %208 = vector.broadcast %cst_97 : f32 to vector<32x128xf32>
    %209 = arith.select %207, %205, %208 : vector<32x128xi1>, vector<32x128xf32>
    %c31_i32_98 = arith.constant 31 : i32
    %210 = tpu.dynamic_rotate %204 by %c31_i32_98 dim 0 : vector<32x128xf32>, i32 -> vector<32x128xf32>
    %cst_99 = arith.constant 0.000000e+00 : f32
    %211 = vector.shape_cast %36 : vector<32x1xi1> to vector<32x1xi1>
    %212 = vector.broadcast %211 : vector<32x1xi1> to vector<32x128xi1>
    %213 = vector.broadcast %cst_99 : f32 to vector<32x128xf32>
    %214 = arith.select %212, %210, %213 : vector<32x128xi1>, vector<32x128xf32>
    %215 = tpu.concatenate %209, %204, %214 in 1 : vector<32x128xf32>, vector<32x128xf32>, vector<32x128xf32> -> vector<32x384xf32>
    %c12 = arith.constant 12 : index
    %c0_100 = arith.constant 0 : index
    %c0_101 = arith.constant 0 : index
    %216 = vector.load %arg2[%c12, %c0_100, %c0_101] : memref<16x384x128xf32, #tpu.memory_space<vmem>>, vector<1x384x128xf32>
    %217 = vector.shape_cast %216 : vector<1x384x128xf32> to vector<384x128xf32>
    %cst_102 = arith.constant dense<0.000000e+00> : vector<32x128xf32>
    %218 = tpu.matmul %215, %217, %cst_102 {dimension_numbers = #tpu.dot_dimension_numbers<[1], [0], [0], [1], [0, 0, 1, 1], [], []>} : vector<32x384xf32>, vector<384x128xf32>, vector<32x128xf32> -> vector<32x128xf32>
    %219 = arith.addf %185, %218 : vector<32x128xf32>
    %c12_103 = arith.constant 12 : index
    %c0_104 = arith.constant 0 : index
    %220 = vector.load %arg3[%c12_103, %c0_104] : memref<16x128xf32, #tpu.memory_space<vmem>>, vector<1x128xf32>
    %221 = vector.broadcast %220 : vector<1x128xf32> to vector<32x128xf32>
    %222 = arith.addf %219, %221 : vector<32x128xf32>
    %c1_i32_105 = arith.constant 1 : i32
    %223 = tpu.dynamic_rotate %222 by %c1_i32_105 dim 0 : vector<32x128xf32>, i32 -> vector<32x128xf32>
    %cst_106 = arith.constant 0.000000e+00 : f32
    %224 = vector.shape_cast %18 : vector<32x1xi1> to vector<32x1xi1>
    %225 = vector.broadcast %224 : vector<32x1xi1> to vector<32x128xi1>
    %226 = vector.broadcast %cst_106 : f32 to vector<32x128xf32>
    %227 = arith.select %225, %223, %226 : vector<32x128xi1>, vector<32x128xf32>
    %c31_i32_107 = arith.constant 31 : i32
    %228 = tpu.dynamic_rotate %222 by %c31_i32_107 dim 0 : vector<32x128xf32>, i32 -> vector<32x128xf32>
    %cst_108 = arith.constant 0.000000e+00 : f32
    %229 = vector.shape_cast %36 : vector<32x1xi1> to vector<32x1xi1>
    %230 = vector.broadcast %229 : vector<32x1xi1> to vector<32x128xi1>
    %231 = vector.broadcast %cst_108 : f32 to vector<32x128xf32>
    %232 = arith.select %230, %228, %231 : vector<32x128xi1>, vector<32x128xf32>
    %233 = tpu.concatenate %227, %222, %232 in 1 : vector<32x128xf32>, vector<32x128xf32>, vector<32x128xf32> -> vector<32x384xf32>
    %c5 = arith.constant 5 : index
    %c0_109 = arith.constant 0 : index
    %c0_110 = arith.constant 0 : index
    %234 = vector.load %arg2[%c5, %c0_109, %c0_110] : memref<16x384x128xf32, #tpu.memory_space<vmem>>, vector<1x384x128xf32>
    %235 = vector.shape_cast %234 : vector<1x384x128xf32> to vector<384x128xf32>
    %cst_111 = arith.constant dense<0.000000e+00> : vector<32x128xf32>
    %236 = tpu.matmul %233, %235, %cst_111 {dimension_numbers = #tpu.dot_dimension_numbers<[1], [0], [0], [1], [0, 0, 1, 1], [], []>} : vector<32x384xf32>, vector<384x128xf32>, vector<32x128xf32> -> vector<32x128xf32>
    %c5_112 = arith.constant 5 : index
    %c0_113 = arith.constant 0 : index
    %237 = vector.load %arg3[%c5_112, %c0_113] : memref<16x128xf32, #tpu.memory_space<vmem>>, vector<1x128xf32>
    %238 = vector.broadcast %237 : vector<1x128xf32> to vector<32x128xf32>
    %239 = arith.addf %236, %238 : vector<32x128xf32>
    %cst_114 = arith.constant 0.000000e+00 : f32
    %240 = vector.broadcast %cst_114 : f32 to vector<32x128xf32>
    %241 = arith.maximumf %239, %240 : vector<32x128xf32>
    %c1_i32_115 = arith.constant 1 : i32
    %242 = tpu.dynamic_rotate %241 by %c1_i32_115 dim 0 : vector<32x128xf32>, i32 -> vector<32x128xf32>
    %cst_116 = arith.constant 0.000000e+00 : f32
    %243 = vector.shape_cast %18 : vector<32x1xi1> to vector<32x1xi1>
    %244 = vector.broadcast %243 : vector<32x1xi1> to vector<32x128xi1>
    %245 = vector.broadcast %cst_116 : f32 to vector<32x128xf32>
    %246 = arith.select %244, %242, %245 : vector<32x128xi1>, vector<32x128xf32>
    %c31_i32_117 = arith.constant 31 : i32
    %247 = tpu.dynamic_rotate %241 by %c31_i32_117 dim 0 : vector<32x128xf32>, i32 -> vector<32x128xf32>
    %cst_118 = arith.constant 0.000000e+00 : f32
    %248 = vector.shape_cast %36 : vector<32x1xi1> to vector<32x1xi1>
    %249 = vector.broadcast %248 : vector<32x1xi1> to vector<32x128xi1>
    %250 = vector.broadcast %cst_118 : f32 to vector<32x128xf32>
    %251 = arith.select %249, %247, %250 : vector<32x128xi1>, vector<32x128xf32>
    %252 = tpu.concatenate %246, %241, %251 in 1 : vector<32x128xf32>, vector<32x128xf32>, vector<32x128xf32> -> vector<32x384xf32>
    %c13 = arith.constant 13 : index
    %c0_119 = arith.constant 0 : index
    %c0_120 = arith.constant 0 : index
    %253 = vector.load %arg2[%c13, %c0_119, %c0_120] : memref<16x384x128xf32, #tpu.memory_space<vmem>>, vector<1x384x128xf32>
    %254 = vector.shape_cast %253 : vector<1x384x128xf32> to vector<384x128xf32>
    %cst_121 = arith.constant dense<0.000000e+00> : vector<32x128xf32>
    %255 = tpu.matmul %252, %254, %cst_121 {dimension_numbers = #tpu.dot_dimension_numbers<[1], [0], [0], [1], [0, 0, 1, 1], [], []>} : vector<32x384xf32>, vector<384x128xf32>, vector<32x128xf32> -> vector<32x128xf32>
    %256 = arith.addf %222, %255 : vector<32x128xf32>
    %c13_122 = arith.constant 13 : index
    %c0_123 = arith.constant 0 : index
    %257 = vector.load %arg3[%c13_122, %c0_123] : memref<16x128xf32, #tpu.memory_space<vmem>>, vector<1x128xf32>
    %258 = vector.broadcast %257 : vector<1x128xf32> to vector<32x128xf32>
    %259 = arith.addf %256, %258 : vector<32x128xf32>
    %c1_i32_124 = arith.constant 1 : i32
    %260 = tpu.dynamic_rotate %259 by %c1_i32_124 dim 0 : vector<32x128xf32>, i32 -> vector<32x128xf32>
    %cst_125 = arith.constant 0.000000e+00 : f32
    %261 = vector.shape_cast %18 : vector<32x1xi1> to vector<32x1xi1>
    %262 = vector.broadcast %261 : vector<32x1xi1> to vector<32x128xi1>
    %263 = vector.broadcast %cst_125 : f32 to vector<32x128xf32>
    %264 = arith.select %262, %260, %263 : vector<32x128xi1>, vector<32x128xf32>
    %c31_i32_126 = arith.constant 31 : i32
    %265 = tpu.dynamic_rotate %259 by %c31_i32_126 dim 0 : vector<32x128xf32>, i32 -> vector<32x128xf32>
    %cst_127 = arith.constant 0.000000e+00 : f32
    %266 = vector.shape_cast %36 : vector<32x1xi1> to vector<32x1xi1>
    %267 = vector.broadcast %266 : vector<32x1xi1> to vector<32x128xi1>
    %268 = vector.broadcast %cst_127 : f32 to vector<32x128xf32>
    %269 = arith.select %267, %265, %268 : vector<32x128xi1>, vector<32x128xf32>
    %270 = tpu.concatenate %264, %259, %269 in 1 : vector<32x128xf32>, vector<32x128xf32>, vector<32x128xf32> -> vector<32x384xf32>
    %c6 = arith.constant 6 : index
    %c0_128 = arith.constant 0 : index
    %c0_129 = arith.constant 0 : index
    %271 = vector.load %arg2[%c6, %c0_128, %c0_129] : memref<16x384x128xf32, #tpu.memory_space<vmem>>, vector<1x384x128xf32>
    %272 = vector.shape_cast %271 : vector<1x384x128xf32> to vector<384x128xf32>
    %cst_130 = arith.constant dense<0.000000e+00> : vector<32x128xf32>
    %273 = tpu.matmul %270, %272, %cst_130 {dimension_numbers = #tpu.dot_dimension_numbers<[1], [0], [0], [1], [0, 0, 1, 1], [], []>} : vector<32x384xf32>, vector<384x128xf32>, vector<32x128xf32> -> vector<32x128xf32>
    %c6_131 = arith.constant 6 : index
    %c0_132 = arith.constant 0 : index
    %274 = vector.load %arg3[%c6_131, %c0_132] : memref<16x128xf32, #tpu.memory_space<vmem>>, vector<1x128xf32>
    %275 = vector.broadcast %274 : vector<1x128xf32> to vector<32x128xf32>
    %276 = arith.addf %273, %275 : vector<32x128xf32>
    %cst_133 = arith.constant 0.000000e+00 : f32
    %277 = vector.broadcast %cst_133 : f32 to vector<32x128xf32>
    %278 = arith.maximumf %276, %277 : vector<32x128xf32>
    %c1_i32_134 = arith.constant 1 : i32
    %279 = tpu.dynamic_rotate %278 by %c1_i32_134 dim 0 : vector<32x128xf32>, i32 -> vector<32x128xf32>
    %cst_135 = arith.constant 0.000000e+00 : f32
    %280 = vector.shape_cast %18 : vector<32x1xi1> to vector<32x1xi1>
    %281 = vector.broadcast %280 : vector<32x1xi1> to vector<32x128xi1>
    %282 = vector.broadcast %cst_135 : f32 to vector<32x128xf32>
    %283 = arith.select %281, %279, %282 : vector<32x128xi1>, vector<32x128xf32>
    %c31_i32_136 = arith.constant 31 : i32
    %284 = tpu.dynamic_rotate %278 by %c31_i32_136 dim 0 : vector<32x128xf32>, i32 -> vector<32x128xf32>
    %cst_137 = arith.constant 0.000000e+00 : f32
    %285 = vector.shape_cast %36 : vector<32x1xi1> to vector<32x1xi1>
    %286 = vector.broadcast %285 : vector<32x1xi1> to vector<32x128xi1>
    %287 = vector.broadcast %cst_137 : f32 to vector<32x128xf32>
    %288 = arith.select %286, %284, %287 : vector<32x128xi1>, vector<32x128xf32>
    %289 = tpu.concatenate %283, %278, %288 in 1 : vector<32x128xf32>, vector<32x128xf32>, vector<32x128xf32> -> vector<32x384xf32>
    %c14 = arith.constant 14 : index
    %c0_138 = arith.constant 0 : index
    %c0_139 = arith.constant 0 : index
    %290 = vector.load %arg2[%c14, %c0_138, %c0_139] : memref<16x384x128xf32, #tpu.memory_space<vmem>>, vector<1x384x128xf32>
    %291 = vector.shape_cast %290 : vector<1x384x128xf32> to vector<384x128xf32>
    %cst_140 = arith.constant dense<0.000000e+00> : vector<32x128xf32>
    %292 = tpu.matmul %289, %291, %cst_140 {dimension_numbers = #tpu.dot_dimension_numbers<[1], [0], [0], [1], [0, 0, 1, 1], [], []>} : vector<32x384xf32>, vector<384x128xf32>, vector<32x128xf32> -> vector<32x128xf32>
    %293 = arith.addf %259, %292 : vector<32x128xf32>
    %c14_141 = arith.constant 14 : index
    %c0_142 = arith.constant 0 : index
    %294 = vector.load %arg3[%c14_141, %c0_142] : memref<16x128xf32, #tpu.memory_space<vmem>>, vector<1x128xf32>
    %295 = vector.broadcast %294 : vector<1x128xf32> to vector<32x128xf32>
    %296 = arith.addf %293, %295 : vector<32x128xf32>
    %c1_i32_143 = arith.constant 1 : i32
    %297 = tpu.dynamic_rotate %296 by %c1_i32_143 dim 0 : vector<32x128xf32>, i32 -> vector<32x128xf32>
    %cst_144 = arith.constant 0.000000e+00 : f32
    %298 = vector.shape_cast %18 : vector<32x1xi1> to vector<32x1xi1>
    %299 = vector.broadcast %298 : vector<32x1xi1> to vector<32x128xi1>
    %300 = vector.broadcast %cst_144 : f32 to vector<32x128xf32>
    %301 = arith.select %299, %297, %300 : vector<32x128xi1>, vector<32x128xf32>
    %c31_i32_145 = arith.constant 31 : i32
    %302 = tpu.dynamic_rotate %296 by %c31_i32_145 dim 0 : vector<32x128xf32>, i32 -> vector<32x128xf32>
    %cst_146 = arith.constant 0.000000e+00 : f32
    %303 = vector.shape_cast %36 : vector<32x1xi1> to vector<32x1xi1>
    %304 = vector.broadcast %303 : vector<32x1xi1> to vector<32x128xi1>
    %305 = vector.broadcast %cst_146 : f32 to vector<32x128xf32>
    %306 = arith.select %304, %302, %305 : vector<32x128xi1>, vector<32x128xf32>
    %307 = tpu.concatenate %301, %296, %306 in 1 : vector<32x128xf32>, vector<32x128xf32>, vector<32x128xf32> -> vector<32x384xf32>
    %c7 = arith.constant 7 : index
    %c0_147 = arith.constant 0 : index
    %c0_148 = arith.constant 0 : index
    %308 = vector.load %arg2[%c7, %c0_147, %c0_148] : memref<16x384x128xf32, #tpu.memory_space<vmem>>, vector<1x384x128xf32>
    %309 = vector.shape_cast %308 : vector<1x384x128xf32> to vector<384x128xf32>
    %cst_149 = arith.constant dense<0.000000e+00> : vector<32x128xf32>
    %310 = tpu.matmul %307, %309, %cst_149 {dimension_numbers = #tpu.dot_dimension_numbers<[1], [0], [0], [1], [0, 0, 1, 1], [], []>} : vector<32x384xf32>, vector<384x128xf32>, vector<32x128xf32> -> vector<32x128xf32>
    %c7_150 = arith.constant 7 : index
    %c0_151 = arith.constant 0 : index
    %311 = vector.load %arg3[%c7_150, %c0_151] : memref<16x128xf32, #tpu.memory_space<vmem>>, vector<1x128xf32>
    %312 = vector.broadcast %311 : vector<1x128xf32> to vector<32x128xf32>
    %313 = arith.addf %310, %312 : vector<32x128xf32>
    %cst_152 = arith.constant 0.000000e+00 : f32
    %314 = vector.broadcast %cst_152 : f32 to vector<32x128xf32>
    %315 = arith.maximumf %313, %314 : vector<32x128xf32>
    %c1_i32_153 = arith.constant 1 : i32
    %316 = tpu.dynamic_rotate %315 by %c1_i32_153 dim 0 : vector<32x128xf32>, i32 -> vector<32x128xf32>
    %cst_154 = arith.constant 0.000000e+00 : f32
    %317 = vector.shape_cast %18 : vector<32x1xi1> to vector<32x1xi1>
    %318 = vector.broadcast %317 : vector<32x1xi1> to vector<32x128xi1>
    %319 = vector.broadcast %cst_154 : f32 to vector<32x128xf32>
    %320 = arith.select %318, %316, %319 : vector<32x128xi1>, vector<32x128xf32>
    %c31_i32_155 = arith.constant 31 : i32
    %321 = tpu.dynamic_rotate %315 by %c31_i32_155 dim 0 : vector<32x128xf32>, i32 -> vector<32x128xf32>
    %cst_156 = arith.constant 0.000000e+00 : f32
    %322 = vector.shape_cast %36 : vector<32x1xi1> to vector<32x1xi1>
    %323 = vector.broadcast %322 : vector<32x1xi1> to vector<32x128xi1>
    %324 = vector.broadcast %cst_156 : f32 to vector<32x128xf32>
    %325 = arith.select %323, %321, %324 : vector<32x128xi1>, vector<32x128xf32>
    %326 = tpu.concatenate %320, %315, %325 in 1 : vector<32x128xf32>, vector<32x128xf32>, vector<32x128xf32> -> vector<32x384xf32>
    %c15 = arith.constant 15 : index
    %c0_157 = arith.constant 0 : index
    %c0_158 = arith.constant 0 : index
    %327 = vector.load %arg2[%c15, %c0_157, %c0_158] : memref<16x384x128xf32, #tpu.memory_space<vmem>>, vector<1x384x128xf32>
    %328 = vector.shape_cast %327 : vector<1x384x128xf32> to vector<384x128xf32>
    %cst_159 = arith.constant dense<0.000000e+00> : vector<32x128xf32>
    %329 = tpu.matmul %326, %328, %cst_159 {dimension_numbers = #tpu.dot_dimension_numbers<[1], [0], [0], [1], [0, 0, 1, 1], [], []>} : vector<32x384xf32>, vector<384x128xf32>, vector<32x128xf32> -> vector<32x128xf32>
    %330 = arith.addf %296, %329 : vector<32x128xf32>
    %c15_160 = arith.constant 15 : index
    %c0_161 = arith.constant 0 : index
    %331 = vector.load %arg3[%c15_160, %c0_161] : memref<16x128xf32, #tpu.memory_space<vmem>>, vector<1x128xf32>
    %332 = vector.broadcast %331 : vector<1x128xf32> to vector<32x128xf32>
    %333 = arith.addf %330, %332 : vector<32x128xf32>
    %c0_162 = arith.constant 0 : index
    %c0_163 = arith.constant 0 : index
    %334 = vector.load %arg4[%c0_162, %c0_163] : memref<32x128xf32, #tpu.memory_space<vmem>>, vector<32x128xf32>
    tpu.vector_store %arg4[%c0_162, %c0_163], %333 {strides = array<i32>} : memref<32x128xf32, #tpu.memory_space<vmem>>, vector<32x128xf32>,
    return
  }
  func.func @transform_0(%arg0: i32) -> (i32, i32) {
    %c0_i32 = arith.constant 0 : i32
    %c0_i32_0 = arith.constant 0 : i32
    %c0_i32_1 = arith.constant 0 : i32
    return %c0_i32, %c0_i32_0 : i32, i32
  }
  func.func @transform_1(%arg0: i32) -> (i32, i32, i32) {
    %c0_i32 = arith.constant 0 : i32
    %c0_i32_0 = arith.constant 0 : i32
    %c0_i32_1 = arith.constant 0 : i32
    %c0_i32_2 = arith.constant 0 : i32
    return %c0_i32, %c0_i32_0, %c0_i32_1 : i32, i32, i32
  }
  func.func @transform_2(%arg0: i32) -> (i32, i32) {
    %c0_i32 = arith.constant 0 : i32
    %c0_i32_0 = arith.constant 0 : i32
    %c0_i32_1 = arith.constant 0 : i32
    return %c0_i32, %c0_i32_0 : i32, i32
  }
  func.func @transform_3(%arg0: i32) -> (i32, i32) {
    %c0_i32 = arith.constant 0 : i32
    %c0_i32_0 = arith.constant 0 : i32
    %c0_i32_1 = arith.constant 0 : i32
    return %c0_i32, %c0_i32_0 : i32, i32
  }
}

</mosaic_0001>

<bundles_post_ra>
// kernel: tpu_custom_call.1
= control target key start
LH: loop header
LB: loop body
LE: loop exit
PB: predicated region body
PF: predicated region fallthrough
CT: control target
= control target key end

     0   :  { %8 = vsyncpa [#allocation3], 0  ;;  %s7765_s0 = inlined_call_operand.hbm [shape: f32[32,128], index: 0, kind: input, shape index: {}]   ;;  %s7766_s1 = inlined_call_operand.hbm [shape: f32[16,384,128], index: 1, kind: input, shape index: {}]   ;;  %s7767_s2 = inlined_call_operand.hbm [shape: f32[16,128], index: 2, kind: input, shape index: {}]   ;;  %s7768_s3 = inlined_call_operand.hbm [shape: f32[32,128], index: 3, kind: output, shape index: {}]  }
   0x1   :  { %9 = vsyncpa [#allocation6], 0 }
   0x2   :  { %10 = vsyncpa [#allocation4], 0  ;;  %s7060_s12 = smov [#allocation5]   ;;  %s7061_s14 = smov [#allocation2]  }
   0x3   :  { %s28_s13 = sshll.u32 %s7060_s12, 4  ;;  %s16_s15 = sshll.u32 %s7061_s14, 4  ;;  %s29_s13 = int_to_ptr.vmem [resolvable:$true] %s28_s13  ;;  %s7086_s15 = int_to_ptr.vmem [resolvable:$true] %s16_s15 }
   0x4   :  { %s6966_s18 = scalar_lea.hbm %s7766_s1, 98304 }
   0x5   :  { %p6967_p0 = scmp.ne.s32.totalorder %s7766_s1, %s6966_s18  ;;  %p6970_p1 = scmp.lt.u32.totalorder %s6966_s18, %s7766_s1 }
   0x7   :  { %p6972_p2 = pnand %p6970_p1, %p6967_p0 }
   0x9   :  { %6975 = shalt.err (!%p6972_p2)
}
   0xa   :  { %s6976_s23 = scalar_lea.vmem %s29_s13, 98304  ;;  %p6981_p4 = scmp.lt.s32.totalorder %s29_s13, %s29_s13 }
   0xb   :  { %p6977_p3 = scmp.ne.s32.totalorder %s29_s13, %s6976_s23  ;;  %p6982_p5 = scmp.lt.s32.totalorder %s6976_s23, %s6976_s23 }
   0xd   :  { %p6983_p6 = por %p6982_p5, %p6981_p4 }
   0xf   :  { %p6984_p7 = pnand %p6983_p6, %p6977_p3 }
  0x11   :  { %6987 = shalt.err (!%p6984_p7)
}
  0x12   :  { %s7062_s24 = smov 128   ;;  %s7063_s25 = smov 8  }
  0x13   :  { %34 = dma.hbm_to_vmem [thread:$0]  %s7766_s1, 98304, %s29_s13, [#allocation6], %s7062_s24, %s7062_s24, %s7063_s25  }
  0x14   :  { %s6988_s30 = scalar_lea.hbm %s7765_s0, 512 }
  0x15   :  { %p6989_p8 = scmp.ne.s32.totalorder %s7765_s0, %s6988_s30  ;;  %p6992_p9 = scmp.lt.u32.totalorder %s6988_s30, %s7765_s0 }
  0x17   :  { %p6994_p10 = pnand %p6992_p9, %p6989_p8 }
  0x19   :  { %6997 = shalt.err (!%p6994_p10)
}
  0x1a   :  { %s6998_s8 = scalar_lea.vmem %s7086_s15, 512  ;;  %p7003_p12 = scmp.lt.s32.totalorder %s7086_s15, %s7086_s15 }
  0x1b   :  { %p6999_p11 = scmp.ne.s32.totalorder %s7086_s15, %s6998_s8  ;;  %p7004_p13 = scmp.lt.s32.totalorder %s6998_s8, %s6998_s8 }
  0x1d   :  { %p7005_p0 = por %p7004_p13, %p7003_p12 }
  0x1f   :  { %p7006_p1 = pnand %p7005_p0, %p6999_p11 }
  0x21   :  { %7009 = shalt.err (!%p7006_p1)
}
  0x22   :  { %22 = dma.hbm_to_vmem [thread:$0]  %s7765_s0, 512, %s7086_s15, [#allocation3], %s7062_s24, %s7062_s24, %s7063_s25  }
  0x23   :  { %s7064_s10 = smov [#allocation7]   ;;  %s7010_s14 = scalar_lea.hbm %s7767_s2, 256 }
  0x24   :  { %s40_s11 = sshll.u32 %s7064_s10, 4  ;;  %p7011_p2 = scmp.ne.s32.totalorder %s7767_s2, %s7010_s14  ;;  %s41_s11 = int_to_ptr.vmem [resolvable:$true] %s40_s11 }
  0x25   :  { %p7014_p3 = scmp.lt.u32.totalorder %s7010_s14, %s7767_s2 }
  0x27   :  { %p7016_p4 = pnand %p7014_p3, %p7011_p2 }
  0x29   :  { %7019 = shalt.err (!%p7016_p4)
}
  0x2a   :  { %s7020_s20 = scalar_lea.vmem %s41_s11, 256  ;;  %p7025_p6 = scmp.lt.s32.totalorder %s41_s11, %s41_s11 }
  0x2b   :  { %p7021_p5 = scmp.ne.s32.totalorder %s41_s11, %s7020_s20  ;;  %p7026_p7 = scmp.lt.s32.totalorder %s7020_s20, %s7020_s20 }
  0x2d   :  { %p7027_p8 = por %p7026_p7, %p7025_p6 }
  0x2f   :  { %p7028_p9 = pnand %p7027_p8, %p7021_p5 }
  0x31   :  { %7031 = shalt.err (!%p7028_p9)
}
  0x32   :  { %46 = dma.hbm_to_vmem [thread:$0]  %s7767_s2, 256, %s41_s11, [#allocation6], %s7062_s24, %s7062_s24, %s7063_s25  }
  0x33   :  { %7054 = dma.done.wait [#allocation3], 512  }
  0x34   :  { %7055 = vsyncadd [#allocation3], 4294966784 }
  0x35   :  { %7056 = dma.done.wait [#allocation6], 98560  }
  0x36   :  { %7057 = vsyncadd [#allocation6], 4294868736  ;;  %v179_v0 = vld [vmem:[#allocation5 + $0x80] sm:$0xff]  ;;  %v180_v1 = vld [vmem:[#allocation5 + $0x88] sm:$0xff]  ;;  %v56_v36 = vlaneseq  ;;  %s7065_s2 = smov [#allocation8]  }
  0x37   :  { %v163_v2 = vld [vmem:[#allocation5] sm:$0xff]  ;;  %v5936_v3 = vpack.c.bf16 %v180_v1, %v179_v0  ;;  %v164_v4 = vld [vmem:[#allocation5 + $0x8] sm:$0xff]  ;;  %v181_v5 = vld [vmem:[#allocation5 + $0x90] sm:$0xff]  ;;  %s4211_s21 = sshll.u32 %s7065_s2, 4  ;;  %s4212_s21 = int_to_ptr.vmem [resolvable:$true] %s4211_s21 }
  0x38   :  { %v182_v6 = vld [vmem:[#allocation5 + $0x98] sm:$0xff]  ;;  %v5938_v7 = vpack.c.bf16 %v164_v4, %v163_v2  ;;  %v195_v9 = vld [vmem:[#allocation5 + $0x100] sm:$0xff]  ;;  %v196_v10 = vld [vmem:[#allocation5 + $0x108] sm:$0xff]  ;;  %v7138_v46 = vshrl.u32 %v56_v36, 7  ;;  %s7032_s22 = scalar_lea.vmem %s4212_s21, 512  ;;  %p7037_p11 = scmp.lt.s32.totalorder %s4212_s21, %s4212_s21 }
  0x39   :  { %v5940_v8 = vpack.c.bf16 %v182_v6, %v181_v5  ;;  %v165_v11 = vld [vmem:[#allocation5 + $0x10] sm:$0xff]  ;;  %5937 = vmatprep.subr.bf16.mxu0 %v5936_v3  ;;  %v5968_v12 = vpack.c.bf16 %v196_v10, %v195_v9  ;;  %v166_v13 = vld [vmem:[#allocation5 + $0x18] sm:$0xff]  ;;  %v183_v14 = vld [vmem:[#allocation5 + $0xa0] sm:$0xff]  ;;  %p7033_p10 = scmp.ne.s32.totalorder %s4212_s21, %s7032_s22  ;;  %p7038_p12 = scmp.lt.s32.totalorder %s7032_s22, %s7032_s22 }
  0x3a   :  { %v184_v15 = vld [vmem:[#allocation5 + $0xa8] sm:$0xff]  ;;  %5939 = vmatpush3.bf16.msra.mxu0 %v5938_v7  ;;  %v5942_v16 = vpack.c.bf16 %v166_v13, %v165_v11  ;;  %v197_v17 = vld [vmem:[#allocation5 + $0x110] sm:$0xff]  ;;  %v198_v18 = vld [vmem:[#allocation5 + $0x118] sm:$0xff]  ;;  %vm146_vm0 = vcmp.lt.s32.totalorder %v7138_v46, 7  ;;  %vm125_vm1 = vcmp.lt.s32.totalorder %v7138_v46, 1 }
  0x3b   :  { %5941 = vmatprep.subr.bf16.mxu0 %v5940_v8  ;;  %5969 = vmatprep.subr.bf16.mxu1 %v5968_v12  ;;  %v5944_v19 = vpack.c.bf16 %v184_v15, %v183_v14  ;;  %v5972_v20 = vpack.c.bf16 %v198_v18, %v197_v17  ;;  %v167_v21 = vld [vmem:[#allocation5 + $0x20] sm:$0xff]  ;;  %v168_v22 = vld [vmem:[#allocation5 + $0x28] sm:$0xff]  ;;  %v185_v23 = vld [vmem:[#allocation5 + $0xb0] sm:$0xff]  ;;  %v58_v14 = vadd.s32 8, %v7138_v46  ;;  %p7039_p13 = por %p7038_p12, %p7037_p11 }
  0x3c   :  { %5971 = vmatpush3.bf16.msra.mxu1 %v5968_v12  ;;  %v186_v24 = vld [vmem:[#allocation5 + $0xb8] sm:$0xff]  ;;  %v199_v25 = vld [vmem:[#allocation5 + $0x120] sm:$0xff]  ;;  %v200_v26 = vld [vmem:[#allocation5 + $0x128] sm:$0xff]  ;;  %v5946_v28 = vpack.c.bf16 %v168_v22, %v167_v21  ;;  %v65_v21 = vand.u32 15, %v7138_v46 }
  0x3d   :  { %5973 = vmatprep.subr.bf16.mxu1 %v5972_v20  ;;  %v5976_v27 = vpack.c.bf16 %v200_v26, %v199_v25  ;;  %v201_v29 = vld [vmem:[#allocation5 + $0x130] sm:$0xff]  ;;  %v202_v30 = vld [vmem:[#allocation5 + $0x138] sm:$0xff]  ;;  %v5948_v31 = vpack.c.bf16 %v186_v24, %v185_v23  ;;  %v187_v34 = vld [vmem:[#allocation5 + $0xc0] sm:$0xff]  ;;  %p7040_p0 = pnand %p7039_p13, %p7033_p10 }
  0x3e   :  { %5943 = vmatpush3.bf16.msra.mxu0 %v5942_v16  ;;  %v169_v32 = vld [vmem:[#allocation5 + $0x30] sm:$0xff]  ;;  %v170_v33 = vld [vmem:[#allocation5 + $0x38] sm:$0xff]  ;;  %v188_v35 = vld [vmem:[#allocation5 + $0xc8] sm:$0xff]  ;;  %v5980_v37 = vpack.c.bf16 %v202_v30, %v201_v29  ;;  %v60_v30 = vadd.s32 24, %v7138_v46  ;;  %vm7167_vm2 = vcmp.ne.s32.totalorder %v65_v21, 0 }
  0x3f   :  { %5945 = vmatprep.subr.bf16.mxu0 %v5944_v19  ;;  %v5950_v38 = vpack.c.bf16 %v170_v33, %v169_v32  ;;  %v203_v39 = vld [vmem:[#allocation5 + $0x140] sm:$0xff]  ;;  %v204_v40 = vld [vmem:[#allocation5 + $0x148] sm:$0xff]  ;;  %v5952_v41 = vpack.c.bf16 %v188_v35, %v187_v34  ;;  %v189_v44 = vld [vmem:[#allocation5 + $0xd0] sm:$0xff]  ;;  %v59_v33 = vadd.s32 16, %v7138_v46 }
  0x40   :  { %5975 = vmatpush3.bf16.msra.mxu1 %v5972_v20  ;;  %v171_v42 = vld [vmem:[#allocation5 + $0x40] sm:$0xff]  ;;  %v172_v43 = vld [vmem:[#allocation5 + $0x48] sm:$0xff]  ;;  %v190_v45 = vld [vmem:[#allocation5 + $0xd8] sm:$0xff]  ;;  %v5984_v47 = vpack.c.bf16 %v204_v40, %v203_v39 }
  0x41   :  { %5977 = vmatprep.subr.bf16.mxu1 %v5976_v27  ;;  %v7140_v48 = vld [vmem:[#allocation2] sm:$0xff]  ;;  %v5954_v49 = vpack.c.bf16 %v172_v43, %v171_v42  ;;  %v205_v50 = vld [vmem:[#allocation5 + $0x150] sm:$0xff]  ;;  %v206_v51 = vld [vmem:[#allocation5 + $0x158] sm:$0xff]  ;;  %v5956_v54 = vpack.c.bf16 %v190_v45, %v189_v44 }
  0x42   :  { %5947 = vmatpush3.bf16.msra.mxu0 %v5946_v28  ;;  %280 = vmatprep.mubr.f32.mxu0 %v7140_v48  ;;  %v7144_v52 = vld [vmem:[#allocation2 + $0x8] sm:$0xff]  ;;  %v142_v53 = vrot.slane %v7140_v48, 1  ;;  %v173_v55 = vld [vmem:[#allocation5 + $0x50] sm:$0xff]  ;;  %v174_v56 = vld [vmem:[#allocation5 + $0x58] sm:$0xff]  ;;  %v5988_v60 = vpack.c.bf16 %v206_v51, %v205_v50  ;;  %v121_v20 = vrot.slane %v7140_v48, 7  ;;  %v72_v28 = vand.u32 15, %v58_v14 }
  0x43   :  { %5949 = vmatprep.subr.bf16.mxu0 %v5948_v31  ;;  %v143_v57 = vrot.slane %v7144_v52, 1  ;;  %v191_v58 = vld [vmem:[#allocation5 + $0xe0] sm:$0xff]  ;;  %v192_v59 = vld [vmem:[#allocation5 + $0xe8] sm:$0xff]  ;;  %v5958_v62 = vpack.c.bf16 %v174_v56, %v173_v55  ;;  %v193_v4 = vld [vmem:[#allocation5 + $0xf0] sm:$0xff]  ;;  %v79_v55 = vand.u32 15, %v59_v33 }
  0x44   :  { %5979 = vmatpush3.bf16.msra.mxu1 %v5976_v27  ;;  %v207_v63 = vld [vmem:[#allocation5 + $0x160] sm:$0xff]  ;;  %v208_v0 = vld [vmem:[#allocation5 + $0x168] sm:$0xff]  ;;  %v5960_v1 = vpack.c.bf16 %v192_v59, %v191_v58  ;;  %v194_v5 = vld [vmem:[#allocation5 + $0xf8] sm:$0xff]  ;;  %vm7176_vm3 = vcmp.ne.s32.totalorder %v72_v28, 15 }
  0x45   :  { %5981 = vmatprep.subr.bf16.mxu1 %v5980_v37  ;;  %v149_v61 = vsel %vm146_vm0, %v142_v53, %v143_v57  ;;  %v175_v2 = vld [vmem:[#allocation5 + $0x60] sm:$0xff]  ;;  %v176_v3 = vld [vmem:[#allocation5 + $0x68] sm:$0xff]  ;;  %v5992_v6 = vpack.c.bf16 %v208_v0, %v207_v63  ;;  %v209_v8 = vld [vmem:[#allocation5 + $0x170] sm:$0xff]  ;;  %v5964_v10 = vpack.c.bf16 %v194_v5, %v193_v4  ;;  %vm7203_vm5 = vcmp.ne.s32.totalorder %v79_v55, 0 }
  0x46   :  { %5951 = vmatpush3.bf16.msra.mxu0 %v5950_v38  ;;  %5360 = vmatprep.mubr.f32.mxu1 %v149_v61  ;;  %v5962_v7 = vpack.c.bf16 %v176_v3, %v175_v2  ;;  %v210_v9 = vld [vmem:[#allocation5 + $0x178] sm:$0xff]  ;;  %v177_v11 = vld [vmem:[#allocation5 + $0x70] sm:$0xff]  ;;  %v431_v15 = vld [vmem:[#allocation5 + $0xc80] sm:$0xff]  ;;  %v122_v38 = vrot.slane %v7144_v52, 7 }
  0x47   :  { %5953 = vmatprep.subr.bf16.mxu0 %v5952_v41  ;;  %v178_v12 = vld [vmem:[#allocation5 + $0x78] sm:$0xff]  ;;  %v432_v16 = vld [vmem:[#allocation5 + $0xc88] sm:$0xff]  ;;  %v5996_v17 = vpack.c.bf16 %v210_v9, %v209_v8  ;;  %v7157_v18 = vld [vmem:[#allocation2 + $0x10] sm:$0xff] }
  0x48   :  { %5983 = vmatpush3.bf16.msra.mxu1 %v5980_v37  ;;  %v7154_v13 = vld [vmem:[#allocation2 + $0x18] sm:$0xff]  ;;  %v5966_v19 = vpack.c.bf16 %v178_v12, %v177_v11  ;;  %v447_v23 = vld [vmem:[#allocation5 + $0xd00] sm:$0xff]  ;;  %v448_v24 = vld [vmem:[#allocation5 + $0xd08] sm:$0xff]  ;;  %v6000_v25 = vpack.c.bf16 %v432_v16, %v431_v15  ;;  %v144_v29 = vrot.slane %v7157_v18, 1  ;;  %v123_v56 = vrot.slane %v7157_v18, 7 }
  0x49   :  { %5985 = vmatprep.subr.bf16.mxu1 %v5984_v47  ;;  %v124_v22 = vrot.slane %v7154_v13, 7  ;;  %v415_v26 = vld [vmem:[#allocation5 + $0xc00] sm:$0xff]  ;;  %v416_v27 = vld [vmem:[#allocation5 + $0xc08] sm:$0xff]  ;;  %v433_v31 = vld [vmem:[#allocation5 + $0xc90] sm:$0xff]  ;;  %v145_v34 = vrot.slane %v7154_v13, 1  ;;  %v6032_v35 = vpack.c.bf16 %v448_v24, %v447_v23 }
  0x4a   :  { %5955 = vmatpush3.bf16.msra.mxu0 %v5954_v49  ;;  %v434_v32 = vld [vmem:[#allocation5 + $0xc98] sm:$0xff]  ;;  %v449_v39 = vld [vmem:[#allocation5 + $0xd10] sm:$0xff]  ;;  %v6002_v41 = vpack.c.bf16 %v416_v27, %v415_v26  ;;  %v86_v49 = vand.u32 15, %v60_v30  ;;  %v451_v58 = vld [vmem:[#allocation5 + $0xd20] sm:$0xff]  ;;  %v127_v0 = vsel %vm125_vm1, %v122_v38, %v123_v56 }
  0x4b   :  { %5957 = vmatprep.subr.bf16.mxu0 %v5956_v54  ;;  %v129_v37 = vsel %vm125_vm1, %v124_v22, %v121_v20  ;;  %v450_v40 = vld [vmem:[#allocation5 + $0xd18] sm:$0xff]  ;;  %v6004_v42 = vpack.c.bf16 %v434_v32, %v433_v31  ;;  %v417_v43 = vld [vmem:[#allocation5 + $0xc10] sm:$0xff]  ;;  %v147_v50 = vsel %vm146_vm0, %v144_v29, %v145_v34  ;;  %v128_v54 = vsel %vm125_vm1, %v121_v20, %v122_v38  ;;  %v436_v2 = vld [vmem:[#allocation5 + $0xca8] sm:$0xff] }
  0x4c   :  { %5987 = vmatpush3.bf16.msra.mxu1 %v5984_v47  ;;  %v418_v44 = vld [vmem:[#allocation5 + $0xc18] sm:$0xff]  ;;  %v148_v47 = vsel %vm146_vm0, %v143_v57, %v144_v29  ;;  %v6036_v51 = vpack.c.bf16 %v450_v40, %v449_v39  ;;  %v452_v57 = vld [vmem:[#allocation5 + $0xd28] sm:$0xff]  ;;  %vm7194_vm4 = vcmp.ne.s32.totalorder %v86_v49, 15  ;;  %v150_v61 = vsel %vm146_vm0, %v145_v34, %v142_v53  ;;  %v453_v3 = vld [vmem:[#allocation5 + $0xd30] sm:$0xff] }
  0x4d   :  { %5989 = vmatprep.subr.bf16.mxu1 %v5988_v60  ;;  %v6006_v59 = vpack.c.bf16 %v418_v44, %v417_v43  ;;  %v126_v53 = vsel %vm125_vm1, %v123_v56, %v124_v22  ;;  %v454_v5 = vld [vmem:[#allocation5 + $0xd38] sm:$0xff]  ;;  %v455_v12 = vld [vmem:[#allocation5 + $0xd40] sm:$0xff]  ;;  %v456_v15 = vld [vmem:[#allocation5 + $0xd48] sm:$0xff] }
  0x4e   :  { %5959 = vmatpush3.bf16.msra.mxu0 %v5958_v62  ;;  %v6040_v62 = vpack.c.bf16 %v452_v57, %v451_v58  ;;  %v6044_v8 = vpack.c.bf16 %v454_v5, %v453_v3  ;;  %v438_v11 = vld [vmem:[#allocation5 + $0xcb8] sm:$0xff]  ;;  %v421_v16 = vld [vmem:[#allocation5 + $0xc30] sm:$0xff]  ;;  %v439_v21 = vld [vmem:[#allocation5 + $0xcc0] sm:$0xff] }
  0x4f   :  { %5961 = vmatprep.subr.bf16.mxu0 %v5960_v1  ;;  %v435_v1 = vld [vmem:[#allocation5 + $0xca0] sm:$0xff]  ;;  %v440_v22 = vld [vmem:[#allocation5 + $0xcc8] sm:$0xff]  ;;  %v457_v23 = vld [vmem:[#allocation5 + $0xd50] sm:$0xff] }
  0x50   :  { %5991 = vmatpush3.bf16.msra.mxu1 %v5988_v60  ;;  %v6008_v4 = vpack.c.bf16 %v436_v2, %v435_v1  ;;  %v6016_v24 = vpack.c.bf16 %v440_v22, %v439_v21  ;;  %v423_v26 = vld [vmem:[#allocation5 + $0xc40] sm:$0xff]  ;;  %v424_v27 = vld [vmem:[#allocation5 + $0xc48] sm:$0xff]  ;;  %v441_v30 = vld [vmem:[#allocation5 + $0xcd0] sm:$0xff] }
  0x51   :  { %5993 = vmatprep.subr.bf16.mxu1 %v5992_v6  ;;  %v6018_v29 = vpack.c.bf16 %v424_v27, %v423_v26  ;;  %v442_v31 = vld [vmem:[#allocation5 + $0xcd8] sm:$0xff]  ;;  %v459_v32 = vld [vmem:[#allocation5 + $0xd60] sm:$0xff]  ;;  %v460_v34 = vld [vmem:[#allocation5 + $0xd68] sm:$0xff] }
  0x52   :  { %5963 = vmatpush3.bf16.msra.mxu0 %v5962_v7  ;;  %v420_v7 = vld [vmem:[#allocation5 + $0xc28] sm:$0xff]  ;;  %v6020_v33 = vpack.c.bf16 %v442_v31, %v441_v30  ;;  %v6056_v38 = vpack.c.bf16 %v460_v34, %v459_v32  ;;  %v443_v40 = vld [vmem:[#allocation5 + $0xce0] sm:$0xff]  ;;  %v462_v44 = vld [vmem:[#allocation5 + $0xd78] sm:$0xff] }
  0x53   :  { %5965 = vmatprep.subr.bf16.mxu0 %v5964_v10  ;;  %v437_v10 = vld [vmem:[#allocation5 + $0xcb0] sm:$0xff]  ;;  %v428_v49 = vld [vmem:[#allocation5 + $0xc68] sm:$0xff]  ;;  %v446_v55 = vld [vmem:[#allocation5 + $0xcf8] sm:$0xff] }
  0x54   :  { %5995 = vmatpush3.bf16.msra.mxu1 %v5992_v6  ;;  %v419_v6 = vld [vmem:[#allocation5 + $0xc20] sm:$0xff]  ;;  %v6012_v14 = vpack.c.bf16 %v438_v11, %v437_v10  ;;  %v429_v58 = vld [vmem:[#allocation5 + $0xc70] sm:$0xff]  ;;  %v430_v57 = vld [vmem:[#allocation5 + $0xc78] sm:$0xff] }
  0x55   :  { %5997 = vmatprep.subr.bf16.mxu1 %v5996_v17  ;;  %v6010_v9 = vpack.c.bf16 %v420_v7, %v419_v6  ;;  %v688_v1 = vld [vmem:[#allocation5 + $0x208] sm:$0xff]  ;;  %v4224_v5 = vld [vmem:[#allocation7] ss:$0 sm:$0xff] }
  0x56   :  { %5967 = vmatpush3.bf16.msra.mxu0 %v5966_v19  ;;  %v422_v19 = vld [vmem:[#allocation5 + $0xc38] sm:$0xff] }
  0x57   :  { %6001 = vmatprep.subr.bf16.mxu0 %v6000_v25  ;;  %v6014_v20 = vpack.c.bf16 %v422_v19, %v421_v16  ;;  %v458_v25 = vld [vmem:[#allocation5 + $0xd58] sm:$0xff] }
  0x58   :  { %5999 = vmatpush3.bf16.msra.mxu1 %v5996_v17  ;;  %v6048_v17 = vpack.c.bf16 %v456_v15, %v455_v12  ;;  %v6052_v28 = vpack.c.bf16 %v458_v25, %v457_v23 }
  0x59   :  { %4225 = vmatmul.mubr.msk.f32.vlgmr.msra.gmra.mrb[0].mxu0 %vm7167_vm2, %v129_v37  ;;  %6033 = vmatprep.subr.bf16.mxu1 %v6032_v35  ;;  %v426_v37 = vld [vmem:[#allocation5 + $0xc58] sm:$0xff] }
  0x5a   :  { %285 = vmatprep.mubr.f32.mxu0 %v7144_v52  ;;  %6003 = vmatpush3.bf16.msra.mxu0 %v6002_v41  ;;  %v444_v41 = vld [vmem:[#allocation5 + $0xce8] sm:$0xff] }
  0x5b   :  { %5361 = vmatmul.mubr.msk.f32.vlgmr.msra.gmra.mrb[0].mxu1 %vm7176_vm3, %v148_v47  ;;  %6005 = vmatprep.subr.bf16.mxu0 %v6004_v42  ;;  %v461_v42 = vld [vmem:[#allocation5 + $0xd70] sm:$0xff]  ;;  %v6024_v43 = vpack.c.bf16 %v444_v41, %v443_v40  ;;  %v427_v47 = vld [vmem:[#allocation5 + $0xc60] sm:$0xff]  ;;  %v706_v40 = vld [vmem:[#allocation5 + $0x298] sm:$0xff] }
  0x5c   :  { %5363 = vmatprep.mubr.f32.mxu1 %v147_v50  ;;  %6035 = vmatpush3.bf16.msra.mxu1 %v6032_v35  ;;  %v425_v35 = vld [vmem:[#allocation5 + $0xc50] sm:$0xff]  ;;  %v6060_v50 = vpack.c.bf16 %v462_v44, %v461_v42 }
  0x5d   :  { %286 = vmatmul.mubr.f32.gmra.mrb[2].mxu0 %v128_v54  ;;  %6037 = vmatprep.subr.bf16.mxu1 %v6036_v51  ;;  %v6022_v39 = vpack.c.bf16 %v426_v37, %v425_v35  ;;  %v445_v54 = vld [vmem:[#allocation5 + $0xcf0] sm:$0xff] }
  0x5e   :  { %290 = vmatprep.mubr.f32.mxu0 %v7157_v18  ;;  %6007 = vmatpush3.bf16.msra.mxu0 %v6006_v59  ;;  %v6028_v56 = vpack.c.bf16 %v446_v55, %v445_v54  ;;  %v6030_v59 = vpack.c.bf16 %v430_v57, %v429_v58  ;;  %v672_v54 = vld [vmem:[#allocation5 + $0x188] sm:$0xff] }
  0x5f   :  { %5364 = vmatmul.mubr.msk.f32.gmra.mrb[2].mxu1 %vm7194_vm4, %v150_v61  ;;  %6009 = vmatprep.subr.bf16.mxu0 %v6008_v4  ;;  %v703_v61 = vld [vmem:[#allocation5 + $0x280] sm:$0xff] }
  0x60   :  { %6039 = vmatpush3.bf16.msra.mxu1 %v6036_v51  ;;  %v6026_v51 = vpack.c.bf16 %v428_v49, %v427_v47 }
  0x61   :  { %4226 = vmatmul.mubr.msk.f32.gmra.mrb[4].mxu0 %vm7203_vm5, %v127_v0  ;;  %6041 = vmatprep.subr.bf16.mxu1 %v6040_v62  ;;  %v687_v0 = vld [vmem:[#allocation5 + $0x200] sm:$0xff] }
  0x62   :  { %295 = vmatprep.mubr.f32.mxu0 %v7154_v13  ;;  %6011 = vmatpush3.bf16.msra.mxu0 %v6010_v9  ;;  %v6064_v2 = vpack.c.bf16 %v688_v1, %v687_v0  ;;  %v689_v0 = vld [vmem:[#allocation5 + $0x210] sm:$0xff]  ;;  %v707_v1 = vld [vmem:[#allocation5 + $0x2a0] sm:$0xff] }
  0x63   :  { %6013 = vmatprep.subr.bf16.mxu0 %v6012_v14 }
  0x64   :  { %6043 = vmatpush3.bf16.msra.mxu1 %v6040_v62  ;;  %v704_v62 = vld [vmem:[#allocation5 + $0x288] sm:$0xff] }
  0x65   :  { %296 = vmatmul.mubr.f32.gmra.mrb[6].mxu0 %v126_v53  ;;  %6045 = vmatprep.subr.bf16.mxu1 %v6044_v8  ;;  %v6096_v53 = vpack.c.bf16 %v704_v62, %v703_v61 }
  0x66   :  { %6015 = vmatpush3.bf16.msra.mxu0 %v6014_v20 }
  0x67   :  { %6017 = vmatprep.subr.bf16.mxu0 %v6016_v24 }
  0x68   :  { %6047 = vmatpush3.bf16.msra.mxu1 %v6044_v8 }
  0x69   :  { %6049 = vmatprep.subr.bf16.mxu1 %v6048_v17 }
  0x6a   :  { %6019 = vmatpush3.bf16.msra.mxu0 %v6018_v29 }
  0x6b   :  { %6021 = vmatprep.subr.bf16.mxu0 %v6020_v33 }
  0x6c   :  { %6051 = vmatpush3.bf16.msra.mxu1 %v6048_v17 }
  0x6d   :  { %6053 = vmatprep.subr.bf16.mxu1 %v6052_v28 }
  0x6e   :  { %6023 = vmatpush3.bf16.msra.mxu0 %v6022_v39  ;;  %v705_v39 = vld [vmem:[#allocation5 + $0x290] sm:$0xff] }
  0x6f   :  { %6025 = vmatprep.subr.bf16.mxu0 %v6024_v43  ;;  %v6100_v44 = vpack.c.bf16 %v706_v40, %v705_v39  ;;  %v698_v39 = vld [vmem:[#allocation5 + $0x258] sm:$0xff]  ;;  %v715_v40 = vld [vmem:[#allocation5 + $0x2e0] sm:$0xff] }
  0x70   :  { %6055 = vmatpush3.bf16.msra.mxu1 %v6052_v28 }
  0x71   :  { %6057 = vmatprep.subr.bf16.mxu1 %v6056_v38 }
  0x72   :  { %6027 = vmatpush3.bf16.msra.mxu0 %v6026_v51  ;;  %v671_v51 = vld [vmem:[#allocation5 + $0x180] sm:$0xff] }
  0x73   :  { %6029 = vmatprep.subr.bf16.mxu0 %v6028_v56  ;;  %v6066_v58 = vpack.c.bf16 %v672_v54, %v671_v51  ;;  %v700_v51 = vld [vmem:[#allocation5 + $0x268] sm:$0xff]  ;;  %v717_v54 = vld [vmem:[#allocation5 + $0x2f0] sm:$0xff] }
  0x74   :  { %6059 = vmatpush3.bf16.msra.mxu1 %v6056_v38 }
  0x75   :  { %6061 = vmatprep.subr.bf16.mxu1 %v6060_v50 }
  0x76   :  { %6031 = vmatpush3.bf16.msra.mxu0 %v6030_v59 }
  0x77   :  { %6065 = vmatprep.subr.bf16.mxu0 %v6064_v2 }
  0x78   :  { %6063 = vmatpush3.bf16.msra.mxu1 %v6060_v50 }
  0x79   :  { %6097 = vmatprep.subr.bf16.mxu1 %v6096_v53 }
 0x12c   :  { %v4336_v3 = vpop.f32.mrb[0].mxu0 }
 0x12d   :  { %v4337_v4 = vpop.f32.mrb[1].mxu0 }
 0x12e   :  { %v4338_v6 = vadd.f32 %v4337_v4, %v4336_v3  ;;  %v5362_v7 = vpop.f32.mrb[0].mxu1  ;;  %v708_v3 = vld [vmem:[#allocation5 + $0x2a8] sm:$0xff]  ;;  %v673_v4 = vld [vmem:[#allocation5 + $0x190] sm:$0xff] }
 0x12f   :  { %v367_v8 = vpop.f32.mrb[1].mxu1 }
 0x130   :  { %v4339_v9 = vpop.f32.mrb[2].mxu0  ;;  %v283_v10 = vadd.f32 %v4338_v6, %v4224_v5  ;;  %v6104_v6 = vpack.c.bf16 %v708_v3, %v707_v1  ;;  %v685_v1 = vld [vmem:[#allocation5 + $0x1f0] sm:$0xff] }
 0x131   :  { %v4340_v11 = vpop.f32.mrb[3].mxu0 }
 0x132   :  { %v4341_v12 = vadd.f32 %v4340_v11, %v4339_v9  ;;  %v368_v14 = vadd.f32 %v367_v8, %v283_v10  ;;  %v5365_v15 = vpop.f32.mrb[2].mxu1  ;;  %v691_v8 = vld [vmem:[#allocation5 + $0x220] sm:$0xff]  ;;  %v692_v9 = vld [vmem:[#allocation5 + $0x228] sm:$0xff]  ;;  %v709_v10 = vld [vmem:[#allocation5 + $0x2b0] sm:$0xff] }
 0x133   :  { %v377_v16 = vpop.f32.mrb[3].mxu1  ;;  %v6072_v11 = vpack.c.bf16 %v692_v9, %v691_v8  ;;  %v940_v8 = vld [vmem:[#allocation5 + $0xe08] sm:$0xff] }
 0x134   :  { %v288_v17 = vadd.f32 %v4341_v12, %v4224_v5  ;;  %v386_v19 = vmax.f32 %v368_v14, 0.0  ;;  %v4342_v20 = vpop.f32.mrb[4].mxu0  ;;  %v710_v12 = vld [vmem:[#allocation5 + $0x2b8] sm:$0xff]  ;;  %v675_v14 = vld [vmem:[#allocation5 + $0x1a0] sm:$0xff] }
 0x135   :  { %v4343_v21 = vpop.f32.mrb[5].mxu0 }
 0x136   :  { %v373_v22 = vadd.f32 %v5362_v7, %v288_v17  ;;  %v4344_v23 = vadd.f32 %v4343_v21, %v4342_v20  ;;  %527 = vmatprep.mubr.f32.mxu0 %v386_v19  ;;  %v390_v27 = vrot.slane %v386_v19, 7  ;;  %v402_v28 = vrot.slane %v386_v19, 1  ;;  %v693_v19 = vld [vmem:[#allocation5 + $0x230] sm:$0xff]  ;;  %v694_v20 = vld [vmem:[#allocation5 + $0x238] sm:$0xff]  ;;  %v711_v21 = vld [vmem:[#allocation5 + $0x2c0] sm:$0xff] }
 0x138   :  { %v387_v24 = vmax.f32 %v373_v22, 0.0  ;;  %v4345_v25 = vpop.f32.mrb[6].mxu0  ;;  %v293_v26 = vadd.f32 %v4344_v23, %v4224_v5  ;;  %v6076_v22 = vpack.c.bf16 %v694_v20, %v693_v19  ;;  %v712_v23 = vld [vmem:[#allocation5 + $0x2c8] sm:$0xff] }
 0x139   :  { %v4346_v29 = vpop.f32.mrb[7].mxu0 }
 0x13a   :  { %v4347_v30 = vadd.f32 %v4346_v29, %v4345_v25  ;;  %v378_v31 = vadd.f32 %v377_v16, %v293_v26  ;;  %v403_v32 = vrot.slane %v387_v24, 1  ;;  %v391_v33 = vrot.slane %v387_v24, 7  ;;  %v678_v25 = vld [vmem:[#allocation5 + $0x1b8] sm:$0xff]  ;;  %v696_v29 = vld [vmem:[#allocation5 + $0x248] sm:$0xff] }
 0x13b   :  { %v6108_v16 = vpack.c.bf16 %v710_v12, %v709_v10  ;;  %v6112_v26 = vpack.c.bf16 %v712_v23, %v711_v21  ;;  %v4233_v21 = vld [vmem:[#allocation7 + $0x8] ss:$0 sm:$0xff] }
 0x13c   :  { %v298_v34 = vadd.f32 %v4347_v30, %v4224_v5  ;;  %v388_v35 = vmax.f32 %v378_v31, 0.0  ;;  %v408_v37 = vsel %vm146_vm0, %v402_v28, %v403_v32  ;;  %v396_v38 = vsel %vm125_vm1, %v390_v27, %v391_v33  ;;  %v674_v5 = vld [vmem:[#allocation5 + $0x198] sm:$0xff]  ;;  %v713_v31 = vld [vmem:[#allocation5 + $0x2d0] sm:$0xff] }
 0x13d   :  { %5398 = vmatprep.mubr.f32.mxu1 %v408_v37  ;;  %v6070_v7 = vpack.c.bf16 %v674_v5, %v673_v4  ;;  %v955_v4 = vld [vmem:[#allocation5 + $0xe80] sm:$0xff]  ;;  %v956_v5 = vld [vmem:[#allocation5 + $0xe88] sm:$0xff] }
 0x13e   :  { %v383_v41 = vadd.f32 %v5365_v15, %v298_v34  ;;  %v392_v42 = vrot.slane %v388_v35, 7  ;;  %v404_v43 = vrot.slane %v388_v35, 1  ;;  %v676_v15 = vld [vmem:[#allocation5 + $0x1a8] sm:$0xff] }
 0x13f   :  { %v6074_v17 = vpack.c.bf16 %v676_v15, %v675_v14 }
 0x140   :  { %v389_v47 = vmax.f32 %v383_v41, 0.0  ;;  %v407_v49 = vsel %vm146_vm0, %v403_v32, %v404_v43  ;;  %v395_v50 = vsel %vm125_vm1, %v391_v33, %v392_v42  ;;  %v714_v32 = vld [vmem:[#allocation5 + $0x2d8] sm:$0xff]  ;;  %v679_v33 = vld [vmem:[#allocation5 + $0x1c0] sm:$0xff] }
 0x141   :  { %5399 = vmatmul.mubr.msk.f32.vlgmr.msra.gmra.mrb[4].mxu1 %vm7176_vm3, %v407_v49  ;;  %v6116_v34 = vpack.c.bf16 %v714_v32, %v713_v31 }
 0x142   :  { %v393_v55 = vrot.slane %v389_v47, 7  ;;  %v405_v56 = vrot.slane %v389_v47, 1  ;;  %6099 = vmatpush3.bf16.msra.mxu1 %v6096_v53  ;;  %v690_v53 = vld [vmem:[#allocation5 + $0x218] sm:$0xff] }
 0x143   :  { %6101 = vmatprep.subr.bf16.mxu1 %v6100_v44  ;;  %v6068_v2 = vpack.c.bf16 %v690_v53, %v689_v0  ;;  %v702_v0 = vld [vmem:[#allocation5 + $0x278] sm:$0xff] }
 0x144   :  { %v397_v57 = vsel %vm125_vm1, %v393_v55, %v390_v27  ;;  %v406_v59 = vsel %vm146_vm0, %v404_v43, %v405_v56  ;;  %v409_v61 = vsel %vm146_vm0, %v405_v56, %v402_v28  ;;  %v394_v62 = vsel %vm125_vm1, %v392_v42, %v393_v55  ;;  %v695_v28 = vld [vmem:[#allocation5 + $0x240] sm:$0xff]  ;;  %v716_v42 = vld [vmem:[#allocation5 + $0x2e8] sm:$0xff]  ;;  %v681_v43 = vld [vmem:[#allocation5 + $0x1d0] sm:$0xff] }
 0x145   :  { %4229 = vmatmul.mubr.msk.f32.vlgmr.msra.gmra.mrb[8].mxu0 %vm7167_vm2, %v397_v57  ;;  %5401 = vmatprep.mubr.f32.mxu1 %v406_v59  ;;  %v6080_v30 = vpack.c.bf16 %v696_v29, %v695_v28  ;;  %v718_v56 = vld [vmem:[#allocation5 + $0x2f8] sm:$0xff]  ;;  %v684_v57 = vld [vmem:[#allocation5 + $0x1e8] sm:$0xff] }
 0x146   :  { %532 = vmatprep.mubr.f32.mxu0 %v387_v24  ;;  %5402 = vmatmul.mubr.msk.f32.gmra.mrb[6].mxu1 %vm7194_vm4, %v409_v61  ;;  %v677_v24 = vld [vmem:[#allocation5 + $0x1b0] sm:$0xff]  ;;  %v6124_v59 = vpack.c.bf16 %v718_v56, %v717_v54 }
 0x147   :  { %6067 = vmatpush3.bf16.msra.mxu0 %v6066_v58  ;;  %6103 = vmatpush3.bf16.msra.mxu1 %v6100_v44  ;;  %v6078_v27 = vpack.c.bf16 %v678_v25, %v677_v24  ;;  %v682_v44 = vld [vmem:[#allocation5 + $0x1d8] sm:$0xff]  ;;  %v683_v58 = vld [vmem:[#allocation5 + $0x1e0] sm:$0xff] }
 0x148   :  { %6069 = vmatprep.subr.bf16.mxu0 %v6068_v2  ;;  %6105 = vmatprep.subr.bf16.mxu1 %v6104_v6  ;;  %v6086_v49 = vpack.c.bf16 %v682_v44, %v681_v43  ;;  %v6090_v61 = vpack.c.bf16 %v684_v57, %v683_v58  ;;  %v686_v2 = vld [vmem:[#allocation5 + $0x1f8] sm:$0xff] }
 0x149   :  { %533 = vmatmul.mubr.f32.gmra.mrb[10].mxu0 %v396_v38  ;;  %v697_v38 = vld [vmem:[#allocation5 + $0x250] sm:$0xff]  ;;  %v6094_v3 = vpack.c.bf16 %v686_v2, %v685_v1 }
 0x14a   :  { %537 = vmatprep.mubr.f32.mxu0 %v388_v35  ;;  %v680_v35 = vld [vmem:[#allocation5 + $0x1c8] sm:$0xff]  ;;  %v6084_v41 = vpack.c.bf16 %v698_v39, %v697_v38  ;;  %v941_v2 = vld [vmem:[#allocation5 + $0xe10] sm:$0xff] }
 0x14b   :  { %6071 = vmatpush3.bf16.msra.mxu0 %v6070_v7  ;;  %6107 = vmatpush3.bf16.msra.mxu1 %v6104_v6  ;;  %v6082_v37 = vpack.c.bf16 %v680_v35, %v679_v33  ;;  %v939_v6 = vld [vmem:[#allocation5 + $0xe00] sm:$0xff]  ;;  %v6160_v7 = vpack.c.bf16 %v956_v5, %v955_v4 }
 0x14c   :  { %6073 = vmatprep.subr.bf16.mxu0 %v6072_v11  ;;  %6109 = vmatprep.subr.bf16.mxu1 %v6108_v16  ;;  %v6128_v9 = vpack.c.bf16 %v940_v8, %v939_v6  ;;  %v959_v4 = vld [vmem:[#allocation5 + $0xea0] sm:$0xff]  ;;  %v960_v6 = vld [vmem:[#allocation5 + $0xea8] sm:$0xff]  ;;  %v926_v8 = vld [vmem:[#allocation5 + $0xd98] sm:$0xff] }
 0x14d   :  { %4230 = vmatmul.mubr.msk.f32.gmra.mrb[12].mxu0 %vm7203_vm5, %v395_v50  ;;  %v699_v50 = vld [vmem:[#allocation5 + $0x260] sm:$0xff] }
 0x14e   :  { %542 = vmatprep.mubr.f32.mxu0 %v389_v47  ;;  %v6120_v47 = vpack.c.bf16 %v716_v42, %v715_v40  ;;  %v6088_v55 = vpack.c.bf16 %v700_v51, %v699_v50  ;;  %v958_v42 = vld [vmem:[#allocation5 + $0xe98] sm:$0xff]  ;;  %v923_v50 = vld [vmem:[#allocation5 + $0xd80] sm:$0xff]  ;;  %v924_v51 = vld [vmem:[#allocation5 + $0xd88] sm:$0xff] }
 0x14f   :  { %6075 = vmatpush3.bf16.msra.mxu0 %v6074_v17  ;;  %6111 = vmatpush3.bf16.msra.mxu1 %v6108_v16 }
 0x150   :  { %6077 = vmatprep.subr.bf16.mxu0 %v6076_v22  ;;  %6113 = vmatprep.subr.bf16.mxu1 %v6112_v26 }
 0x151   :  { %543 = vmatmul.mubr.f32.gmra.mrb[14].mxu0 %v394_v62  ;;  %v701_v62 = vld [vmem:[#allocation5 + $0x270] sm:$0xff] }
 0x152   :  { %v6092_v53 = vpack.c.bf16 %v702_v0, %v701_v62 }
 0x153   :  { %6079 = vmatpush3.bf16.msra.mxu0 %v6078_v27  ;;  %6115 = vmatpush3.bf16.msra.mxu1 %v6112_v26 }
 0x154   :  { %6081 = vmatprep.subr.bf16.mxu0 %v6080_v30  ;;  %6117 = vmatprep.subr.bf16.mxu1 %v6116_v34 }
 0x157   :  { %6083 = vmatpush3.bf16.msra.mxu0 %v6082_v37  ;;  %6119 = vmatpush3.bf16.msra.mxu1 %v6116_v34 }
 0x158   :  { %6085 = vmatprep.subr.bf16.mxu0 %v6084_v41  ;;  %6121 = vmatprep.subr.bf16.mxu1 %v6120_v47  ;;  %v957_v41 = vld [vmem:[#allocation5 + $0xe90] sm:$0xff] }
 0x15b   :  { %6087 = vmatpush3.bf16.msra.mxu0 %v6086_v49  ;;  %6123 = vmatpush3.bf16.msra.mxu1 %v6120_v47  ;;  %v6164_v47 = vpack.c.bf16 %v958_v42, %v957_v41  ;;  %v949_v42 = vld [vmem:[#allocation5 + $0xe50] sm:$0xff] }
 0x15c   :  { %6089 = vmatprep.subr.bf16.mxu0 %v6088_v55  ;;  %6125 = vmatprep.subr.bf16.mxu1 %v6124_v59 }
 0x15f   :  { %6091 = vmatpush3.bf16.msra.mxu0 %v6090_v61  ;;  %6127 = vmatpush3.bf16.msra.mxu1 %v6124_v59 }
 0x160   :  { %6093 = vmatprep.subr.bf16.mxu0 %v6092_v53  ;;  %6161 = vmatprep.subr.bf16.mxu1 %v6160_v7 }
 0x163   :  { %6095 = vmatpush3.bf16.msra.mxu0 %v6094_v3  ;;  %v942_v3 = vld [vmem:[#allocation5 + $0xe18] sm:$0xff] }
 0x164   :  { %6129 = vmatprep.subr.bf16.mxu0 %v6128_v9  ;;  %v6132_v5 = vpack.c.bf16 %v942_v3, %v941_v2  ;;  %v6168_v9 = vpack.c.bf16 %v960_v6, %v959_v4  ;;  %v954_v2 = vld [vmem:[#allocation5 + $0xe78] sm:$0xff]  ;;  %v937_v4 = vld [vmem:[#allocation5 + $0xdf0] sm:$0xff] }
 0x214   :  { %v5400_v10 = vpop.f32.mrb[4].mxu1 }
 0x215   :  { %v614_v11 = vpop.f32.mrb[5].mxu1 }
 0x218   :  { %v4400_v12 = vpop.f32.mrb[8].mxu0 }
 0x219   :  { %v4401_v14 = vpop.f32.mrb[9].mxu0  ;;  %v5403_v15 = vpop.f32.mrb[6].mxu1 }
 0x21a   :  { %v4402_v16 = vadd.f32 %v4401_v14, %v4400_v12  ;;  %v624_v17 = vpop.f32.mrb[7].mxu1  ;;  %v944_v12 = vld [vmem:[#allocation5 + $0xe28] sm:$0xff]  ;;  %v961_v14 = vld [vmem:[#allocation5 + $0xeb0] sm:$0xff] }
 0x21c   :  { %v615_v19 = vadd.f32 %v4402_v16, %v614_v11  ;;  %v4403_v20 = vpop.f32.mrb[10].mxu0  ;;  %v943_v11 = vld [vmem:[#allocation5 + $0xe20] sm:$0xff]  ;;  %v962_v16 = vld [vmem:[#allocation5 + $0xeb8] sm:$0xff] }
 0x21d   :  { %v4404_v22 = vpop.f32.mrb[11].mxu0 }
 0x21e   :  { %v633_v23 = vadd.f32 %v615_v19, %v7140_v48  ;;  %v4405_v24 = vadd.f32 %v4404_v22, %v4403_v20  ;;  %v928_v19 = vld [vmem:[#allocation5 + $0xda8] sm:$0xff]  ;;  %v6172_v20 = vpack.c.bf16 %v962_v16, %v961_v14  ;;  %v945_v22 = vld [vmem:[#allocation5 + $0xe30] sm:$0xff] }
 0x220   :  { %v7243_v25 = vadd.f32 %v4233_v21, %v633_v23  ;;  %v620_v26 = vadd.f32 %v5400_v10, %v4405_v24  ;;  %v4406_v27 = vpop.f32.mrb[12].mxu0  ;;  %v946_v23 = vld [vmem:[#allocation5 + $0xe38] sm:$0xff]  ;;  %v963_v24 = vld [vmem:[#allocation5 + $0xec0] sm:$0xff] }
 0x221   :  { %v4407_v28 = vpop.f32.mrb[13].mxu0 }
 0x222   :  { %v634_v29 = vadd.f32 %v620_v26, %v7144_v52  ;;  %v4408_v30 = vadd.f32 %v4407_v28, %v4406_v27  ;;  %788 = vmatprep.mubr.f32.mxu0 %v7243_v25  ;;  %v658_v48 = vrot.slane %v7243_v25, 1  ;;  %v646_v54 = vrot.slane %v7243_v25, 7  ;;  %v964_v27 = vld [vmem:[#allocation5 + $0xec8] sm:$0xff]  ;;  %v929_v28 = vld [vmem:[#allocation5 + $0xdb0] sm:$0xff] }
 0x223   :  { %v6140_v26 = vpack.c.bf16 %v946_v23, %v945_v22 }
 0x224   :  { %v7247_v31 = vadd.f32 %v4233_v21, %v634_v29  ;;  %v625_v32 = vadd.f32 %v4408_v30, %v624_v17  ;;  %v4409_v33 = vpop.f32.mrb[14].mxu0  ;;  %v927_v17 = vld [vmem:[#allocation5 + $0xda0] sm:$0xff]  ;;  %v930_v29 = vld [vmem:[#allocation5 + $0xdb8] sm:$0xff]  ;;  %v6176_v30 = vpack.c.bf16 %v964_v27, %v963_v24 }
 0x225   :  { %v4410_v34 = vpop.f32.mrb[15].mxu0 }
 0x226   :  { %v635_v35 = vadd.f32 %v625_v32, %v7157_v18  ;;  %v4411_v37 = vadd.f32 %v4410_v34, %v4409_v33  ;;  %v659_v38 = vrot.slane %v7247_v31, 1  ;;  %v647_v61 = vrot.slane %v7247_v31, 7  ;;  %v947_v33 = vld [vmem:[#allocation5 + $0xe40] sm:$0xff]  ;;  %v948_v34 = vld [vmem:[#allocation5 + $0xe48] sm:$0xff] }
 0x227   :  { %v6142_v32 = vpack.c.bf16 %v930_v29, %v929_v28 }
 0x228   :  { %v7252_v39 = vadd.f32 %v4233_v21, %v635_v35  ;;  %v630_v40 = vadd.f32 %v5403_v15, %v4411_v37  ;;  %v664_v52 = vsel %vm146_vm0, %v658_v48, %v659_v38  ;;  %v652_v62 = vsel %vm125_vm1, %v646_v54, %v647_v61  ;;  %v965_v35 = vld [vmem:[#allocation5 + $0xed0] sm:$0xff] }
 0x229   :  { %5436 = vmatprep.mubr.f32.mxu1 %v664_v52  ;;  %v6136_v15 = vpack.c.bf16 %v944_v12, %v943_v11  ;;  %v6144_v37 = vpack.c.bf16 %v948_v34, %v947_v33  ;;  %v1196_v11 = vld [vmem:[#allocation5 + $0x388] sm:$0xff] }
 0x22a   :  { %v636_v43 = vadd.f32 %v630_v40, %v7154_v13  ;;  %v660_v44 = vrot.slane %v7252_v39, 1  ;;  %v6130_v13 = vpack.c.bf16 %v924_v51, %v923_v50  ;;  %v648_v0 = vrot.slane %v7252_v39, 7  ;;  %v932_v40 = vld [vmem:[#allocation5 + $0xdc8] sm:$0xff]  ;;  %v933_v50 = vld [vmem:[#allocation5 + $0xdd0] sm:$0xff]  ;;  %v934_v51 = vld [vmem:[#allocation5 + $0xdd8] sm:$0xff] }
 0x22c   :  { %v7258_v18 = vadd.f32 %v4233_v21, %v636_v43  ;;  %v663_v49 = vsel %vm146_vm0, %v659_v38, %v660_v44  ;;  %v651_v53 = vsel %vm125_vm1, %v647_v61, %v648_v0  ;;  %v6138_v21 = vpack.c.bf16 %v928_v19, %v927_v17  ;;  %v931_v38 = vld [vmem:[#allocation5 + $0xdc0] sm:$0xff]  ;;  %v950_v43 = vld [vmem:[#allocation5 + $0xe58] sm:$0xff] }
 0x22d   :  { %5437 = vmatmul.mubr.msk.f32.vlgmr.msra.gmra.mrb[8].mxu1 %vm7176_vm3, %v663_v49  ;;  %v6146_v41 = vpack.c.bf16 %v932_v40, %v931_v38  ;;  %v968_v49 = vld [vmem:[#allocation5 + $0xee8] sm:$0xff]  ;;  %v935_v61 = vld [vmem:[#allocation5 + $0xde0] sm:$0xff] }
 0x22e   :  { %v649_v55 = vrot.slane %v7258_v18, 7  ;;  %v661_v56 = vrot.slane %v7258_v18, 1  ;;  %6163 = vmatpush3.bf16.msra.mxu1 %v6160_v7  ;;  %v925_v7 = vld [vmem:[#allocation5 + $0xd90] sm:$0xff]  ;;  %v4234_v17 = vld [vmem:[#allocation7 + $0x1] ss:$0 sm:$0xff] }
 0x22f   :  { %6165 = vmatprep.subr.bf16.mxu1 %v6164_v47  ;;  %v6134_v10 = vpack.c.bf16 %v926_v8, %v925_v7  ;;  %v1211_v7 = vld [vmem:[#allocation5 + $0x400] sm:$0xff]  ;;  %v1212_v8 = vld [vmem:[#allocation5 + $0x408] sm:$0xff] }
 0x230   :  { %v653_v58 = vsel %vm125_vm1, %v649_v55, %v646_v54  ;;  %v662_v57 = vsel %vm146_vm0, %v660_v44, %v661_v56  ;;  %v665_v59 = vsel %vm146_vm0, %v661_v56, %v658_v48  ;;  %v650_v1 = vsel %vm125_vm1, %v648_v0, %v649_v55  ;;  %v966_v48 = vld [vmem:[#allocation5 + $0xed8] sm:$0xff]  ;;  %v967_v44 = vld [vmem:[#allocation5 + $0xee0] sm:$0xff] }
 0x231   :  { %4235 = vmatmul.mubr.msk.f32.vlgmr.msra.gmra.mrb[16].mxu0 %vm7167_vm2, %v653_v58  ;;  %5439 = vmatprep.mubr.f32.mxu1 %v662_v57  ;;  %v6180_v52 = vpack.c.bf16 %v966_v48, %v965_v35  ;;  %v6184_v54 = vpack.c.bf16 %v968_v49, %v967_v44  ;;  %v6150_v55 = vpack.c.bf16 %v934_v51, %v933_v50  ;;  %v951_v56 = vld [vmem:[#allocation5 + $0xe60] sm:$0xff]  ;;  %v969_v58 = vld [vmem:[#allocation5 + $0xef0] sm:$0xff] }
 0x232   :  { %793 = vmatprep.mubr.f32.mxu0 %v7247_v31  ;;  %5440 = vmatmul.mubr.msk.f32.gmra.mrb[10].mxu1 %vm7194_vm4, %v665_v59  ;;  %v970_v59 = vld [vmem:[#allocation5 + $0xef8] sm:$0xff] }
 0x233   :  { %6131 = vmatpush3.bf16.msra.mxu0 %v6130_v13  ;;  %6167 = vmatpush3.bf16.msra.mxu1 %v6164_v47  ;;  %v6148_v47 = vpack.c.bf16 %v950_v43, %v949_v42  ;;  %v952_v13 = vld [vmem:[#allocation5 + $0xe68] sm:$0xff]  ;;  %v6188_v0 = vpack.c.bf16 %v970_v59, %v969_v58 }
 0x234   :  { %6133 = vmatprep.subr.bf16.mxu0 %v6132_v5  ;;  %6169 = vmatprep.subr.bf16.mxu1 %v6168_v9  ;;  %v6152_v57 = vpack.c.bf16 %v952_v13, %v951_v56  ;;  %v938_v5 = vld [vmem:[#allocation5 + $0xdf8] sm:$0xff] }
 0x235   :  { %794 = vmatmul.mubr.f32.gmra.mrb[18].mxu0 %v652_v62  ;;  %v936_v62 = vld [vmem:[#allocation5 + $0xde8] sm:$0xff]  ;;  %v6158_v6 = vpack.c.bf16 %v938_v5, %v937_v4  ;;  %v1214_v56 = vld [vmem:[#allocation5 + $0x418] sm:$0xff] }
 0x236   :  { %798 = vmatprep.mubr.f32.mxu0 %v7252_v39 }
 0x237   :  { %6135 = vmatpush3.bf16.msra.mxu0 %v6134_v10  ;;  %6171 = vmatpush3.bf16.msra.mxu1 %v6168_v9  ;;  %v1195_v9 = vld [vmem:[#allocation5 + $0x380] sm:$0xff]  ;;  %v6224_v10 = vpack.c.bf16 %v1212_v8, %v1211_v7 }
 0x238   :  { %6137 = vmatprep.subr.bf16.mxu0 %v6136_v15  ;;  %6173 = vmatprep.subr.bf16.mxu1 %v6172_v20  ;;  %v6192_v12 = vpack.c.bf16 %v1196_v11, %v1195_v9  ;;  %v1197_v9 = vld [vmem:[#allocation5 + $0x390] sm:$0xff]  ;;  %v1215_v11 = vld [vmem:[#allocation5 + $0x420] sm:$0xff] }
 0x239   :  { %4236 = vmatmul.mubr.msk.f32.gmra.mrb[20].mxu0 %vm7203_vm5, %v651_v53  ;;  %v6154_v53 = vpack.c.bf16 %v936_v62, %v935_v61 }
 0x23a   :  { %803 = vmatprep.mubr.f32.mxu0 %v7258_v18 }
 0x23b   :  { %6139 = vmatpush3.bf16.msra.mxu0 %v6138_v21  ;;  %6175 = vmatpush3.bf16.msra.mxu1 %v6172_v20 }
 0x23c   :  { %6141 = vmatprep.subr.bf16.mxu0 %v6140_v26  ;;  %6177 = vmatprep.subr.bf16.mxu1 %v6176_v30 }
 0x23d   :  { %804 = vmatmul.mubr.f32.gmra.mrb[22].mxu0 %v650_v1  ;;  %v953_v1 = vld [vmem:[#allocation5 + $0xe70] sm:$0xff] }
 0x23e   :  { %v6156_v3 = vpack.c.bf16 %v954_v2, %v953_v1  ;;  %v1180_v1 = vld [vmem:[#allocation5 + $0x308] sm:$0xff] }
 0x23f   :  { %6143 = vmatpush3.bf16.msra.mxu0 %v6142_v32  ;;  %6179 = vmatpush3.bf16.msra.mxu1 %v6176_v30 }
 0x240   :  { %6145 = vmatprep.subr.bf16.mxu0 %v6144_v37  ;;  %6181 = vmatprep.subr.bf16.mxu1 %v6180_v52 }
 0x243   :  { %6147 = vmatpush3.bf16.msra.mxu0 %v6146_v41  ;;  %6183 = vmatpush3.bf16.msra.mxu1 %v6180_v52 }
 0x244   :  { %6149 = vmatprep.subr.bf16.mxu0 %v6148_v47  ;;  %6185 = vmatprep.subr.bf16.mxu1 %v6184_v54 }
 0x247   :  { %6151 = vmatpush3.bf16.msra.mxu0 %v6150_v55  ;;  %6187 = vmatpush3.bf16.msra.mxu1 %v6184_v54  ;;  %v1213_v55 = vld [vmem:[#allocation5 + $0x410] sm:$0xff] }
 0x248   :  { %6153 = vmatprep.subr.bf16.mxu0 %v6152_v57  ;;  %6189 = vmatprep.subr.bf16.mxu1 %v6188_v0  ;;  %v6228_v59 = vpack.c.bf16 %v1214_v56, %v1213_v55  ;;  %v1206_v55 = vld [vmem:[#allocation5 + $0x3d8] sm:$0xff]  ;;  %v1223_v56 = vld [vmem:[#allocation5 + $0x460] sm:$0xff] }
 0x24b   :  { %6155 = vmatpush3.bf16.msra.mxu0 %v6154_v53  ;;  %6191 = vmatpush3.bf16.msra.mxu1 %v6188_v0  ;;  %v1179_v53 = vld [vmem:[#allocation5 + $0x300] sm:$0xff] }
 0x24c   :  { %6157 = vmatprep.subr.bf16.mxu0 %v6156_v3  ;;  %6225 = vmatprep.subr.bf16.mxu1 %v6224_v10  ;;  %v6194_v4 = vpack.c.bf16 %v1180_v1, %v1179_v53  ;;  %v1208_v53 = vld [vmem:[#allocation5 + $0x3e8] sm:$0xff]  ;;  %v1225_v1 = vld [vmem:[#allocation5 + $0x470] sm:$0xff] }
 0x24f   :  { %6159 = vmatpush3.bf16.msra.mxu0 %v6158_v6 }
 0x250   :  { %6193 = vmatprep.subr.bf16.mxu0 %v6192_v12 }
 0x300   :  { %v5438_v14 = vpop.f32.mrb[8].mxu1 }
 0x301   :  { %v875_v15 = vpop.f32.mrb[9].mxu1 }
 0x304   :  { %v4464_v16 = vpop.f32.mrb[16].mxu0 }
 0x305   :  { %v4465_v19 = vpop.f32.mrb[17].mxu0  ;;  %v5441_v20 = vpop.f32.mrb[10].mxu1 }
 0x306   :  { %v4466_v21 = vadd.f32 %v4465_v19, %v4464_v16  ;;  %v885_v22 = vpop.f32.mrb[11].mxu1  ;;  %v1182_v16 = vld [vmem:[#allocation5 + $0x318] sm:$0xff] }
 0x308   :  { %v791_v23 = vadd.f32 %v4466_v21, %v4234_v17  ;;  %v4467_v24 = vpop.f32.mrb[18].mxu0  ;;  %v1200_v21 = vld [vmem:[#allocation5 + $0x3a8] sm:$0xff] }
 0x309   :  { %v4468_v26 = vpop.f32.mrb[19].mxu0 }
 0x30a   :  { %v4469_v27 = vadd.f32 %v4468_v26, %v4467_v24  ;;  %v876_v28 = vadd.f32 %v875_v15, %v791_v23  ;;  %v1181_v15 = vld [vmem:[#allocation5 + $0x310] sm:$0xff]  ;;  %v1218_v24 = vld [vmem:[#allocation5 + $0x438] sm:$0xff]  ;;  %v1183_v26 = vld [vmem:[#allocation5 + $0x320] sm:$0xff] }
 0x30b   :  { %v6198_v19 = vpack.c.bf16 %v1182_v16, %v1181_v15  ;;  %v1463_v15 = vld [vmem:[#allocation5 + $0x1000] sm:$0xff]  ;;  %v1464_v16 = vld [vmem:[#allocation5 + $0x1008] sm:$0xff] }
 0x30c   :  { %v796_v29 = vadd.f32 %v4469_v27, %v4234_v17  ;;  %v4470_v30 = vpop.f32.mrb[20].mxu0  ;;  %v894_v32 = vmax.f32 %v876_v28, 0.0  ;;  %v1184_v27 = vld [vmem:[#allocation5 + $0x328] sm:$0xff] }
 0x30d   :  { %v4471_v33 = vpop.f32.mrb[21].mxu0 }
 0x30e   :  { %v881_v34 = vadd.f32 %v5438_v14, %v796_v29  ;;  %v4472_v35 = vadd.f32 %v4471_v33, %v4470_v30  ;;  %1035 = vmatprep.mubr.f32.mxu0 %v894_v32  ;;  %v898_v40 = vrot.slane %v894_v32, 7  ;;  %v910_v41 = vrot.slane %v894_v32, 1  ;;  %v1216_v14 = vld [vmem:[#allocation5 + $0x428] sm:$0xff]  ;;  %v1201_v30 = vld [vmem:[#allocation5 + $0x3b0] sm:$0xff]  ;;  %v1202_v32 = vld [vmem:[#allocation5 + $0x3b8] sm:$0xff] }
 0x30f   :  { %v6202_v29 = vpack.c.bf16 %v1184_v27, %v1183_v26  ;;  %v1219_v33 = vld [vmem:[#allocation5 + $0x440] sm:$0xff] }
 0x310   :  { %v895_v37 = vmax.f32 %v881_v34, 0.0  ;;  %v801_v48 = vadd.f32 %v4472_v35, %v4234_v17  ;;  %v4473_v38 = vpop.f32.mrb[22].mxu0  ;;  %v6204_v34 = vpack.c.bf16 %v1202_v32, %v1201_v30  ;;  %v1220_v35 = vld [vmem:[#allocation5 + $0x448] sm:$0xff] }
 0x311   :  { %v4474_v52 = vpop.f32.mrb[23].mxu0 }
 0x312   :  { %v886_v42 = vadd.f32 %v885_v22, %v801_v48  ;;  %v4475_v43 = vadd.f32 %v4474_v52, %v4473_v38  ;;  %v911_v44 = vrot.slane %v895_v37, 1  ;;  %v899_v47 = vrot.slane %v895_v37, 7  ;;  %v1217_v22 = vld [vmem:[#allocation5 + $0x430] sm:$0xff]  ;;  %v1186_v48 = vld [vmem:[#allocation5 + $0x338] sm:$0xff]  ;;  %v1203_v52 = vld [vmem:[#allocation5 + $0x3c0] sm:$0xff] }
 0x313   :  { %v6236_v28 = vpack.c.bf16 %v1218_v24, %v1217_v22  ;;  %v6240_v38 = vpack.c.bf16 %v1220_v35, %v1219_v33  ;;  %v4243_v33 = vld [vmem:[#allocation7 + $0x9] ss:$0 sm:$0xff] }
 0x314   :  { %v896_v49 = vmax.f32 %v886_v42, 0.0  ;;  %v806_v50 = vadd.f32 %v4475_v43, %v4234_v17  ;;  %v916_v51 = vsel %vm146_vm0, %v910_v41, %v911_v44  ;;  %v904_v54 = vsel %vm125_vm1, %v898_v40, %v899_v47  ;;  %v1221_v43 = vld [vmem:[#allocation5 + $0x450] sm:$0xff] }
 0x315   :  { %5474 = vmatprep.mubr.f32.mxu1 %v916_v51  ;;  %v6232_v17 = vpack.c.bf16 %v1216_v14, %v1215_v11  ;;  %v1193_v11 = vld [vmem:[#allocation5 + $0x370] sm:$0xff] }
 0x316   :  { %v912_v13 = vrot.slane %v896_v49, 1  ;;  %v891_v58 = vadd.f32 %v5441_v20, %v806_v50  ;;  %v900_v57 = vrot.slane %v896_v49, 7  ;;  %v1199_v20 = vld [vmem:[#allocation5 + $0x3a0] sm:$0xff]  ;;  %v1188_v50 = vld [vmem:[#allocation5 + $0x348] sm:$0xff] }
 0x317   :  { %v6200_v23 = vpack.c.bf16 %v1200_v21, %v1199_v20  ;;  %v1448_v20 = vld [vmem:[#allocation5 + $0xf88] sm:$0xff] }
 0x318   :  { %v897_v61 = vmax.f32 %v891_v58, 0.0  ;;  %v915_v62 = vsel %vm146_vm0, %v911_v44, %v912_v13  ;;  %v903_v0 = vsel %vm125_vm1, %v899_v47, %v900_v57  ;;  %v1222_v44 = vld [vmem:[#allocation5 + $0x458] sm:$0xff]  ;;  %v1187_v47 = vld [vmem:[#allocation5 + $0x340] sm:$0xff]  ;;  %v1224_v58 = vld [vmem:[#allocation5 + $0x468] sm:$0xff] }
 0x319   :  { %5475 = vmatmul.mubr.msk.f32.vlgmr.msra.gmra.mrb[12].mxu1 %vm7176_vm3, %v915_v62  ;;  %v6210_v51 = vpack.c.bf16 %v1188_v50, %v1187_v47 }
 0x31a   :  { %v901_v2 = vrot.slane %v897_v61, 7  ;;  %v913_v3 = vrot.slane %v897_v61, 1  ;;  %6227 = vmatpush3.bf16.msra.mxu1 %v6224_v10  ;;  %v1198_v10 = vld [vmem:[#allocation5 + $0x398] sm:$0xff] }
 0x31b   :  { %6229 = vmatprep.subr.bf16.mxu1 %v6228_v59  ;;  %v6196_v12 = vpack.c.bf16 %v1198_v10, %v1197_v9  ;;  %v1210_v9 = vld [vmem:[#allocation5 + $0x3f8] sm:$0xff] }
 0x31c   :  { %v905_v5 = vsel %vm125_vm1, %v901_v2, %v898_v40  ;;  %v914_v6 = vsel %vm146_vm0, %v912_v13, %v913_v3  ;;  %v917_v7 = vsel %vm146_vm0, %v913_v3, %v910_v41  ;;  %v902_v8 = vsel %vm125_vm1, %v900_v57, %v901_v2  ;;  %v1204_v41 = vld [vmem:[#allocation5 + $0x3c8] sm:$0xff]  ;;  %v1189_v57 = vld [vmem:[#allocation5 + $0x350] sm:$0xff]  ;;  %v1226_v3 = vld [vmem:[#allocation5 + $0x478] sm:$0xff] }
 0x31d   :  { %4239 = vmatmul.mubr.msk.f32.vlgmr.msra.gmra.mrb[24].mxu0 %vm7167_vm2, %v905_v5  ;;  %5477 = vmatprep.mubr.f32.mxu1 %v914_v6  ;;  %v6208_v42 = vpack.c.bf16 %v1204_v41, %v1203_v52  ;;  %v1192_v5 = vld [vmem:[#allocation5 + $0x368] sm:$0xff]  ;;  %v6252_v6 = vpack.c.bf16 %v1226_v3, %v1225_v1 }
 0x31e   :  { %1040 = vmatprep.mubr.f32.mxu0 %v895_v37  ;;  %5478 = vmatmul.mubr.msk.f32.gmra.mrb[14].mxu1 %vm7194_vm4, %v917_v7  ;;  %v1185_v37 = vld [vmem:[#allocation5 + $0x330] sm:$0xff] }
 0x31f   :  { %6195 = vmatpush3.bf16.msra.mxu0 %v6194_v4  ;;  %6231 = vmatpush3.bf16.msra.mxu1 %v6228_v59  ;;  %v6206_v40 = vpack.c.bf16 %v1186_v48, %v1185_v37  ;;  %v1190_v59 = vld [vmem:[#allocation5 + $0x358] sm:$0xff]  ;;  %v1191_v4 = vld [vmem:[#allocation5 + $0x360] sm:$0xff] }
 0x320   :  { %6197 = vmatprep.subr.bf16.mxu0 %v6196_v12  ;;  %6233 = vmatprep.subr.bf16.mxu1 %v6232_v17  ;;  %v6214_v62 = vpack.c.bf16 %v1190_v59, %v1189_v57  ;;  %v6218_v7 = vpack.c.bf16 %v1192_v5, %v1191_v4  ;;  %v1194_v12 = vld [vmem:[#allocation5 + $0x378] sm:$0xff] }
 0x321   :  { %1041 = vmatmul.mubr.f32.gmra.mrb[26].mxu0 %v904_v54  ;;  %v1205_v54 = vld [vmem:[#allocation5 + $0x3d0] sm:$0xff]  ;;  %v6222_v14 = vpack.c.bf16 %v1194_v12, %v1193_v11 }
 0x322   :  { %1045 = vmatprep.mubr.f32.mxu0 %v896_v49  ;;  %v6244_v49 = vpack.c.bf16 %v1222_v44, %v1221_v43  ;;  %v6212_v13 = vpack.c.bf16 %v1206_v55, %v1205_v54  ;;  %v1449_v12 = vld [vmem:[#allocation5 + $0xf90] sm:$0xff] }
 0x323   :  { %6199 = vmatpush3.bf16.msra.mxu0 %v6198_v19  ;;  %6235 = vmatpush3.bf16.msra.mxu1 %v6232_v17  ;;  %v1447_v17 = vld [vmem:[#allocation5 + $0xf80] sm:$0xff]  ;;  %v6288_v19 = vpack.c.bf16 %v1464_v16, %v1463_v15 }
 0x324   :  { %6201 = vmatprep.subr.bf16.mxu0 %v6200_v23  ;;  %6237 = vmatprep.subr.bf16.mxu1 %v6236_v28  ;;  %v6256_v21 = vpack.c.bf16 %v1448_v20, %v1447_v17  ;;  %v1467_v15 = vld [vmem:[#allocation5 + $0x1020] sm:$0xff]  ;;  %v1468_v17 = vld [vmem:[#allocation5 + $0x1028] sm:$0xff]  ;;  %v1434_v20 = vld [vmem:[#allocation5 + $0xf18] sm:$0xff] }
 0x325   :  { %4240 = vmatmul.mubr.msk.f32.gmra.mrb[28].mxu0 %vm7203_vm5, %v903_v0  ;;  %v1207_v0 = vld [vmem:[#allocation5 + $0x3e0] sm:$0xff] }
 0x326   :  { %1050 = vmatprep.mubr.f32.mxu0 %v897_v61  ;;  %v6248_v61 = vpack.c.bf16 %v1224_v58, %v1223_v56  ;;  %v6216_v2 = vpack.c.bf16 %v1208_v53, %v1207_v0  ;;  %v1466_v58 = vld [vmem:[#allocation5 + $0x1018] sm:$0xff]  ;;  %v1431_v0 = vld [vmem:[#allocation5 + $0xf00] sm:$0xff]  ;;  %v1432_v53 = vld [vmem:[#allocation5 + $0xf08] sm:$0xff] }
 0x327   :  { %6203 = vmatpush3.bf16.msra.mxu0 %v6202_v29  ;;  %6239 = vmatpush3.bf16.msra.mxu1 %v6236_v28 }
 0x328   :  { %6205 = vmatprep.subr.bf16.mxu0 %v6204_v34  ;;  %6241 = vmatprep.subr.bf16.mxu1 %v6240_v38 }
 0x329   :  { %1051 = vmatmul.mubr.f32.gmra.mrb[30].mxu0 %v902_v8  ;;  %v1209_v8 = vld [vmem:[#allocation5 + $0x3f0] sm:$0xff] }
 0x32a   :  { %v6220_v10 = vpack.c.bf16 %v1210_v9, %v1209_v8 }
 0x32b   :  { %6207 = vmatpush3.bf16.msra.mxu0 %v6206_v40  ;;  %6243 = vmatpush3.bf16.msra.mxu1 %v6240_v38 }
 0x32c   :  { %6209 = vmatprep.subr.bf16.mxu0 %v6208_v42  ;;  %6245 = vmatprep.subr.bf16.mxu1 %v6244_v49 }
 0x32f   :  { %6211 = vmatpush3.bf16.msra.mxu0 %v6210_v51  ;;  %6247 = vmatpush3.bf16.msra.mxu1 %v6244_v49 }
 0x330   :  { %6213 = vmatprep.subr.bf16.mxu0 %v6212_v13  ;;  %6249 = vmatprep.subr.bf16.mxu1 %v6248_v61  ;;  %v1465_v13 = vld [vmem:[#allocation5 + $0x1010] sm:$0xff] }
 0x333   :  { %6215 = vmatpush3.bf16.msra.mxu0 %v6214_v62  ;;  %6251 = vmatpush3.bf16.msra.mxu1 %v6248_v61  ;;  %v6292_v61 = vpack.c.bf16 %v1466_v58, %v1465_v13  ;;  %v1457_v58 = vld [vmem:[#allocation5 + $0xfd0] sm:$0xff] }
 0x334   :  { %6217 = vmatprep.subr.bf16.mxu0 %v6216_v2  ;;  %6253 = vmatprep.subr.bf16.mxu1 %v6252_v6 }
 0x337   :  { %6219 = vmatpush3.bf16.msra.mxu0 %v6218_v7  ;;  %6255 = vmatpush3.bf16.msra.mxu1 %v6252_v6 }
 0x338   :  { %6221 = vmatprep.subr.bf16.mxu0 %v6220_v10  ;;  %6289 = vmatprep.subr.bf16.mxu1 %v6288_v19 }
 0x33b   :  { %6223 = vmatpush3.bf16.msra.mxu0 %v6222_v14  ;;  %v1450_v14 = vld [vmem:[#allocation5 + $0xf98] sm:$0xff] }
 0x33c   :  { %6257 = vmatprep.subr.bf16.mxu0 %v6256_v21  ;;  %v6260_v16 = vpack.c.bf16 %v1450_v14, %v1449_v12  ;;  %v6296_v21 = vpack.c.bf16 %v1468_v17, %v1467_v15  ;;  %v1462_v12 = vld [vmem:[#allocation5 + $0xff8] sm:$0xff]  ;;  %v1445_v15 = vld [vmem:[#allocation5 + $0xf70] sm:$0xff] }
 0x3ec   :  { %v5476_v22 = vpop.f32.mrb[12].mxu1 }
 0x3ed   :  { %v1122_v23 = vpop.f32.mrb[13].mxu1 }
 0x3f0   :  { %v4528_v24 = vpop.f32.mrb[24].mxu0 }
 0x3f1   :  { %v4529_v26 = vpop.f32.mrb[25].mxu0  ;;  %v5479_v27 = vpop.f32.mrb[14].mxu1 }
 0x3f2   :  { %v4530_v28 = vadd.f32 %v4529_v26, %v4528_v24  ;;  %v1132_v29 = vpop.f32.mrb[15].mxu1  ;;  %v1452_v24 = vld [vmem:[#allocation5 + $0xfa8] sm:$0xff]  ;;  %v1469_v26 = vld [vmem:[#allocation5 + $0x1030] sm:$0xff] }
 0x3f4   :  { %v1123_v30 = vadd.f32 %v4530_v28, %v1122_v23  ;;  %v4531_v32 = vpop.f32.mrb[26].mxu0  ;;  %v1451_v23 = vld [vmem:[#allocation5 + $0xfa0] sm:$0xff]  ;;  %v1470_v28 = vld [vmem:[#allocation5 + $0x1038] sm:$0xff] }
 0x3f5   :  { %v4532_v34 = vpop.f32.mrb[27].mxu0 }
 0x3f6   :  { %v1141_v35 = vadd.f32 %v1123_v30, %v7243_v25  ;;  %v4533_v37 = vadd.f32 %v4532_v34, %v4531_v32  ;;  %v1436_v30 = vld [vmem:[#allocation5 + $0xf28] sm:$0xff]  ;;  %v6300_v32 = vpack.c.bf16 %v1470_v28, %v1469_v26  ;;  %v1453_v34 = vld [vmem:[#allocation5 + $0xfb0] sm:$0xff] }
 0x3f8   :  { %v7315_v48 = vadd.f32 %v4243_v33, %v1141_v35  ;;  %v1128_v38 = vadd.f32 %v5476_v22, %v4533_v37  ;;  %v4534_v40 = vpop.f32.mrb[28].mxu0  ;;  %v1454_v35 = vld [vmem:[#allocation5 + $0xfb8] sm:$0xff]  ;;  %v1471_v37 = vld [vmem:[#allocation5 + $0x1040] sm:$0xff] }
 0x3f9   :  { %v4535_v52 = vpop.f32.mrb[29].mxu0 }
 0x3fa   :  { %v1142_v41 = vadd.f32 %v1128_v38, %v7247_v31  ;;  %v4536_v42 = vadd.f32 %v4535_v52, %v4534_v40  ;;  %1296 = vmatprep.mubr.f32.mxu0 %v7315_v48  ;;  %v1166_v25 = vrot.slane %v7315_v48, 1  ;;  %v1154_v1 = vrot.slane %v7315_v48, 7  ;;  %v1472_v40 = vld [vmem:[#allocation5 + $0x1048] sm:$0xff]  ;;  %v1437_v52 = vld [vmem:[#allocation5 + $0xf30] sm:$0xff] }
 0x3fb   :  { %v6268_v38 = vpack.c.bf16 %v1454_v35, %v1453_v34 }
 0x3fc   :  { %v7319_v43 = vadd.f32 %v4243_v33, %v1142_v41  ;;  %v1133_v44 = vadd.f32 %v4536_v42, %v1132_v29  ;;  %v4537_v47 = vpop.f32.mrb[30].mxu0  ;;  %v1435_v29 = vld [vmem:[#allocation5 + $0xf20] sm:$0xff]  ;;  %v1438_v41 = vld [vmem:[#allocation5 + $0xf38] sm:$0xff]  ;;  %v6304_v42 = vpack.c.bf16 %v1472_v40, %v1471_v37 }
 0x3fd   :  { %v4538_v49 = vpop.f32.mrb[31].mxu0 }
 0x3fe   :  { %v1143_v50 = vadd.f32 %v1133_v44, %v7252_v39  ;;  %v4539_v51 = vadd.f32 %v4538_v49, %v4537_v47  ;;  %v1167_v54 = vrot.slane %v7319_v43, 1  ;;  %v1155_v7 = vrot.slane %v7319_v43, 7  ;;  %v1455_v47 = vld [vmem:[#allocation5 + $0xfc0] sm:$0xff]  ;;  %v1456_v49 = vld [vmem:[#allocation5 + $0xfc8] sm:$0xff] }
 0x3ff   :  { %v6270_v44 = vpack.c.bf16 %v1438_v41, %v1437_v52 }
 0x400   :  { %v7324_v55 = vadd.f32 %v4243_v33, %v1143_v50  ;;  %v1138_v56 = vadd.f32 %v5479_v27, %v4539_v51  ;;  %v1172_v31 = vsel %vm146_vm0, %v1166_v25, %v1167_v54  ;;  %v1160_v8 = vsel %vm125_vm1, %v1154_v1, %v1155_v7  ;;  %v1473_v50 = vld [vmem:[#allocation5 + $0x1050] sm:$0xff] }
 0x401   :  { %5512 = vmatprep.mubr.f32.mxu1 %v1172_v31  ;;  %v6264_v27 = vpack.c.bf16 %v1452_v24, %v1451_v23  ;;  %v6272_v51 = vpack.c.bf16 %v1456_v49, %v1455_v47  ;;  %v1704_v23 = vld [vmem:[#allocation5 + $0x508] sm:$0xff] }
 0x402   :  { %v1144_v57 = vadd.f32 %v1138_v56, %v7258_v18  ;;  %v1168_v59 = vrot.slane %v7324_v55, 1  ;;  %v6258_v18 = vpack.c.bf16 %v1432_v53, %v1431_v0  ;;  %v1156_v9 = vrot.slane %v7324_v55, 7  ;;  %v1440_v56 = vld [vmem:[#allocation5 + $0xf48] sm:$0xff]  ;;  %v1441_v0 = vld [vmem:[#allocation5 + $0xf50] sm:$0xff]  ;;  %v1442_v53 = vld [vmem:[#allocation5 + $0xf58] sm:$0xff] }
 0x404   :  { %v7330_v39 = vadd.f32 %v4243_v33, %v1144_v57  ;;  %v1171_v62 = vsel %vm146_vm0, %v1167_v54, %v1168_v59  ;;  %v1159_v10 = vsel %vm125_vm1, %v1155_v7, %v1156_v9  ;;  %v6266_v33 = vpack.c.bf16 %v1436_v30, %v1435_v29  ;;  %v1439_v54 = vld [vmem:[#allocation5 + $0xf40] sm:$0xff]  ;;  %v1458_v57 = vld [vmem:[#allocation5 + $0xfd8] sm:$0xff] }
 0x405   :  { %5513 = vmatmul.mubr.msk.f32.vlgmr.msra.gmra.mrb[16].mxu1 %vm7176_vm3, %v1171_v62  ;;  %v6274_v13 = vpack.c.bf16 %v1440_v56, %v1439_v54  ;;  %v1476_v62 = vld [vmem:[#allocation5 + $0x1068] sm:$0xff]  ;;  %v1443_v7 = vld [vmem:[#allocation5 + $0xf60] sm:$0xff] }
 0x406   :  { %v1157_v2 = vrot.slane %v7330_v39, 7  ;;  %v1169_v3 = vrot.slane %v7330_v39, 1  ;;  %6291 = vmatpush3.bf16.msra.mxu1 %v6288_v19  ;;  %v1433_v19 = vld [vmem:[#allocation5 + $0xf10] sm:$0xff]  ;;  %v4244_v29 = vld [vmem:[#allocation7 + $0x2] ss:$0 sm:$0xff] }
 0x407   :  { %6293 = vmatprep.subr.bf16.mxu1 %v6292_v61  ;;  %v6262_v22 = vpack.c.bf16 %v1434_v20, %v1433_v19  ;;  %v1719_v19 = vld [vmem:[#allocation5 + $0x580] sm:$0xff]  ;;  %v1720_v20 = vld [vmem:[#allocation5 + $0x588] sm:$0xff] }
 0x408   :  { %v1161_v4 = vsel %vm125_vm1, %v1157_v2, %v1154_v1  ;;  %v1170_v5 = vsel %vm146_vm0, %v1168_v59, %v1169_v3  ;;  %v1173_v6 = vsel %vm146_vm0, %v1169_v3, %v1166_v25  ;;  %v1158_v11 = vsel %vm125_vm1, %v1156_v9, %v1157_v2  ;;  %v1474_v25 = vld [vmem:[#allocation5 + $0x1058] sm:$0xff]  ;;  %v1475_v59 = vld [vmem:[#allocation5 + $0x1060] sm:$0xff] }
 0x409   :  { %4245 = vmatmul.mubr.msk.f32.vlgmr.msra.gmra.mrb[32].mxu0 %vm7167_vm2, %v1161_v4  ;;  %5515 = vmatprep.mubr.f32.mxu1 %v1170_v5  ;;  %v6308_v31 = vpack.c.bf16 %v1474_v25, %v1473_v50  ;;  %v6312_v1 = vpack.c.bf16 %v1476_v62, %v1475_v59  ;;  %v6278_v2 = vpack.c.bf16 %v1442_v53, %v1441_v0  ;;  %v1459_v3 = vld [vmem:[#allocation5 + $0xfe0] sm:$0xff]  ;;  %v1477_v4 = vld [vmem:[#allocation5 + $0x1070] sm:$0xff] }
 0x40a   :  { %1301 = vmatprep.mubr.f32.mxu0 %v7319_v43  ;;  %5516 = vmatmul.mubr.msk.f32.gmra.mrb[18].mxu1 %vm7194_vm4, %v1173_v6  ;;  %v1478_v6 = vld [vmem:[#allocation5 + $0x1078] sm:$0xff] }
 0x40b   :  { %6259 = vmatpush3.bf16.msra.mxu0 %v6258_v18  ;;  %6295 = vmatpush3.bf16.msra.mxu1 %v6292_v61  ;;  %v6276_v61 = vpack.c.bf16 %v1458_v57, %v1457_v58  ;;  %v1460_v18 = vld [vmem:[#allocation5 + $0xfe8] sm:$0xff]  ;;  %v6316_v9 = vpack.c.bf16 %v1478_v6, %v1477_v4 }
 0x40c   :  { %6261 = vmatprep.subr.bf16.mxu0 %v6260_v16  ;;  %6297 = vmatprep.subr.bf16.mxu1 %v6296_v21  ;;  %v6280_v5 = vpack.c.bf16 %v1460_v18, %v1459_v3  ;;  %v1446_v16 = vld [vmem:[#allocation5 + $0xf78] sm:$0xff] }
 0x40d   :  { %1302 = vmatmul.mubr.f32.gmra.mrb[34].mxu0 %v1160_v8  ;;  %v1444_v8 = vld [vmem:[#allocation5 + $0xf68] sm:$0xff]  ;;  %v6286_v17 = vpack.c.bf16 %v1446_v16, %v1445_v15  ;;  %v1722_v3 = vld [vmem:[#allocation5 + $0x598] sm:$0xff] }
 0x40e   :  { %1306 = vmatprep.mubr.f32.mxu0 %v7324_v55 }
 0x40f   :  { %6263 = vmatpush3.bf16.msra.mxu0 %v6262_v22  ;;  %6299 = vmatpush3.bf16.msra.mxu1 %v6296_v21  ;;  %v1703_v21 = vld [vmem:[#allocation5 + $0x500] sm:$0xff]  ;;  %v6352_v22 = vpack.c.bf16 %v1720_v20, %v1719_v19 }
 0x410   :  { %6265 = vmatprep.subr.bf16.mxu0 %v6264_v27  ;;  %6301 = vmatprep.subr.bf16.mxu1 %v6300_v32  ;;  %v6320_v24 = vpack.c.bf16 %v1704_v23, %v1703_v21  ;;  %v1705_v21 = vld [vmem:[#allocation5 + $0x510] sm:$0xff]  ;;  %v1723_v23 = vld [vmem:[#allocation5 + $0x5a0] sm:$0xff] }
 0x411   :  { %4246 = vmatmul.mubr.msk.f32.gmra.mrb[36].mxu0 %vm7203_vm5, %v1159_v10  ;;  %v6282_v10 = vpack.c.bf16 %v1444_v8, %v1443_v7 }
 0x412   :  { %1311 = vmatprep.mubr.f32.mxu0 %v7330_v39 }
 0x413   :  { %6267 = vmatpush3.bf16.msra.mxu0 %v6266_v33  ;;  %6303 = vmatpush3.bf16.msra.mxu1 %v6300_v32 }
 0x414   :  { %6269 = vmatprep.subr.bf16.mxu0 %v6268_v38  ;;  %6305 = vmatprep.subr.bf16.mxu1 %v6304_v42 }
 0x415   :  { %1312 = vmatmul.mubr.f32.gmra.mrb[38].mxu0 %v1158_v11  ;;  %v1461_v11 = vld [vmem:[#allocation5 + $0xff0] sm:$0xff] }
 0x416   :  { %v6284_v14 = vpack.c.bf16 %v1462_v12, %v1461_v11  ;;  %v1688_v11 = vld [vmem:[#allocation5 + $0x488] sm:$0xff] }
 0x417   :  { %6271 = vmatpush3.bf16.msra.mxu0 %v6270_v44  ;;  %6307 = vmatpush3.bf16.msra.mxu1 %v6304_v42 }
 0x418   :  { %6273 = vmatprep.subr.bf16.mxu0 %v6272_v51  ;;  %6309 = vmatprep.subr.bf16.mxu1 %v6308_v31 }
 0x41b   :  { %6275 = vmatpush3.bf16.msra.mxu0 %v6274_v13  ;;  %6311 = vmatpush3.bf16.msra.mxu1 %v6308_v31 }
 0x41c   :  { %6277 = vmatprep.subr.bf16.mxu0 %v6276_v61  ;;  %6313 = vmatprep.subr.bf16.mxu1 %v6312_v1 }
 0x41f   :  { %6279 = vmatpush3.bf16.msra.mxu0 %v6278_v2  ;;  %6315 = vmatpush3.bf16.msra.mxu1 %v6312_v1  ;;  %v1721_v2 = vld [vmem:[#allocation5 + $0x590] sm:$0xff] }
 0x420   :  { %6281 = vmatprep.subr.bf16.mxu0 %v6280_v5  ;;  %6317 = vmatprep.subr.bf16.mxu1 %v6316_v9  ;;  %v6356_v6 = vpack.c.bf16 %v1722_v3, %v1721_v2  ;;  %v1714_v2 = vld [vmem:[#allocation5 + $0x558] sm:$0xff]  ;;  %v1731_v3 = vld [vmem:[#allocation5 + $0x5e0] sm:$0xff] }
 0x423   :  { %6283 = vmatpush3.bf16.msra.mxu0 %v6282_v10  ;;  %6319 = vmatpush3.bf16.msra.mxu1 %v6316_v9  ;;  %v1687_v10 = vld [vmem:[#allocation5 + $0x480] sm:$0xff] }
 0x424   :  { %6285 = vmatprep.subr.bf16.mxu0 %v6284_v14  ;;  %6353 = vmatprep.subr.bf16.mxu1 %v6352_v22  ;;  %v6322_v15 = vpack.c.bf16 %v1688_v11, %v1687_v10  ;;  %v1716_v10 = vld [vmem:[#allocation5 + $0x568] sm:$0xff]  ;;  %v1733_v11 = vld [vmem:[#allocation5 + $0x5f0] sm:$0xff] }
 0x427   :  { %6287 = vmatpush3.bf16.msra.mxu0 %v6286_v17 }
 0x428   :  { %6321 = vmatprep.subr.bf16.mxu0 %v6320_v24 }
 0x4d8   :  { %v5514_v26 = vpop.f32.mrb[16].mxu1 }
 0x4d9   :  { %v1383_v27 = vpop.f32.mrb[17].mxu1 }
 0x4dc   :  { %v4592_v28 = vpop.f32.mrb[32].mxu0 }
 0x4dd   :  { %v4593_v30 = vpop.f32.mrb[33].mxu0  ;;  %v5517_v32 = vpop.f32.mrb[18].mxu1 }
 0x4de   :  { %v4594_v33 = vadd.f32 %v4593_v30, %v4592_v28  ;;  %v1393_v34 = vpop.f32.mrb[19].mxu1  ;;  %v1690_v28 = vld [vmem:[#allocation5 + $0x498] sm:$0xff] }
 0x4e0   :  { %v1299_v35 = vadd.f32 %v4594_v33, %v4244_v29  ;;  %v4595_v37 = vpop.f32.mrb[34].mxu0  ;;  %v1708_v33 = vld [vmem:[#allocation5 + $0x528] sm:$0xff] }
 0x4e1   :  { %v4596_v38 = vpop.f32.mrb[35].mxu0 }
 0x4e2   :  { %v4597_v40 = vadd.f32 %v4596_v38, %v4595_v37  ;;  %v1384_v52 = vadd.f32 %v1383_v27, %v1299_v35  ;;  %v1689_v27 = vld [vmem:[#allocation5 + $0x490] sm:$0xff]  ;;  %v1726_v37 = vld [vmem:[#allocation5 + $0x5b8] sm:$0xff]  ;;  %v1691_v38 = vld [vmem:[#allocation5 + $0x4a0] sm:$0xff] }
 0x4e3   :  { %v6326_v30 = vpack.c.bf16 %v1690_v28, %v1689_v27  ;;  %v1971_v27 = vld [vmem:[#allocation5 + $0x1180] sm:$0xff]  ;;  %v1972_v28 = vld [vmem:[#allocation5 + $0x1188] sm:$0xff] }
 0x4e4   :  { %v1304_v41 = vadd.f32 %v4597_v40, %v4244_v29  ;;  %v4598_v42 = vpop.f32.mrb[36].mxu0  ;;  %v1402_v44 = vmax.f32 %v1384_v52, 0.0  ;;  %v1692_v40 = vld [vmem:[#allocation5 + $0x4a8] sm:$0xff] }
 0x4e5   :  { %v4599_v47 = vpop.f32.mrb[37].mxu0 }
 0x4e6   :  { %v1389_v49 = vadd.f32 %v5514_v26, %v1304_v41  ;;  %v4600_v50 = vadd.f32 %v4599_v47, %v4598_v42  ;;  %1543 = vmatprep.mubr.f32.mxu0 %v1402_v44  ;;  %v1406_v56 = vrot.slane %v1402_v44, 7  ;;  %v1418_v13 = vrot.slane %v1402_v44, 1  ;;  %v1724_v26 = vld [vmem:[#allocation5 + $0x5a8] sm:$0xff]  ;;  %v1709_v42 = vld [vmem:[#allocation5 + $0x530] sm:$0xff]  ;;  %v1710_v44 = vld [vmem:[#allocation5 + $0x538] sm:$0xff] }
 0x4e7   :  { %v6330_v41 = vpack.c.bf16 %v1692_v40, %v1691_v38  ;;  %v1727_v47 = vld [vmem:[#allocation5 + $0x5c0] sm:$0xff] }
 0x4e8   :  { %v1403_v51 = vmax.f32 %v1389_v49, 0.0  ;;  %v1309_v25 = vadd.f32 %v4600_v50, %v4244_v29  ;;  %v4601_v54 = vpop.f32.mrb[38].mxu0  ;;  %v6332_v49 = vpack.c.bf16 %v1710_v44, %v1709_v42  ;;  %v1728_v50 = vld [vmem:[#allocation5 + $0x5c8] sm:$0xff] }
 0x4e9   :  { %v4602_v31 = vpop.f32.mrb[39].mxu0 }
 0x4ea   :  { %v1394_v58 = vadd.f32 %v1393_v34, %v1309_v25  ;;  %v4603_v57 = vadd.f32 %v4602_v31, %v4601_v54  ;;  %v1419_v59 = vrot.slane %v1403_v51, 1  ;;  %v1407_v61 = vrot.slane %v1403_v51, 7  ;;  %v1725_v34 = vld [vmem:[#allocation5 + $0x5b0] sm:$0xff]  ;;  %v1694_v25 = vld [vmem:[#allocation5 + $0x4b8] sm:$0xff]  ;;  %v1711_v31 = vld [vmem:[#allocation5 + $0x540] sm:$0xff] }
 0x4eb   :  { %v6364_v52 = vpack.c.bf16 %v1726_v37, %v1725_v34  ;;  %v6368_v54 = vpack.c.bf16 %v1728_v50, %v1727_v47  ;;  %v4253_v47 = vld [vmem:[#allocation7 + $0xa] ss:$0 sm:$0xff] }
 0x4ec   :  { %v1404_v62 = vmax.f32 %v1394_v58, 0.0  ;;  %v1314_v0 = vadd.f32 %v4603_v57, %v4244_v29  ;;  %v1424_v53 = vsel %vm146_vm0, %v1418_v13, %v1419_v59  ;;  %v1412_v1 = vsel %vm125_vm1, %v1406_v56, %v1407_v61  ;;  %v1729_v57 = vld [vmem:[#allocation5 + $0x5d0] sm:$0xff] }
 0x4ed   :  { %5550 = vmatprep.mubr.f32.mxu1 %v1424_v53  ;;  %v6360_v29 = vpack.c.bf16 %v1724_v26, %v1723_v23  ;;  %v1701_v23 = vld [vmem:[#allocation5 + $0x4f0] sm:$0xff] }
 0x4ee   :  { %v1420_v18 = vrot.slane %v1404_v62, 1  ;;  %v1399_v4 = vadd.f32 %v5517_v32, %v1314_v0  ;;  %v1408_v5 = vrot.slane %v1404_v62, 7  ;;  %v1707_v32 = vld [vmem:[#allocation5 + $0x520] sm:$0xff]  ;;  %v1696_v0 = vld [vmem:[#allocation5 + $0x4c8] sm:$0xff] }
 0x4ef   :  { %v6328_v35 = vpack.c.bf16 %v1708_v33, %v1707_v32  ;;  %v1956_v32 = vld [vmem:[#allocation5 + $0x1108] sm:$0xff] }
 0x4f0   :  { %v1405_v7 = vmax.f32 %v1399_v4, 0.0  ;;  %v1423_v8 = vsel %vm146_vm0, %v1419_v59, %v1420_v18  ;;  %v1411_v9 = vsel %vm125_vm1, %v1407_v61, %v1408_v5  ;;  %v1730_v59 = vld [vmem:[#allocation5 + $0x5d8] sm:$0xff]  ;;  %v1695_v61 = vld [vmem:[#allocation5 + $0x4c0] sm:$0xff]  ;;  %v1732_v4 = vld [vmem:[#allocation5 + $0x5e8] sm:$0xff] }
 0x4f1   :  { %5551 = vmatmul.mubr.msk.f32.vlgmr.msra.gmra.mrb[20].mxu1 %vm7176_vm3, %v1423_v8  ;;  %v6338_v53 = vpack.c.bf16 %v1696_v0, %v1695_v61 }
 0x4f2   :  { %v1409_v12 = vrot.slane %v1405_v7, 7  ;;  %v1421_v14 = vrot.slane %v1405_v7, 1  ;;  %6355 = vmatpush3.bf16.msra.mxu1 %v6352_v22  ;;  %v1706_v22 = vld [vmem:[#allocation5 + $0x518] sm:$0xff] }
 0x4f3   :  { %6357 = vmatprep.subr.bf16.mxu1 %v6356_v6  ;;  %v6324_v24 = vpack.c.bf16 %v1706_v22, %v1705_v21  ;;  %v1718_v21 = vld [vmem:[#allocation5 + $0x578] sm:$0xff] }
 0x4f4   :  { %v1413_v16 = vsel %vm125_vm1, %v1409_v12, %v1406_v56  ;;  %v1422_v17 = vsel %vm146_vm0, %v1420_v18, %v1421_v14  ;;  %v1425_v19 = vsel %vm146_vm0, %v1421_v14, %v1418_v13  ;;  %v1410_v20 = vsel %vm125_vm1, %v1408_v5, %v1409_v12  ;;  %v1712_v13 = vld [vmem:[#allocation5 + $0x548] sm:$0xff]  ;;  %v1697_v5 = vld [vmem:[#allocation5 + $0x4d0] sm:$0xff]  ;;  %v1734_v14 = vld [vmem:[#allocation5 + $0x5f8] sm:$0xff] }
 0x4f5   :  { %4249 = vmatmul.mubr.msk.f32.vlgmr.msra.gmra.mrb[40].mxu0 %vm7167_vm2, %v1413_v16  ;;  %5553 = vmatprep.mubr.f32.mxu1 %v1422_v17  ;;  %v6336_v58 = vpack.c.bf16 %v1712_v13, %v1711_v31  ;;  %v1700_v16 = vld [vmem:[#allocation5 + $0x4e8] sm:$0xff]  ;;  %v6380_v17 = vpack.c.bf16 %v1734_v14, %v1733_v11 }
 0x4f6   :  { %1548 = vmatprep.mubr.f32.mxu0 %v1403_v51  ;;  %5554 = vmatmul.mubr.msk.f32.gmra.mrb[22].mxu1 %vm7194_vm4, %v1425_v19  ;;  %v1693_v51 = vld [vmem:[#allocation5 + $0x4b0] sm:$0xff] }
 0x4f7   :  { %6323 = vmatpush3.bf16.msra.mxu0 %v6322_v15  ;;  %6359 = vmatpush3.bf16.msra.mxu1 %v6356_v6  ;;  %v6334_v56 = vpack.c.bf16 %v1694_v25, %v1693_v51  ;;  %v1698_v6 = vld [vmem:[#allocation5 + $0x4d8] sm:$0xff]  ;;  %v1699_v15 = vld [vmem:[#allocation5 + $0x4e0] sm:$0xff] }
 0x4f8   :  { %6325 = vmatprep.subr.bf16.mxu0 %v6324_v24  ;;  %6361 = vmatprep.subr.bf16.mxu1 %v6360_v29  ;;  %v6342_v8 = vpack.c.bf16 %v1698_v6, %v1697_v5  ;;  %v6346_v19 = vpack.c.bf16 %v1700_v16, %v1699_v15  ;;  %v1702_v24 = vld [vmem:[#allocation5 + $0x4f8] sm:$0xff] }
 0x4f9   :  { %1549 = vmatmul.mubr.f32.gmra.mrb[42].mxu0 %v1412_v1  ;;  %v1713_v1 = vld [vmem:[#allocation5 + $0x550] sm:$0xff]  ;;  %v6350_v26 = vpack.c.bf16 %v1702_v24, %v1701_v23 }
 0x4fa   :  { %1553 = vmatprep.mubr.f32.mxu0 %v1404_v62  ;;  %v6372_v62 = vpack.c.bf16 %v1730_v59, %v1729_v57  ;;  %v6340_v18 = vpack.c.bf16 %v1714_v2, %v1713_v1  ;;  %v1957_v24 = vld [vmem:[#allocation5 + $0x1110] sm:$0xff] }
 0x4fb   :  { %6327 = vmatpush3.bf16.msra.mxu0 %v6326_v30  ;;  %6363 = vmatpush3.bf16.msra.mxu1 %v6360_v29  ;;  %v1955_v29 = vld [vmem:[#allocation5 + $0x1100] sm:$0xff]  ;;  %v6416_v30 = vpack.c.bf16 %v1972_v28, %v1971_v27 }
 0x4fc   :  { %6329 = vmatprep.subr.bf16.mxu0 %v6328_v35  ;;  %6365 = vmatprep.subr.bf16.mxu1 %v6364_v52  ;;  %v6384_v33 = vpack.c.bf16 %v1956_v32, %v1955_v29  ;;  %v1975_v27 = vld [vmem:[#allocation5 + $0x11a0] sm:$0xff]  ;;  %v1976_v29 = vld [vmem:[#allocation5 + $0x11a8] sm:$0xff]  ;;  %v1942_v32 = vld [vmem:[#allocation5 + $0x1098] sm:$0xff] }
 0x4fd   :  { %4250 = vmatmul.mubr.msk.f32.gmra.mrb[44].mxu0 %vm7203_vm5, %v1411_v9  ;;  %v1715_v9 = vld [vmem:[#allocation5 + $0x560] sm:$0xff] }
 0x4fe   :  { %1558 = vmatprep.mubr.f32.mxu0 %v1405_v7  ;;  %v6376_v7 = vpack.c.bf16 %v1732_v4, %v1731_v3  ;;  %v6344_v12 = vpack.c.bf16 %v1716_v10, %v1715_v9  ;;  %v1974_v4 = vld [vmem:[#allocation5 + $0x1198] sm:$0xff]  ;;  %v1939_v9 = vld [vmem:[#allocation5 + $0x1080] sm:$0xff]  ;;  %v1940_v10 = vld [vmem:[#allocation5 + $0x1088] sm:$0xff] }
 0x4ff   :  { %6331 = vmatpush3.bf16.msra.mxu0 %v6330_v41  ;;  %6367 = vmatpush3.bf16.msra.mxu1 %v6364_v52 }
 0x500   :  { %6333 = vmatprep.subr.bf16.mxu0 %v6332_v49  ;;  %6369 = vmatprep.subr.bf16.mxu1 %v6368_v54 }
 0x501   :  { %1559 = vmatmul.mubr.f32.gmra.mrb[46].mxu0 %v1410_v20  ;;  %v1717_v20 = vld [vmem:[#allocation5 + $0x570] sm:$0xff] }
 0x502   :  { %v6348_v22 = vpack.c.bf16 %v1718_v21, %v1717_v20 }
 0x503   :  { %6335 = vmatpush3.bf16.msra.mxu0 %v6334_v56  ;;  %6371 = vmatpush3.bf16.msra.mxu1 %v6368_v54 }
 0x504   :  { %6337 = vmatprep.subr.bf16.mxu0 %v6336_v58  ;;  %6373 = vmatprep.subr.bf16.mxu1 %v6372_v62 }
 0x507   :  { %6339 = vmatpush3.bf16.msra.mxu0 %v6338_v53  ;;  %6375 = vmatpush3.bf16.msra.mxu1 %v6372_v62 }
 0x508   :  { %6341 = vmatprep.subr.bf16.mxu0 %v6340_v18  ;;  %6377 = vmatprep.subr.bf16.mxu1 %v6376_v7  ;;  %v1973_v18 = vld [vmem:[#allocation5 + $0x1190] sm:$0xff] }
 0x50b   :  { %6343 = vmatpush3.bf16.msra.mxu0 %v6342_v8  ;;  %6379 = vmatpush3.bf16.msra.mxu1 %v6376_v7  ;;  %v6420_v7 = vpack.c.bf16 %v1974_v4, %v1973_v18  ;;  %v1965_v4 = vld [vmem:[#allocation5 + $0x1150] sm:$0xff] }
 0x50c   :  { %6345 = vmatprep.subr.bf16.mxu0 %v6344_v12  ;;  %6381 = vmatprep.subr.bf16.mxu1 %v6380_v17 }
 0x50f   :  { %6347 = vmatpush3.bf16.msra.mxu0 %v6346_v19  ;;  %6383 = vmatpush3.bf16.msra.mxu1 %v6380_v17 }
 0x510   :  { %6349 = vmatprep.subr.bf16.mxu0 %v6348_v22  ;;  %6417 = vmatprep.subr.bf16.mxu1 %v6416_v30 }
 0x513   :  { %6351 = vmatpush3.bf16.msra.mxu0 %v6350_v26  ;;  %v1958_v26 = vld [vmem:[#allocation5 + $0x1118] sm:$0xff] }
 0x514   :  { %6385 = vmatprep.subr.bf16.mxu0 %v6384_v33  ;;  %v6388_v28 = vpack.c.bf16 %v1958_v26, %v1957_v24  ;;  %v6424_v33 = vpack.c.bf16 %v1976_v29, %v1975_v27  ;;  %v1970_v24 = vld [vmem:[#allocation5 + $0x1178] sm:$0xff]  ;;  %v1953_v27 = vld [vmem:[#allocation5 + $0x10f0] sm:$0xff] }
 0x5c4   :  { %v5552_v34 = vpop.f32.mrb[20].mxu1 }
 0x5c5   :  { %v1630_v35 = vpop.f32.mrb[21].mxu1 }
 0x5c8   :  { %v4656_v37 = vpop.f32.mrb[40].mxu0 }
 0x5c9   :  { %v4657_v38 = vpop.f32.mrb[41].mxu0  ;;  %v5555_v40 = vpop.f32.mrb[22].mxu1 }
 0x5ca   :  { %v4658_v52 = vadd.f32 %v4657_v38, %v4656_v37  ;;  %v1640_v41 = vpop.f32.mrb[23].mxu1  ;;  %v1960_v37 = vld [vmem:[#allocation5 + $0x1128] sm:$0xff]  ;;  %v1977_v38 = vld [vmem:[#allocation5 + $0x11b0] sm:$0xff] }
 0x5cc   :  { %v1631_v42 = vadd.f32 %v4658_v52, %v1630_v35  ;;  %v4659_v44 = vpop.f32.mrb[42].mxu0  ;;  %v1959_v35 = vld [vmem:[#allocation5 + $0x1120] sm:$0xff]  ;;  %v1978_v52 = vld [vmem:[#allocation5 + $0x11b8] sm:$0xff] }
 0x5cd   :  { %v4660_v49 = vpop.f32.mrb[43].mxu0 }
 0x5ce   :  { %v1649_v50 = vadd.f32 %v1631_v42, %v7315_v48  ;;  %v4661_v51 = vadd.f32 %v4660_v49, %v4659_v44  ;;  %v1944_v42 = vld [vmem:[#allocation5 + $0x10a8] sm:$0xff]  ;;  %v6428_v44 = vpack.c.bf16 %v1978_v52, %v1977_v38  ;;  %v1961_v49 = vld [vmem:[#allocation5 + $0x1130] sm:$0xff] }
 0x5d0   :  { %v7387_v25 = vadd.f32 %v4253_v47, %v1649_v50  ;;  %v1636_v54 = vadd.f32 %v5552_v34, %v4661_v51  ;;  %v4662_v56 = vpop.f32.mrb[44].mxu0  ;;  %v1962_v50 = vld [vmem:[#allocation5 + $0x1138] sm:$0xff]  ;;  %v1979_v51 = vld [vmem:[#allocation5 + $0x11c0] sm:$0xff] }
 0x5d1   :  { %v4663_v31 = vpop.f32.mrb[45].mxu0 }
 0x5d2   :  { %v1650_v13 = vadd.f32 %v1636_v54, %v7319_v43  ;;  %v4664_v58 = vadd.f32 %v4663_v31, %v4662_v56  ;;  %1804 = vmatprep.mubr.f32.mxu0 %v7387_v25  ;;  %v1674_v48 = vrot.slane %v7387_v25, 1  ;;  %v1662_v11 = vrot.slane %v7387_v25, 7  ;;  %v1980_v56 = vld [vmem:[#allocation5 + $0x11c8] sm:$0xff]  ;;  %v1945_v31 = vld [vmem:[#allocation5 + $0x10b0] sm:$0xff] }
 0x5d3   :  { %v6396_v54 = vpack.c.bf16 %v1962_v50, %v1961_v49 }
 0x5d4   :  { %v7391_v57 = vadd.f32 %v4253_v47, %v1650_v13  ;;  %v1641_v59 = vadd.f32 %v4664_v58, %v1640_v41  ;;  %v4665_v61 = vpop.f32.mrb[46].mxu0  ;;  %v1943_v41 = vld [vmem:[#allocation5 + $0x10a0] sm:$0xff]  ;;  %v1946_v13 = vld [vmem:[#allocation5 + $0x10b8] sm:$0xff]  ;;  %v6432_v58 = vpack.c.bf16 %v1980_v56, %v1979_v51 }
 0x5d5   :  { %v4666_v62 = vpop.f32.mrb[47].mxu0 }
 0x5d6   :  { %v1651_v0 = vadd.f32 %v1641_v59, %v7324_v55  ;;  %v4667_v53 = vadd.f32 %v4666_v62, %v4665_v61  ;;  %v1675_v1 = vrot.slane %v7391_v57, 1  ;;  %v1663_v19 = vrot.slane %v7391_v57, 7  ;;  %v1963_v61 = vld [vmem:[#allocation5 + $0x1140] sm:$0xff]  ;;  %v1964_v62 = vld [vmem:[#allocation5 + $0x1148] sm:$0xff] }
 0x5d7   :  { %v6398_v59 = vpack.c.bf16 %v1946_v13, %v1945_v31 }
 0x5d8   :  { %v7396_v2 = vadd.f32 %v4253_v47, %v1651_v0  ;;  %v1646_v3 = vadd.f32 %v5555_v40, %v4667_v53  ;;  %v1680_v43 = vsel %vm146_vm0, %v1674_v48, %v1675_v1  ;;  %v1668_v20 = vsel %vm125_vm1, %v1662_v11, %v1663_v19  ;;  %v1981_v0 = vld [vmem:[#allocation5 + $0x11d0] sm:$0xff] }
 0x5d9   :  { %5588 = vmatprep.mubr.f32.mxu1 %v1680_v43  ;;  %v6392_v40 = vpack.c.bf16 %v1960_v37, %v1959_v35  ;;  %v6400_v53 = vpack.c.bf16 %v1964_v62, %v1963_v61  ;;  %v2212_v35 = vld [vmem:[#allocation5 + $0x688] sm:$0xff] }
 0x5da   :  { %v1652_v5 = vadd.f32 %v1646_v3, %v7330_v39  ;;  %v1676_v6 = vrot.slane %v7396_v2, 1  ;;  %v6386_v39 = vpack.c.bf16 %v1940_v10, %v1939_v9  ;;  %v1664_v21 = vrot.slane %v7396_v2, 7  ;;  %v1948_v3 = vld [vmem:[#allocation5 + $0x10c8] sm:$0xff]  ;;  %v1949_v9 = vld [vmem:[#allocation5 + $0x10d0] sm:$0xff]  ;;  %v1950_v10 = vld [vmem:[#allocation5 + $0x10d8] sm:$0xff] }
 0x5dc   :  { %v7402_v55 = vadd.f32 %v4253_v47, %v1652_v5  ;;  %v1679_v8 = vsel %vm146_vm0, %v1675_v1, %v1676_v6  ;;  %v1667_v22 = vsel %vm125_vm1, %v1663_v19, %v1664_v21  ;;  %v6394_v47 = vpack.c.bf16 %v1944_v42, %v1943_v41  ;;  %v1947_v1 = vld [vmem:[#allocation5 + $0x10c0] sm:$0xff]  ;;  %v1966_v5 = vld [vmem:[#allocation5 + $0x1158] sm:$0xff] }
 0x5dd   :  { %5589 = vmatmul.mubr.msk.f32.vlgmr.msra.gmra.mrb[24].mxu1 %vm7176_vm3, %v1679_v8  ;;  %v6402_v18 = vpack.c.bf16 %v1948_v3, %v1947_v1  ;;  %v1984_v8 = vld [vmem:[#allocation5 + $0x11e8] sm:$0xff]  ;;  %v1951_v19 = vld [vmem:[#allocation5 + $0x10e0] sm:$0xff] }
 0x5de   :  { %v1665_v12 = vrot.slane %v7402_v55, 7  ;;  %v1677_v14 = vrot.slane %v7402_v55, 1  ;;  %6419 = vmatpush3.bf16.msra.mxu1 %v6416_v30  ;;  %v1941_v30 = vld [vmem:[#allocation5 + $0x1090] sm:$0xff]  ;;  %v4254_v41 = vld [vmem:[#allocation7 + $0x3] ss:$0 sm:$0xff] }
 0x5df   :  { %6421 = vmatprep.subr.bf16.mxu1 %v6420_v7  ;;  %v6390_v34 = vpack.c.bf16 %v1942_v32, %v1941_v30  ;;  %v2227_v30 = vld [vmem:[#allocation5 + $0x700] sm:$0xff]  ;;  %v2228_v32 = vld [vmem:[#allocation5 + $0x708] sm:$0xff] }
 0x5e0   :  { %v1669_v15 = vsel %vm125_vm1, %v1665_v12, %v1662_v11  ;;  %v1678_v16 = vsel %vm146_vm0, %v1676_v6, %v1677_v14  ;;  %v1681_v17 = vsel %vm146_vm0, %v1677_v14, %v1674_v48  ;;  %v1666_v23 = vsel %vm125_vm1, %v1664_v21, %v1665_v12  ;;  %v1982_v48 = vld [vmem:[#allocation5 + $0x11d8] sm:$0xff]  ;;  %v1983_v6 = vld [vmem:[#allocation5 + $0x11e0] sm:$0xff] }
 0x5e1   :  { %4255 = vmatmul.mubr.msk.f32.vlgmr.msra.gmra.mrb[48].mxu0 %vm7167_vm2, %v1669_v15  ;;  %5591 = vmatprep.mubr.f32.mxu1 %v1678_v16  ;;  %v6436_v43 = vpack.c.bf16 %v1982_v48, %v1981_v0  ;;  %v6440_v11 = vpack.c.bf16 %v1984_v8, %v1983_v6  ;;  %v6406_v12 = vpack.c.bf16 %v1950_v10, %v1949_v9  ;;  %v1967_v14 = vld [vmem:[#allocation5 + $0x1160] sm:$0xff]  ;;  %v1985_v15 = vld [vmem:[#allocation5 + $0x11f0] sm:$0xff] }
 0x5e2   :  { %1809 = vmatprep.mubr.f32.mxu0 %v7391_v57  ;;  %5592 = vmatmul.mubr.msk.f32.gmra.mrb[26].mxu1 %vm7194_vm4, %v1681_v17  ;;  %v1986_v17 = vld [vmem:[#allocation5 + $0x11f8] sm:$0xff] }
 0x5e3   :  { %6387 = vmatpush3.bf16.msra.mxu0 %v6386_v39  ;;  %6423 = vmatpush3.bf16.msra.mxu1 %v6420_v7  ;;  %v6404_v7 = vpack.c.bf16 %v1966_v5, %v1965_v4  ;;  %v1968_v39 = vld [vmem:[#allocation5 + $0x1168] sm:$0xff]  ;;  %v6444_v21 = vpack.c.bf16 %v1986_v17, %v1985_v15 }
 0x5e4   :  { %6389 = vmatprep.subr.bf16.mxu0 %v6388_v28  ;;  %6425 = vmatprep.subr.bf16.mxu1 %v6424_v33  ;;  %v6408_v16 = vpack.c.bf16 %v1968_v39, %v1967_v14  ;;  %v1954_v28 = vld [vmem:[#allocation5 + $0x10f8] sm:$0xff] }
 0x5e5   :  { %1810 = vmatmul.mubr.f32.gmra.mrb[50].mxu0 %v1668_v20  ;;  %v1952_v20 = vld [vmem:[#allocation5 + $0x10e8] sm:$0xff]  ;;  %v6414_v29 = vpack.c.bf16 %v1954_v28, %v1953_v27  ;;  %v2230_v14 = vld [vmem:[#allocation5 + $0x718] sm:$0xff] }
 0x5e6   :  { %1814 = vmatprep.mubr.f32.mxu0 %v7396_v2 }
 0x5e7   :  { %6391 = vmatpush3.bf16.msra.mxu0 %v6390_v34  ;;  %6427 = vmatpush3.bf16.msra.mxu1 %v6424_v33  ;;  %v2211_v33 = vld [vmem:[#allocation5 + $0x680] sm:$0xff]  ;;  %v6480_v34 = vpack.c.bf16 %v2228_v32, %v2227_v30 }
 0x5e8   :  { %6393 = vmatprep.subr.bf16.mxu0 %v6392_v40  ;;  %6429 = vmatprep.subr.bf16.mxu1 %v6428_v44  ;;  %v6448_v37 = vpack.c.bf16 %v2212_v35, %v2211_v33  ;;  %v2213_v33 = vld [vmem:[#allocation5 + $0x690] sm:$0xff]  ;;  %v2231_v35 = vld [vmem:[#allocation5 + $0x720] sm:$0xff] }
 0x5e9   :  { %4256 = vmatmul.mubr.msk.f32.gmra.mrb[52].mxu0 %vm7203_vm5, %v1667_v22  ;;  %v6410_v22 = vpack.c.bf16 %v1952_v20, %v1951_v19 }
 0x5ea   :  { %1819 = vmatprep.mubr.f32.mxu0 %v7402_v55 }
 0x5eb   :  { %6395 = vmatpush3.bf16.msra.mxu0 %v6394_v47  ;;  %6431 = vmatpush3.bf16.msra.mxu1 %v6428_v44 }
 0x5ec   :  { %6397 = vmatprep.subr.bf16.mxu0 %v6396_v54  ;;  %6433 = vmatprep.subr.bf16.mxu1 %v6432_v58 }
 0x5ed   :  { %1820 = vmatmul.mubr.f32.gmra.mrb[54].mxu0 %v1666_v23  ;;  %v1969_v23 = vld [vmem:[#allocation5 + $0x1170] sm:$0xff] }
 0x5ee   :  { %v6412_v26 = vpack.c.bf16 %v1970_v24, %v1969_v23  ;;  %v2196_v23 = vld [vmem:[#allocation5 + $0x608] sm:$0xff] }
 0x5ef   :  { %6399 = vmatpush3.bf16.msra.mxu0 %v6398_v59  ;;  %6435 = vmatpush3.bf16.msra.mxu1 %v6432_v58 }
 0x5f0   :  { %6401 = vmatprep.subr.bf16.mxu0 %v6400_v53  ;;  %6437 = vmatprep.subr.bf16.mxu1 %v6436_v43 }
 0x5f3   :  { %6403 = vmatpush3.bf16.msra.mxu0 %v6402_v18  ;;  %6439 = vmatpush3.bf16.msra.mxu1 %v6436_v43 }
 0x5f4   :  { %6405 = vmatprep.subr.bf16.mxu0 %v6404_v7  ;;  %6441 = vmatprep.subr.bf16.mxu1 %v6440_v11 }
 0x5f7   :  { %6407 = vmatpush3.bf16.msra.mxu0 %v6406_v12  ;;  %6443 = vmatpush3.bf16.msra.mxu1 %v6440_v11  ;;  %v2229_v12 = vld [vmem:[#allocation5 + $0x710] sm:$0xff] }
 0x5f8   :  { %6409 = vmatprep.subr.bf16.mxu0 %v6408_v16  ;;  %6445 = vmatprep.subr.bf16.mxu1 %v6444_v21  ;;  %v6484_v17 = vpack.c.bf16 %v2230_v14, %v2229_v12  ;;  %v2222_v12 = vld [vmem:[#allocation5 + $0x6d8] sm:$0xff]  ;;  %v2239_v14 = vld [vmem:[#allocation5 + $0x760] sm:$0xff] }
 0x5fb   :  { %6411 = vmatpush3.bf16.msra.mxu0 %v6410_v22  ;;  %6447 = vmatpush3.bf16.msra.mxu1 %v6444_v21  ;;  %v2195_v22 = vld [vmem:[#allocation5 + $0x600] sm:$0xff] }
 0x5fc   :  { %6413 = vmatprep.subr.bf16.mxu0 %v6412_v26  ;;  %6481 = vmatprep.subr.bf16.mxu1 %v6480_v34  ;;  %v6450_v27 = vpack.c.bf16 %v2196_v23, %v2195_v22  ;;  %v2224_v22 = vld [vmem:[#allocation5 + $0x6e8] sm:$0xff]  ;;  %v2241_v23 = vld [vmem:[#allocation5 + $0x770] sm:$0xff] }
 0x5ff   :  { %6415 = vmatpush3.bf16.msra.mxu0 %v6414_v29 }
 0x600   :  { %6449 = vmatprep.subr.bf16.mxu0 %v6448_v37 }
 0x6b0   :  { %v5590_v38 = vpop.f32.mrb[24].mxu1 }
 0x6b1   :  { %v1891_v40 = vpop.f32.mrb[25].mxu1 }
 0x6b4   :  { %v4720_v52 = vpop.f32.mrb[48].mxu0 }
 0x6b5   :  { %v4721_v42 = vpop.f32.mrb[49].mxu0  ;;  %v5593_v44 = vpop.f32.mrb[26].mxu1 }
 0x6b6   :  { %v4722_v47 = vadd.f32 %v4721_v42, %v4720_v52  ;;  %v1901_v49 = vpop.f32.mrb[27].mxu1  ;;  %v2198_v52 = vld [vmem:[#allocation5 + $0x618] sm:$0xff] }
 0x6b8   :  { %v1807_v50 = vadd.f32 %v4722_v47, %v4254_v41  ;;  %v4723_v51 = vpop.f32.mrb[50].mxu0  ;;  %v2216_v47 = vld [vmem:[#allocation5 + $0x6a8] sm:$0xff] }
 0x6b9   :  { %v4724_v54 = vpop.f32.mrb[51].mxu0 }
 0x6ba   :  { %v4725_v56 = vadd.f32 %v4724_v54, %v4723_v51  ;;  %v1892_v31 = vadd.f32 %v1891_v40, %v1807_v50  ;;  %v2197_v40 = vld [vmem:[#allocation5 + $0x610] sm:$0xff]  ;;  %v2234_v51 = vld [vmem:[#allocation5 + $0x738] sm:$0xff]  ;;  %v2199_v54 = vld [vmem:[#allocation5 + $0x620] sm:$0xff] }
 0x6bb   :  { %v6454_v42 = vpack.c.bf16 %v2198_v52, %v2197_v40  ;;  %v2479_v40 = vld [vmem:[#allocation5 + $0x1300] sm:$0xff]  ;;  %v2480_v52 = vld [vmem:[#allocation5 + $0x1308] sm:$0xff] }
 0x6bc   :  { %v1812_v13 = vadd.f32 %v4725_v56, %v4254_v41  ;;  %v4726_v58 = vpop.f32.mrb[52].mxu0  ;;  %v1910_v59 = vmax.f32 %v1892_v31, 0.0  ;;  %v2200_v56 = vld [vmem:[#allocation5 + $0x628] sm:$0xff] }
 0x6bd   :  { %v4727_v61 = vpop.f32.mrb[53].mxu0 }
 0x6be   :  { %v1897_v62 = vadd.f32 %v5590_v38, %v1812_v13  ;;  %v4728_v0 = vadd.f32 %v4727_v61, %v4726_v58  ;;  %2051 = vmatprep.mubr.f32.mxu0 %v1910_v59  ;;  %v1914_v3 = vrot.slane %v1910_v59, 7  ;;  %v1926_v18 = vrot.slane %v1910_v59, 1  ;;  %v2232_v38 = vld [vmem:[#allocation5 + $0x728] sm:$0xff]  ;;  %v2217_v58 = vld [vmem:[#allocation5 + $0x6b0] sm:$0xff]  ;;  %v2218_v59 = vld [vmem:[#allocation5 + $0x6b8] sm:$0xff] }
 0x6bf   :  { %v6458_v13 = vpack.c.bf16 %v2200_v56, %v2199_v54  ;;  %v2235_v61 = vld [vmem:[#allocation5 + $0x740] sm:$0xff] }
 0x6c0   :  { %v1911_v53 = vmax.f32 %v1897_v62, 0.0  ;;  %v1817_v48 = vadd.f32 %v4728_v0, %v4254_v41  ;;  %v4729_v1 = vpop.f32.mrb[54].mxu0  ;;  %v6460_v62 = vpack.c.bf16 %v2218_v59, %v2217_v58  ;;  %v2236_v0 = vld [vmem:[#allocation5 + $0x748] sm:$0xff] }
 0x6c1   :  { %v4730_v43 = vpop.f32.mrb[55].mxu0 }
 0x6c2   :  { %v1902_v4 = vadd.f32 %v1901_v49, %v1817_v48  ;;  %v4731_v5 = vadd.f32 %v4730_v43, %v4729_v1  ;;  %v1927_v6 = vrot.slane %v1911_v53, 1  ;;  %v1915_v7 = vrot.slane %v1911_v53, 7  ;;  %v2233_v49 = vld [vmem:[#allocation5 + $0x730] sm:$0xff]  ;;  %v2202_v48 = vld [vmem:[#allocation5 + $0x638] sm:$0xff]  ;;  %v2219_v43 = vld [vmem:[#allocation5 + $0x6c0] sm:$0xff] }
 0x6c3   :  { %v6492_v31 = vpack.c.bf16 %v2234_v51, %v2233_v49  ;;  %v6496_v1 = vpack.c.bf16 %v2236_v0, %v2235_v61  ;;  %v4263_v61 = vld [vmem:[#allocation7 + $0xb] ss:$0 sm:$0xff] }
 0x6c4   :  { %v1912_v8 = vmax.f32 %v1902_v4, 0.0  ;;  %v1822_v9 = vadd.f32 %v4731_v5, %v4254_v41  ;;  %v1932_v10 = vsel %vm146_vm0, %v1926_v18, %v1927_v6  ;;  %v1920_v11 = vsel %vm125_vm1, %v1914_v3, %v1915_v7  ;;  %v2237_v5 = vld [vmem:[#allocation5 + $0x750] sm:$0xff] }
 0x6c5   :  { %5626 = vmatprep.mubr.f32.mxu1 %v1932_v10  ;;  %v6488_v41 = vpack.c.bf16 %v2232_v38, %v2231_v35  ;;  %v2209_v35 = vld [vmem:[#allocation5 + $0x670] sm:$0xff] }
 0x6c6   :  { %v1928_v39 = vrot.slane %v1912_v8, 1  ;;  %v1907_v15 = vadd.f32 %v5593_v44, %v1822_v9  ;;  %v1916_v16 = vrot.slane %v1912_v8, 7  ;;  %v2215_v44 = vld [vmem:[#allocation5 + $0x6a0] sm:$0xff]  ;;  %v2204_v9 = vld [vmem:[#allocation5 + $0x648] sm:$0xff] }
 0x6c7   :  { %v6456_v50 = vpack.c.bf16 %v2216_v47, %v2215_v44  ;;  %v2464_v44 = vld [vmem:[#allocation5 + $0x1288] sm:$0xff] }
 0x6c8   :  { %v1913_v19 = vmax.f32 %v1907_v15, 0.0  ;;  %v1931_v20 = vsel %vm146_vm0, %v1927_v6, %v1928_v39  ;;  %v1919_v21 = vsel %vm125_vm1, %v1915_v7, %v1916_v16  ;;  %v2238_v6 = vld [vmem:[#allocation5 + $0x758] sm:$0xff]  ;;  %v2203_v7 = vld [vmem:[#allocation5 + $0x640] sm:$0xff]  ;;  %v2240_v15 = vld [vmem:[#allocation5 + $0x768] sm:$0xff] }
 0x6c9   :  { %5627 = vmatmul.mubr.msk.f32.vlgmr.msra.gmra.mrb[28].mxu1 %vm7176_vm3, %v1931_v20  ;;  %v6466_v10 = vpack.c.bf16 %v2204_v9, %v2203_v7 }
 0x6ca   :  { %v1917_v24 = vrot.slane %v1913_v19, 7  ;;  %v1929_v26 = vrot.slane %v1913_v19, 1  ;;  %6483 = vmatpush3.bf16.msra.mxu1 %v6480_v34  ;;  %v2214_v34 = vld [vmem:[#allocation5 + $0x698] sm:$0xff] }
 0x6cb   :  { %6485 = vmatprep.subr.bf16.mxu1 %v6484_v17  ;;  %v6452_v37 = vpack.c.bf16 %v2214_v34, %v2213_v33  ;;  %v2226_v33 = vld [vmem:[#allocation5 + $0x6f8] sm:$0xff] }
 0x6cc   :  { %v1921_v28 = vsel %vm125_vm1, %v1917_v24, %v1914_v3  ;;  %v1930_v29 = vsel %vm146_vm0, %v1928_v39, %v1929_v26  ;;  %v1933_v30 = vsel %vm146_vm0, %v1929_v26, %v1926_v18  ;;  %v1918_v32 = vsel %vm125_vm1, %v1916_v16, %v1917_v24  ;;  %v2220_v18 = vld [vmem:[#allocation5 + $0x6c8] sm:$0xff]  ;;  %v2205_v16 = vld [vmem:[#allocation5 + $0x650] sm:$0xff]  ;;  %v2242_v26 = vld [vmem:[#allocation5 + $0x778] sm:$0xff] }
 0x6cd   :  { %4259 = vmatmul.mubr.msk.f32.vlgmr.msra.gmra.mrb[56].mxu0 %vm7167_vm2, %v1921_v28  ;;  %5629 = vmatprep.mubr.f32.mxu1 %v1930_v29  ;;  %v6464_v4 = vpack.c.bf16 %v2220_v18, %v2219_v43  ;;  %v2208_v28 = vld [vmem:[#allocation5 + $0x668] sm:$0xff]  ;;  %v6508_v29 = vpack.c.bf16 %v2242_v26, %v2241_v23 }
 0x6ce   :  { %2056 = vmatprep.mubr.f32.mxu0 %v1911_v53  ;;  %5630 = vmatmul.mubr.msk.f32.gmra.mrb[30].mxu1 %vm7194_vm4, %v1933_v30  ;;  %v2201_v53 = vld [vmem:[#allocation5 + $0x630] sm:$0xff] }
 0x6cf   :  { %6451 = vmatpush3.bf16.msra.mxu0 %v6450_v27  ;;  %6487 = vmatpush3.bf16.msra.mxu1 %v6484_v17  ;;  %v6462_v3 = vpack.c.bf16 %v2202_v48, %v2201_v53  ;;  %v2206_v17 = vld [vmem:[#allocation5 + $0x658] sm:$0xff]  ;;  %v2207_v27 = vld [vmem:[#allocation5 + $0x660] sm:$0xff] }
 0x6d0   :  { %6453 = vmatprep.subr.bf16.mxu0 %v6452_v37  ;;  %6489 = vmatprep.subr.bf16.mxu1 %v6488_v41  ;;  %v6470_v20 = vpack.c.bf16 %v2206_v17, %v2205_v16  ;;  %v6474_v30 = vpack.c.bf16 %v2208_v28, %v2207_v27  ;;  %v2210_v37 = vld [vmem:[#allocation5 + $0x678] sm:$0xff] }
 0x6d1   :  { %2057 = vmatmul.mubr.f32.gmra.mrb[58].mxu0 %v1920_v11  ;;  %v2221_v11 = vld [vmem:[#allocation5 + $0x6d0] sm:$0xff]  ;;  %v6478_v38 = vpack.c.bf16 %v2210_v37, %v2209_v35 }
 0x6d2   :  { %2061 = vmatprep.mubr.f32.mxu0 %v1912_v8  ;;  %v6500_v8 = vpack.c.bf16 %v2238_v6, %v2237_v5  ;;  %v6468_v39 = vpack.c.bf16 %v2222_v12, %v2221_v11  ;;  %v2465_v37 = vld [vmem:[#allocation5 + $0x1290] sm:$0xff] }
 0x6d3   :  { %6455 = vmatpush3.bf16.msra.mxu0 %v6454_v42  ;;  %6491 = vmatpush3.bf16.msra.mxu1 %v6488_v41  ;;  %v2463_v41 = vld [vmem:[#allocation5 + $0x1280] sm:$0xff]  ;;  %v6544_v42 = vpack.c.bf16 %v2480_v52, %v2479_v40 }
 0x6d4   :  { %6457 = vmatprep.subr.bf16.mxu0 %v6456_v50  ;;  %6493 = vmatprep.subr.bf16.mxu1 %v6492_v31  ;;  %v6512_v47 = vpack.c.bf16 %v2464_v44, %v2463_v41  ;;  %v2483_v40 = vld [vmem:[#allocation5 + $0x1320] sm:$0xff]  ;;  %v2484_v41 = vld [vmem:[#allocation5 + $0x1328] sm:$0xff]  ;;  %v2450_v44 = vld [vmem:[#allocation5 + $0x1218] sm:$0xff] }
 0x6d5   :  { %4260 = vmatmul.mubr.msk.f32.gmra.mrb[60].mxu0 %vm7203_vm5, %v1919_v21  ;;  %v2223_v21 = vld [vmem:[#allocation5 + $0x6e0] sm:$0xff] }
 0x6d6   :  { %2066 = vmatprep.mubr.f32.mxu0 %v1913_v19  ;;  %v6504_v19 = vpack.c.bf16 %v2240_v15, %v2239_v14  ;;  %v6472_v24 = vpack.c.bf16 %v2224_v22, %v2223_v21  ;;  %v2482_v15 = vld [vmem:[#allocation5 + $0x1318] sm:$0xff]  ;;  %v2447_v21 = vld [vmem:[#allocation5 + $0x1200] sm:$0xff]  ;;  %v2448_v22 = vld [vmem:[#allocation5 + $0x1208] sm:$0xff] }
 0x6d7   :  { %6459 = vmatpush3.bf16.msra.mxu0 %v6458_v13  ;;  %6495 = vmatpush3.bf16.msra.mxu1 %v6492_v31 }
 0x6d8   :  { %6461 = vmatprep.subr.bf16.mxu0 %v6460_v62  ;;  %6497 = vmatprep.subr.bf16.mxu1 %v6496_v1 }
 0x6d9   :  { %2067 = vmatmul.mubr.f32.gmra.mrb[62].mxu0 %v1918_v32  ;;  %v2225_v32 = vld [vmem:[#allocation5 + $0x6f0] sm:$0xff] }
 0x6da   :  { %v6476_v34 = vpack.c.bf16 %v2226_v33, %v2225_v32 }
 0x6db   :  { %6463 = vmatpush3.bf16.msra.mxu0 %v6462_v3  ;;  %6499 = vmatpush3.bf16.msra.mxu1 %v6496_v1 }
 0x6dc   :  { %6465 = vmatprep.subr.bf16.mxu0 %v6464_v4  ;;  %6501 = vmatprep.subr.bf16.mxu1 %v6500_v8 }
 0x6df   :  { %6467 = vmatpush3.bf16.msra.mxu0 %v6466_v10  ;;  %6503 = vmatpush3.bf16.msra.mxu1 %v6500_v8 }
 0x6e0   :  { %6469 = vmatprep.subr.bf16.mxu0 %v6468_v39  ;;  %6505 = vmatprep.subr.bf16.mxu1 %v6504_v19  ;;  %v2481_v39 = vld [vmem:[#allocation5 + $0x1310] sm:$0xff] }
 0x6e3   :  { %6471 = vmatpush3.bf16.msra.mxu0 %v6470_v20  ;;  %6507 = vmatpush3.bf16.msra.mxu1 %v6504_v19  ;;  %v6548_v19 = vpack.c.bf16 %v2482_v15, %v2481_v39  ;;  %v2473_v15 = vld [vmem:[#allocation5 + $0x12d0] sm:$0xff] }
 0x6e4   :  { %6473 = vmatprep.subr.bf16.mxu0 %v6472_v24  ;;  %6509 = vmatprep.subr.bf16.mxu1 %v6508_v29 }
 0x6e7   :  { %6475 = vmatpush3.bf16.msra.mxu0 %v6474_v30  ;;  %6511 = vmatpush3.bf16.msra.mxu1 %v6508_v29 }
 0x6e8   :  { %6477 = vmatprep.subr.bf16.mxu0 %v6476_v34  ;;  %6545 = vmatprep.subr.bf16.mxu1 %v6544_v42 }
 0x6eb   :  { %6479 = vmatpush3.bf16.msra.mxu0 %v6478_v38  ;;  %v2466_v38 = vld [vmem:[#allocation5 + $0x1298] sm:$0xff] }
 0x6ec   :  { %6513 = vmatprep.subr.bf16.mxu0 %v6512_v47  ;;  %v6516_v52 = vpack.c.bf16 %v2466_v38, %v2465_v37  ;;  %v6552_v47 = vpack.c.bf16 %v2484_v41, %v2483_v40  ;;  %v2478_v37 = vld [vmem:[#allocation5 + $0x12f8] sm:$0xff]  ;;  %v2461_v40 = vld [vmem:[#allocation5 + $0x1270] sm:$0xff] }
 0x79c   :  { %v5628_v49 = vpop.f32.mrb[28].mxu1 }
 0x79d   :  { %v2138_v50 = vpop.f32.mrb[29].mxu1 }
 0x7a0   :  { %v4784_v51 = vpop.f32.mrb[56].mxu0 }
 0x7a1   :  { %v4785_v54 = vpop.f32.mrb[57].mxu0  ;;  %v5631_v56 = vpop.f32.mrb[30].mxu1 }
 0x7a2   :  { %v4786_v31 = vadd.f32 %v4785_v54, %v4784_v51  ;;  %v2148_v13 = vpop.f32.mrb[31].mxu1  ;;  %v2468_v51 = vld [vmem:[#allocation5 + $0x12a8] sm:$0xff]  ;;  %v2485_v54 = vld [vmem:[#allocation5 + $0x1330] sm:$0xff] }
 0x7a4   :  { %v2139_v58 = vadd.f32 %v4786_v31, %v2138_v50  ;;  %v4787_v59 = vpop.f32.mrb[58].mxu0  ;;  %v2467_v50 = vld [vmem:[#allocation5 + $0x12a0] sm:$0xff]  ;;  %v2486_v31 = vld [vmem:[#allocation5 + $0x1338] sm:$0xff] }
 0x7a5   :  { %v4788_v62 = vpop.f32.mrb[59].mxu0 }
 0x7a6   :  { %v2157_v0 = vadd.f32 %v2139_v58, %v7387_v25  ;;  %v4789_v53 = vadd.f32 %v4788_v62, %v4787_v59  ;;  %v2452_v58 = vld [vmem:[#allocation5 + $0x1228] sm:$0xff]  ;;  %v6556_v59 = vpack.c.bf16 %v2486_v31, %v2485_v54  ;;  %v2469_v62 = vld [vmem:[#allocation5 + $0x12b0] sm:$0xff] }
 0x7a8   :  { %v7459_v48 = vadd.f32 %v4263_v61, %v2157_v0  ;;  %v2144_v1 = vadd.f32 %v5628_v49, %v4789_v53  ;;  %v4790_v3 = vpop.f32.mrb[60].mxu0  ;;  %v2470_v0 = vld [vmem:[#allocation5 + $0x12b8] sm:$0xff]  ;;  %v2487_v53 = vld [vmem:[#allocation5 + $0x1340] sm:$0xff] }
 0x7a9   :  { %v4791_v43 = vpop.f32.mrb[61].mxu0 }
 0x7aa   :  { %v2158_v18 = vadd.f32 %v2144_v1, %v7391_v57  ;;  %v4792_v4 = vadd.f32 %v4791_v43, %v4790_v3  ;;  %2312 = vmatprep.mubr.f32.mxu0 %v7459_v48  ;;  %v2182_v25 = vrot.slane %v7459_v48, 1  ;;  %v2170_v23 = vrot.slane %v7459_v48, 7  ;;  %v2488_v3 = vld [vmem:[#allocation5 + $0x1348] sm:$0xff]  ;;  %v2453_v43 = vld [vmem:[#allocation5 + $0x1230] sm:$0xff] }
 0x7ab   :  { %v6524_v1 = vpack.c.bf16 %v2470_v0, %v2469_v62 }
 0x7ac   :  { %v7463_v5 = vadd.f32 %v4263_v61, %v2158_v18  ;;  %v2149_v6 = vadd.f32 %v4792_v4, %v2148_v13  ;;  %v4793_v7 = vpop.f32.mrb[62].mxu0  ;;  %v2451_v13 = vld [vmem:[#allocation5 + $0x1220] sm:$0xff]  ;;  %v2454_v18 = vld [vmem:[#allocation5 + $0x1238] sm:$0xff]  ;;  %v6560_v4 = vpack.c.bf16 %v2488_v3, %v2487_v53 }
 0x7ad   :  { %v4794_v8 = vpop.f32.mrb[63].mxu0 }
 0x7ae   :  { %v2159_v9 = vadd.f32 %v2149_v6, %v7396_v2  ;;  %v4795_v10 = vadd.f32 %v4794_v8, %v4793_v7  ;;  %v2183_v11 = vrot.slane %v7463_v5, 1  ;;  %v2171_v30 = vrot.slane %v7463_v5, 7  ;;  %v2471_v7 = vld [vmem:[#allocation5 + $0x12c0] sm:$0xff]  ;;  %v2472_v8 = vld [vmem:[#allocation5 + $0x12c8] sm:$0xff] }
 0x7af   :  { %v6526_v6 = vpack.c.bf16 %v2454_v18, %v2453_v43 }
 0x7b0   :  { %v7468_v12 = vadd.f32 %v4263_v61, %v2159_v9  ;;  %v2154_v14 = vadd.f32 %v5631_v56, %v4795_v10  ;;  %v2188_v57 = vsel %vm146_vm0, %v2182_v25, %v2183_v11  ;;  %v2176_v32 = vsel %vm125_vm1, %v2170_v23, %v2171_v30  ;;  %v2489_v9 = vld [vmem:[#allocation5 + $0x1350] sm:$0xff] }
 0x7b1   :  { %5664 = vmatprep.mubr.f32.mxu1 %v2188_v57  ;;  %v6520_v56 = vpack.c.bf16 %v2468_v51, %v2467_v50  ;;  %v6528_v10 = vpack.c.bf16 %v2472_v8, %v2471_v7  ;;  %v2720_v50 = vld [vmem:[#allocation5 + $0x808] sm:$0xff] }
 0x7b2   :  { %v2160_v16 = vadd.f32 %v2154_v14, %v7402_v55  ;;  %v2184_v17 = vrot.slane %v7468_v12, 1  ;;  %v6514_v55 = vpack.c.bf16 %v2448_v22, %v2447_v21  ;;  %v2172_v33 = vrot.slane %v7468_v12, 7  ;;  %v2456_v14 = vld [vmem:[#allocation5 + $0x1248] sm:$0xff]  ;;  %v2457_v21 = vld [vmem:[#allocation5 + $0x1250] sm:$0xff]  ;;  %v2458_v22 = vld [vmem:[#allocation5 + $0x1258] sm:$0xff] }
 0x7b4   :  { %v7474_v2 = vadd.f32 %v4263_v61, %v2160_v16  ;;  %v2187_v20 = vsel %vm146_vm0, %v2183_v11, %v2184_v17  ;;  %v2175_v34 = vsel %vm125_vm1, %v2171_v30, %v2172_v33  ;;  %v6522_v61 = vpack.c.bf16 %v2452_v58, %v2451_v13  ;;  %v2455_v11 = vld [vmem:[#allocation5 + $0x1240] sm:$0xff]  ;;  %v2474_v16 = vld [vmem:[#allocation5 + $0x12d8] sm:$0xff] }
 0x7b5   :  { %5665 = vmatmul.mubr.msk.f32.vlgmr.msra.gmra.mrb[32].mxu1 %vm7176_vm3, %v2187_v20  ;;  %v6530_v39 = vpack.c.bf16 %v2456_v14, %v2455_v11  ;;  %v2492_v20 = vld [vmem:[#allocation5 + $0x1368] sm:$0xff]  ;;  %v2459_v30 = vld [vmem:[#allocation5 + $0x1260] sm:$0xff] }
 0x7b6   :  { %v2173_v24 = vrot.slane %v7474_v2, 7  ;;  %v2185_v26 = vrot.slane %v7474_v2, 1  ;;  %6547 = vmatpush3.bf16.msra.mxu1 %v6544_v42  ;;  %v2449_v42 = vld [vmem:[#allocation5 + $0x1210] sm:$0xff]  ;;  %v4264_v13 = vld [vmem:[#allocation7 + $0x4] ss:$0 sm:$0xff] }
 0x7b7   :  { %6549 = vmatprep.subr.bf16.mxu1 %v6548_v19  ;;  %v6518_v49 = vpack.c.bf16 %v2450_v44, %v2449_v42  ;;  %v2735_v42 = vld [vmem:[#allocation5 + $0x880] sm:$0xff]  ;;  %v2736_v44 = vld [vmem:[#allocation5 + $0x888] sm:$0xff] }
 0x7b8   :  { %v2177_v27 = vsel %vm125_vm1, %v2173_v24, %v2170_v23  ;;  %v2186_v28 = vsel %vm146_vm0, %v2184_v17, %v2185_v26  ;;  %v2189_v29 = vsel %vm146_vm0, %v2185_v26, %v2182_v25  ;;  %v2174_v35 = vsel %vm125_vm1, %v2172_v33, %v2173_v24  ;;  %v2490_v25 = vld [vmem:[#allocation5 + $0x1358] sm:$0xff]  ;;  %v2491_v17 = vld [vmem:[#allocation5 + $0x1360] sm:$0xff] }
 0x7b9   :  { %4265 = vmatmul.mubr.msk.f32.vlgmr.msra.gmra.mrb[64].mxu0 %vm7167_vm2, %v2177_v27  ;;  %5667 = vmatprep.mubr.f32.mxu1 %v2186_v28  ;;  %v6564_v57 = vpack.c.bf16 %v2490_v25, %v2489_v9  ;;  %v6568_v23 = vpack.c.bf16 %v2492_v20, %v2491_v17  ;;  %v6534_v24 = vpack.c.bf16 %v2458_v22, %v2457_v21  ;;  %v2475_v26 = vld [vmem:[#allocation5 + $0x12e0] sm:$0xff]  ;;  %v2493_v27 = vld [vmem:[#allocation5 + $0x1370] sm:$0xff] }
 0x7ba   :  { %2317 = vmatprep.mubr.f32.mxu0 %v7463_v5  ;;  %5668 = vmatmul.mubr.msk.f32.gmra.mrb[34].mxu1 %vm7194_vm4, %v2189_v29  ;;  %v2494_v29 = vld [vmem:[#allocation5 + $0x1378] sm:$0xff] }
 0x7bb   :  { %6515 = vmatpush3.bf16.msra.mxu0 %v6514_v55  ;;  %6551 = vmatpush3.bf16.msra.mxu1 %v6548_v19  ;;  %v6532_v19 = vpack.c.bf16 %v2474_v16, %v2473_v15  ;;  %v2476_v55 = vld [vmem:[#allocation5 + $0x12e8] sm:$0xff]  ;;  %v6572_v33 = vpack.c.bf16 %v2494_v29, %v2493_v27 }
 0x7bc   :  { %6517 = vmatprep.subr.bf16.mxu0 %v6516_v52  ;;  %6553 = vmatprep.subr.bf16.mxu1 %v6552_v47  ;;  %v6536_v28 = vpack.c.bf16 %v2476_v55, %v2475_v26  ;;  %v2462_v52 = vld [vmem:[#allocation5 + $0x1278] sm:$0xff] }
 0x7bd   :  { %2318 = vmatmul.mubr.f32.gmra.mrb[66].mxu0 %v2176_v32  ;;  %v2460_v32 = vld [vmem:[#allocation5 + $0x1268] sm:$0xff]  ;;  %v6542_v41 = vpack.c.bf16 %v2462_v52, %v2461_v40  ;;  %v2738_v26 = vld [vmem:[#allocation5 + $0x898] sm:$0xff] }
 0x7be   :  { %2322 = vmatprep.mubr.f32.mxu0 %v7468_v12 }
 0x7bf   :  { %6519 = vmatpush3.bf16.msra.mxu0 %v6518_v49  ;;  %6555 = vmatpush3.bf16.msra.mxu1 %v6552_v47  ;;  %v2719_v47 = vld [vmem:[#allocation5 + $0x800] sm:$0xff]  ;;  %v6608_v49 = vpack.c.bf16 %v2736_v44, %v2735_v42 }
 0x7c0   :  { %6521 = vmatprep.subr.bf16.mxu0 %v6520_v56  ;;  %6557 = vmatprep.subr.bf16.mxu1 %v6556_v59  ;;  %v6576_v51 = vpack.c.bf16 %v2720_v50, %v2719_v47  ;;  %v2721_v47 = vld [vmem:[#allocation5 + $0x810] sm:$0xff]  ;;  %v2739_v50 = vld [vmem:[#allocation5 + $0x8a0] sm:$0xff] }
 0x7c1   :  { %4266 = vmatmul.mubr.msk.f32.gmra.mrb[68].mxu0 %vm7203_vm5, %v2175_v34  ;;  %v6538_v34 = vpack.c.bf16 %v2460_v32, %v2459_v30 }
 0x7c2   :  { %2327 = vmatprep.mubr.f32.mxu0 %v7474_v2 }
 0x7c3   :  { %6523 = vmatpush3.bf16.msra.mxu0 %v6522_v61  ;;  %6559 = vmatpush3.bf16.msra.mxu1 %v6556_v59 }
 0x7c4   :  { %6525 = vmatprep.subr.bf16.mxu0 %v6524_v1  ;;  %6561 = vmatprep.subr.bf16.mxu1 %v6560_v4 }
 0x7c5   :  { %2328 = vmatmul.mubr.f32.gmra.mrb[70].mxu0 %v2174_v35  ;;  %v2477_v35 = vld [vmem:[#allocation5 + $0x12f0] sm:$0xff] }
 0x7c6   :  { %v6540_v38 = vpack.c.bf16 %v2478_v37, %v2477_v35  ;;  %v2704_v35 = vld [vmem:[#allocation5 + $0x788] sm:$0xff] }
 0x7c7   :  { %6527 = vmatpush3.bf16.msra.mxu0 %v6526_v6  ;;  %6563 = vmatpush3.bf16.msra.mxu1 %v6560_v4 }
 0x7c8   :  { %6529 = vmatprep.subr.bf16.mxu0 %v6528_v10  ;;  %6565 = vmatprep.subr.bf16.mxu1 %v6564_v57 }
 0x7cb   :  { %6531 = vmatpush3.bf16.msra.mxu0 %v6530_v39  ;;  %6567 = vmatpush3.bf16.msra.mxu1 %v6564_v57 }
 0x7cc   :  { %6533 = vmatprep.subr.bf16.mxu0 %v6532_v19  ;;  %6569 = vmatprep.subr.bf16.mxu1 %v6568_v23 }
 0x7cf   :  { %6535 = vmatpush3.bf16.msra.mxu0 %v6534_v24  ;;  %6571 = vmatpush3.bf16.msra.mxu1 %v6568_v23  ;;  %v2737_v24 = vld [vmem:[#allocation5 + $0x890] sm:$0xff] }
 0x7d0   :  { %6537 = vmatprep.subr.bf16.mxu0 %v6536_v28  ;;  %6573 = vmatprep.subr.bf16.mxu1 %v6572_v33  ;;  %v6612_v29 = vpack.c.bf16 %v2738_v26, %v2737_v24  ;;  %v2730_v24 = vld [vmem:[#allocation5 + $0x858] sm:$0xff]  ;;  %v2747_v26 = vld [vmem:[#allocation5 + $0x8e0] sm:$0xff] }
 0x7d3   :  { %6539 = vmatpush3.bf16.msra.mxu0 %v6538_v34  ;;  %6575 = vmatpush3.bf16.msra.mxu1 %v6572_v33  ;;  %v2703_v34 = vld [vmem:[#allocation5 + $0x780] sm:$0xff] }
 0x7d4   :  { %6541 = vmatprep.subr.bf16.mxu0 %v6540_v38  ;;  %6609 = vmatprep.subr.bf16.mxu1 %v6608_v49  ;;  %v6578_v40 = vpack.c.bf16 %v2704_v35, %v2703_v34  ;;  %v2732_v34 = vld [vmem:[#allocation5 + $0x868] sm:$0xff]  ;;  %v2749_v35 = vld [vmem:[#allocation5 + $0x8f0] sm:$0xff] }
 0x7d7   :  { %6543 = vmatpush3.bf16.msra.mxu0 %v6542_v41 }
 0x7d8   :  { %6577 = vmatprep.subr.bf16.mxu0 %v6576_v51 }
 0x888   :  { %v5666_v54 = vpop.f32.mrb[32].mxu1 }
 0x889   :  { %v2399_v56 = vpop.f32.mrb[33].mxu1 }
 0x88c   :  { %v4848_v31 = vpop.f32.mrb[64].mxu0 }
 0x88d   :  { %v4849_v58 = vpop.f32.mrb[65].mxu0  ;;  %v5669_v59 = vpop.f32.mrb[34].mxu1 }
 0x88e   :  { %v4850_v61 = vadd.f32 %v4849_v58, %v4848_v31  ;;  %v2409_v62 = vpop.f32.mrb[35].mxu1  ;;  %v2706_v31 = vld [vmem:[#allocation5 + $0x798] sm:$0xff] }
 0x890   :  { %v2315_v0 = vadd.f32 %v4850_v61, %v4264_v13  ;;  %v4851_v53 = vpop.f32.mrb[66].mxu0  ;;  %v2724_v61 = vld [vmem:[#allocation5 + $0x828] sm:$0xff] }
 0x891   :  { %v4852_v1 = vpop.f32.mrb[67].mxu0 }
 0x892   :  { %v4853_v3 = vadd.f32 %v4852_v1, %v4851_v53  ;;  %v2400_v43 = vadd.f32 %v2399_v56, %v2315_v0  ;;  %v2705_v56 = vld [vmem:[#allocation5 + $0x790] sm:$0xff]  ;;  %v2742_v53 = vld [vmem:[#allocation5 + $0x8b8] sm:$0xff]  ;;  %v2707_v1 = vld [vmem:[#allocation5 + $0x7a0] sm:$0xff] }
 0x893   :  { %v6582_v58 = vpack.c.bf16 %v2706_v31, %v2705_v56  ;;  %v2987_v56 = vld [vmem:[#allocation5 + $0x1480] sm:$0xff]  ;;  %v2988_v31 = vld [vmem:[#allocation5 + $0x1488] sm:$0xff] }
 0x894   :  { %v2320_v18 = vadd.f32 %v4853_v3, %v4264_v13  ;;  %v4854_v4 = vpop.f32.mrb[68].mxu0  ;;  %v2418_v6 = vmax.f32 %v2400_v43, 0.0  ;;  %v2708_v3 = vld [vmem:[#allocation5 + $0x7a8] sm:$0xff] }
 0x895   :  { %v4855_v7 = vpop.f32.mrb[69].mxu0 }
 0x896   :  { %v2405_v8 = vadd.f32 %v5666_v54, %v2320_v18  ;;  %v4856_v9 = vadd.f32 %v4855_v7, %v4854_v4  ;;  %2559 = vmatprep.mubr.f32.mxu0 %v2418_v6  ;;  %v2422_v14 = vrot.slane %v2418_v6, 7  ;;  %v2434_v39 = vrot.slane %v2418_v6, 1  ;;  %v2740_v54 = vld [vmem:[#allocation5 + $0x8a8] sm:$0xff]  ;;  %v2725_v4 = vld [vmem:[#allocation5 + $0x830] sm:$0xff]  ;;  %v2726_v6 = vld [vmem:[#allocation5 + $0x838] sm:$0xff] }
 0x897   :  { %v6586_v18 = vpack.c.bf16 %v2708_v3, %v2707_v1  ;;  %v2743_v7 = vld [vmem:[#allocation5 + $0x8c0] sm:$0xff] }
 0x898   :  { %v2419_v10 = vmax.f32 %v2405_v8, 0.0  ;;  %v2325_v25 = vadd.f32 %v4856_v9, %v4264_v13  ;;  %v4857_v11 = vpop.f32.mrb[70].mxu0  ;;  %v6588_v8 = vpack.c.bf16 %v2726_v6, %v2725_v4  ;;  %v2744_v9 = vld [vmem:[#allocation5 + $0x8c8] sm:$0xff] }
 0x899   :  { %v4858_v57 = vpop.f32.mrb[71].mxu0 }
 0x89a   :  { %v2410_v15 = vadd.f32 %v2409_v62, %v2325_v25  ;;  %v4859_v16 = vadd.f32 %v4858_v57, %v4857_v11  ;;  %v2435_v17 = vrot.slane %v2419_v10, 1  ;;  %v2423_v19 = vrot.slane %v2419_v10, 7  ;;  %v2741_v62 = vld [vmem:[#allocation5 + $0x8b0] sm:$0xff]  ;;  %v2710_v25 = vld [vmem:[#allocation5 + $0x7b8] sm:$0xff]  ;;  %v2727_v57 = vld [vmem:[#allocation5 + $0x840] sm:$0xff] }
 0x89b   :  { %v6620_v43 = vpack.c.bf16 %v2742_v53, %v2741_v62  ;;  %v6624_v11 = vpack.c.bf16 %v2744_v9, %v2743_v7  ;;  %v4273_v7 = vld [vmem:[#allocation7 + $0xc] ss:$0 sm:$0xff] }
 0x89c   :  { %v2420_v20 = vmax.f32 %v2410_v15, 0.0  ;;  %v2330_v21 = vadd.f32 %v4859_v16, %v4264_v13  ;;  %v2440_v22 = vsel %vm146_vm0, %v2434_v39, %v2435_v17  ;;  %v2428_v23 = vsel %vm125_vm1, %v2422_v14, %v2423_v19  ;;  %v2745_v16 = vld [vmem:[#allocation5 + $0x8d0] sm:$0xff] }
 0x89d   :  { %5702 = vmatprep.mubr.f32.mxu1 %v2440_v22  ;;  %v6616_v13 = vpack.c.bf16 %v2740_v54, %v2739_v50  ;;  %v2717_v50 = vld [vmem:[#allocation5 + $0x7f0] sm:$0xff] }
 0x89e   :  { %v2436_v55 = vrot.slane %v2420_v20, 1  ;;  %v2415_v27 = vadd.f32 %v5669_v59, %v2330_v21  ;;  %v2424_v28 = vrot.slane %v2420_v20, 7  ;;  %v2723_v59 = vld [vmem:[#allocation5 + $0x820] sm:$0xff]  ;;  %v2712_v21 = vld [vmem:[#allocation5 + $0x7c8] sm:$0xff] }
 0x89f   :  { %v6584_v0 = vpack.c.bf16 %v2724_v61, %v2723_v59  ;;  %v2972_v59 = vld [vmem:[#allocation5 + $0x1408] sm:$0xff] }
 0x8a0   :  { %v2421_v30 = vmax.f32 %v2415_v27, 0.0  ;;  %v2439_v32 = vsel %vm146_vm0, %v2435_v17, %v2436_v55  ;;  %v2427_v33 = vsel %vm125_vm1, %v2423_v19, %v2424_v28  ;;  %v2746_v17 = vld [vmem:[#allocation5 + $0x8d8] sm:$0xff]  ;;  %v2711_v19 = vld [vmem:[#allocation5 + $0x7c0] sm:$0xff]  ;;  %v2748_v27 = vld [vmem:[#allocation5 + $0x8e8] sm:$0xff] }
 0x8a1   :  { %5703 = vmatmul.mubr.msk.f32.vlgmr.msra.gmra.mrb[36].mxu1 %vm7176_vm3, %v2439_v32  ;;  %v6594_v22 = vpack.c.bf16 %v2712_v21, %v2711_v19 }
 0x8a2   :  { %v2425_v37 = vrot.slane %v2421_v30, 7  ;;  %v2437_v38 = vrot.slane %v2421_v30, 1  ;;  %6611 = vmatpush3.bf16.msra.mxu1 %v6608_v49  ;;  %v2722_v49 = vld [vmem:[#allocation5 + $0x818] sm:$0xff] }
 0x8a3   :  { %6613 = vmatprep.subr.bf16.mxu1 %v6612_v29  ;;  %v6580_v51 = vpack.c.bf16 %v2722_v49, %v2721_v47  ;;  %v2734_v47 = vld [vmem:[#allocation5 + $0x878] sm:$0xff] }
 0x8a4   :  { %v2429_v52 = vsel %vm125_vm1, %v2425_v37, %v2422_v14  ;;  %v2438_v41 = vsel %vm146_vm0, %v2436_v55, %v2437_v38  ;;  %v2441_v42 = vsel %vm146_vm0, %v2437_v38, %v2434_v39  ;;  %v2426_v44 = vsel %vm125_vm1, %v2424_v28, %v2425_v37  ;;  %v2728_v39 = vld [vmem:[#allocation5 + $0x848] sm:$0xff]  ;;  %v2713_v28 = vld [vmem:[#allocation5 + $0x7d0] sm:$0xff]  ;;  %v2750_v38 = vld [vmem:[#allocation5 + $0x8f8] sm:$0xff] }
 0x8a5   :  { %4269 = vmatmul.mubr.msk.f32.vlgmr.msra.gmra.mrb[72].mxu0 %vm7167_vm2, %v2429_v52  ;;  %5705 = vmatprep.mubr.f32.mxu1 %v2438_v41  ;;  %v6592_v15 = vpack.c.bf16 %v2728_v39, %v2727_v57  ;;  %v2716_v52 = vld [vmem:[#allocation5 + $0x7e8] sm:$0xff]  ;;  %v6636_v41 = vpack.c.bf16 %v2750_v38, %v2749_v35 }
 0x8a6   :  { %2564 = vmatprep.mubr.f32.mxu0 %v2419_v10  ;;  %5706 = vmatmul.mubr.msk.f32.gmra.mrb[38].mxu1 %vm7194_vm4, %v2441_v42  ;;  %v2709_v10 = vld [vmem:[#allocation5 + $0x7b0] sm:$0xff] }
 0x8a7   :  { %6579 = vmatpush3.bf16.msra.mxu0 %v6578_v40  ;;  %6615 = vmatpush3.bf16.msra.mxu1 %v6612_v29  ;;  %v6590_v14 = vpack.c.bf16 %v2710_v25, %v2709_v10  ;;  %v2714_v29 = vld [vmem:[#allocation5 + $0x7d8] sm:$0xff]  ;;  %v2715_v40 = vld [vmem:[#allocation5 + $0x7e0] sm:$0xff] }
 0x8a8   :  { %6581 = vmatprep.subr.bf16.mxu0 %v6580_v51  ;;  %6617 = vmatprep.subr.bf16.mxu1 %v6616_v13  ;;  %v6598_v32 = vpack.c.bf16 %v2714_v29, %v2713_v28  ;;  %v6602_v42 = vpack.c.bf16 %v2716_v52, %v2715_v40  ;;  %v2718_v51 = vld [vmem:[#allocation5 + $0x7f8] sm:$0xff] }
 0x8a9   :  { %2565 = vmatmul.mubr.f32.gmra.mrb[74].mxu0 %v2428_v23  ;;  %v2729_v23 = vld [vmem:[#allocation5 + $0x850] sm:$0xff]  ;;  %v6606_v54 = vpack.c.bf16 %v2718_v51, %v2717_v50 }
 0x8aa   :  { %2569 = vmatprep.mubr.f32.mxu0 %v2420_v20  ;;  %v6628_v20 = vpack.c.bf16 %v2746_v17, %v2745_v16  ;;  %v6596_v55 = vpack.c.bf16 %v2730_v24, %v2729_v23  ;;  %v2973_v51 = vld [vmem:[#allocation5 + $0x1410] sm:$0xff] }
 0x8ab   :  { %6583 = vmatpush3.bf16.msra.mxu0 %v6582_v58  ;;  %6619 = vmatpush3.bf16.msra.mxu1 %v6616_v13  ;;  %v2971_v13 = vld [vmem:[#allocation5 + $0x1400] sm:$0xff]  ;;  %v6672_v58 = vpack.c.bf16 %v2988_v31, %v2987_v56 }
 0x8ac   :  { %6585 = vmatprep.subr.bf16.mxu0 %v6584_v0  ;;  %6621 = vmatprep.subr.bf16.mxu1 %v6620_v43  ;;  %v6640_v61 = vpack.c.bf16 %v2972_v59, %v2971_v13  ;;  %v2991_v56 = vld [vmem:[#allocation5 + $0x14a0] sm:$0xff]  ;;  %v2992_v13 = vld [vmem:[#allocation5 + $0x14a8] sm:$0xff]  ;;  %v2958_v59 = vld [vmem:[#allocation5 + $0x1398] sm:$0xff] }
 0x8ad   :  { %4270 = vmatmul.mubr.msk.f32.gmra.mrb[76].mxu0 %vm7203_vm5, %v2427_v33  ;;  %v2731_v33 = vld [vmem:[#allocation5 + $0x860] sm:$0xff] }
 0x8ae   :  { %2574 = vmatprep.mubr.f32.mxu0 %v2421_v30  ;;  %v6632_v30 = vpack.c.bf16 %v2748_v27, %v2747_v26  ;;  %v6600_v37 = vpack.c.bf16 %v2732_v34, %v2731_v33  ;;  %v2990_v27 = vld [vmem:[#allocation5 + $0x1498] sm:$0xff]  ;;  %v2955_v33 = vld [vmem:[#allocation5 + $0x1380] sm:$0xff]  ;;  %v2956_v34 = vld [vmem:[#allocation5 + $0x1388] sm:$0xff] }
 0x8af   :  { %6587 = vmatpush3.bf16.msra.mxu0 %v6586_v18  ;;  %6623 = vmatpush3.bf16.msra.mxu1 %v6620_v43 }
 0x8b0   :  { %6589 = vmatprep.subr.bf16.mxu0 %v6588_v8  ;;  %6625 = vmatprep.subr.bf16.mxu1 %v6624_v11 }
 0x8b1   :  { %2575 = vmatmul.mubr.f32.gmra.mrb[78].mxu0 %v2426_v44  ;;  %v2733_v44 = vld [vmem:[#allocation5 + $0x870] sm:$0xff] }
 0x8b2   :  { %v6604_v49 = vpack.c.bf16 %v2734_v47, %v2733_v44 }
 0x8b3   :  { %6591 = vmatpush3.bf16.msra.mxu0 %v6590_v14  ;;  %6627 = vmatpush3.bf16.msra.mxu1 %v6624_v11 }
 0x8b4   :  { %6593 = vmatprep.subr.bf16.mxu0 %v6592_v15  ;;  %6629 = vmatprep.subr.bf16.mxu1 %v6628_v20 }
 0x8b7   :  { %6595 = vmatpush3.bf16.msra.mxu0 %v6594_v22  ;;  %6631 = vmatpush3.bf16.msra.mxu1 %v6628_v20 }
 0x8b8   :  { %6597 = vmatprep.subr.bf16.mxu0 %v6596_v55  ;;  %6633 = vmatprep.subr.bf16.mxu1 %v6632_v30  ;;  %v2989_v55 = vld [vmem:[#allocation5 + $0x1490] sm:$0xff] }
 0x8bb   :  { %6599 = vmatpush3.bf16.msra.mxu0 %v6598_v32  ;;  %6635 = vmatpush3.bf16.msra.mxu1 %v6632_v30  ;;  %v6676_v30 = vpack.c.bf16 %v2990_v27, %v2989_v55  ;;  %v2981_v27 = vld [vmem:[#allocation5 + $0x1450] sm:$0xff] }
 0x8bc   :  { %6601 = vmatprep.subr.bf16.mxu0 %v6600_v37  ;;  %6637 = vmatprep.subr.bf16.mxu1 %v6636_v41 }
 0x8bf   :  { %6603 = vmatpush3.bf16.msra.mxu0 %v6602_v42  ;;  %6639 = vmatpush3.bf16.msra.mxu1 %v6636_v41 }
 0x8c0   :  { %6605 = vmatprep.subr.bf16.mxu0 %v6604_v49  ;;  %6673 = vmatprep.subr.bf16.mxu1 %v6672_v58 }
 0x8c3   :  { %6607 = vmatpush3.bf16.msra.mxu0 %v6606_v54  ;;  %v2974_v54 = vld [vmem:[#allocation5 + $0x1418] sm:$0xff] }
 0x8c4   :  { %6641 = vmatprep.subr.bf16.mxu0 %v6640_v61  ;;  %v6644_v31 = vpack.c.bf16 %v2974_v54, %v2973_v51  ;;  %v6680_v61 = vpack.c.bf16 %v2992_v13, %v2991_v56  ;;  %v2986_v51 = vld [vmem:[#allocation5 + $0x1478] sm:$0xff]  ;;  %v2969_v56 = vld [vmem:[#allocation5 + $0x13f0] sm:$0xff] }
 0x974   :  { %v5704_v62 = vpop.f32.mrb[36].mxu1 }
 0x975   :  { %v2646_v0 = vpop.f32.mrb[37].mxu1 }
 0x978   :  { %v4912_v53 = vpop.f32.mrb[72].mxu0 }
 0x979   :  { %v4913_v1 = vpop.f32.mrb[73].mxu0  ;;  %v5707_v3 = vpop.f32.mrb[38].mxu1 }
 0x97a   :  { %v4914_v43 = vadd.f32 %v4913_v1, %v4912_v53  ;;  %v2656_v18 = vpop.f32.mrb[39].mxu1  ;;  %v2976_v53 = vld [vmem:[#allocation5 + $0x1428] sm:$0xff]  ;;  %v2993_v1 = vld [vmem:[#allocation5 + $0x14b0] sm:$0xff] }
 0x97c   :  { %v2647_v4 = vadd.f32 %v4914_v43, %v2646_v0  ;;  %v4915_v6 = vpop.f32.mrb[74].mxu0  ;;  %v2975_v0 = vld [vmem:[#allocation5 + $0x1420] sm:$0xff]  ;;  %v2994_v43 = vld [vmem:[#allocation5 + $0x14b8] sm:$0xff] }
 0x97d   :  { %v4916_v8 = vpop.f32.mrb[75].mxu0 }
 0x97e   :  { %v2665_v9 = vadd.f32 %v2647_v4, %v7459_v48  ;;  %v4917_v10 = vadd.f32 %v4916_v8, %v4915_v6  ;;  %v2960_v4 = vld [vmem:[#allocation5 + $0x13a8] sm:$0xff]  ;;  %v6684_v6 = vpack.c.bf16 %v2994_v43, %v2993_v1  ;;  %v2977_v8 = vld [vmem:[#allocation5 + $0x1430] sm:$0xff] }
 0x980   :  { %v7531_v25 = vadd.f32 %v4273_v7, %v2665_v9  ;;  %v2652_v11 = vadd.f32 %v5704_v62, %v4917_v10  ;;  %v4918_v14 = vpop.f32.mrb[76].mxu0  ;;  %v2978_v9 = vld [vmem:[#allocation5 + $0x1438] sm:$0xff]  ;;  %v2995_v10 = vld [vmem:[#allocation5 + $0x14c0] sm:$0xff] }
 0x981   :  { %v4919_v57 = vpop.f32.mrb[77].mxu0 }
 0x982   :  { %v2666_v39 = vadd.f32 %v2652_v11, %v7463_v5  ;;  %v4920_v15 = vadd.f32 %v4919_v57, %v4918_v14  ;;  %2820 = vmatprep.mubr.f32.mxu0 %v7531_v25  ;;  %v2690_v48 = vrot.slane %v7531_v25, 1  ;;  %v2678_v35 = vrot.slane %v7531_v25, 7  ;;  %v2996_v14 = vld [vmem:[#allocation5 + $0x14c8] sm:$0xff]  ;;  %v2961_v57 = vld [vmem:[#allocation5 + $0x13b0] sm:$0xff] }
 0x983   :  { %v6652_v11 = vpack.c.bf16 %v2978_v9, %v2977_v8 }
 0x984   :  { %v7535_v16 = vadd.f32 %v4273_v7, %v2666_v39  ;;  %v2657_v17 = vadd.f32 %v4920_v15, %v2656_v18  ;;  %v4921_v19 = vpop.f32.mrb[78].mxu0  ;;  %v2959_v18 = vld [vmem:[#allocation5 + $0x13a0] sm:$0xff]  ;;  %v2962_v39 = vld [vmem:[#allocation5 + $0x13b8] sm:$0xff]  ;;  %v6688_v15 = vpack.c.bf16 %v2996_v14, %v2995_v10 }
 0x985   :  { %v4922_v20 = vpop.f32.mrb[79].mxu0 }
 0x986   :  { %v2667_v21 = vadd.f32 %v2657_v17, %v7468_v12  ;;  %v4923_v22 = vadd.f32 %v4922_v20, %v4921_v19  ;;  %v2691_v23 = vrot.slane %v7535_v16, 1  ;;  %v2679_v42 = vrot.slane %v7535_v16, 7  ;;  %v2979_v19 = vld [vmem:[#allocation5 + $0x1440] sm:$0xff]  ;;  %v2980_v20 = vld [vmem:[#allocation5 + $0x1448] sm:$0xff] }
 0x987   :  { %v6654_v17 = vpack.c.bf16 %v2962_v39, %v2961_v57 }
 0x988   :  { %v7540_v24 = vadd.f32 %v4273_v7, %v2667_v21  ;;  %v2662_v26 = vadd.f32 %v5707_v3, %v4923_v22  ;;  %v2696_v5 = vsel %vm146_vm0, %v2690_v48, %v2691_v23  ;;  %v2684_v44 = vsel %vm125_vm1, %v2678_v35, %v2679_v42  ;;  %v2997_v21 = vld [vmem:[#allocation5 + $0x14d0] sm:$0xff] }
 0x989   :  { %5740 = vmatprep.mubr.f32.mxu1 %v2696_v5  ;;  %v6648_v3 = vpack.c.bf16 %v2976_v53, %v2975_v0  ;;  %v6656_v22 = vpack.c.bf16 %v2980_v20, %v2979_v19  ;;  %v3228_v0 = vld [vmem:[#allocation5 + $0x988] sm:$0xff] }
 0x98a   :  { %v2668_v28 = vadd.f32 %v2662_v26, %v7474_v2  ;;  %v2692_v29 = vrot.slane %v7540_v24, 1  ;;  %v6642_v2 = vpack.c.bf16 %v2956_v34, %v2955_v33  ;;  %v2680_v47 = vrot.slane %v7540_v24, 7  ;;  %v2964_v26 = vld [vmem:[#allocation5 + $0x13c8] sm:$0xff]  ;;  %v2965_v33 = vld [vmem:[#allocation5 + $0x13d0] sm:$0xff]  ;;  %v2966_v34 = vld [vmem:[#allocation5 + $0x13d8] sm:$0xff] }
 0x98c   :  { %v7546_v12 = vadd.f32 %v4273_v7, %v2668_v28  ;;  %v2695_v32 = vsel %vm146_vm0, %v2691_v23, %v2692_v29  ;;  %v2683_v49 = vsel %vm125_vm1, %v2679_v42, %v2680_v47  ;;  %v6650_v7 = vpack.c.bf16 %v2960_v4, %v2959_v18  ;;  %v2963_v23 = vld [vmem:[#allocation5 + $0x13c0] sm:$0xff]  ;;  %v2982_v28 = vld [vmem:[#allocation5 + $0x1458] sm:$0xff] }
 0x98d   :  { %5741 = vmatmul.mubr.msk.f32.vlgmr.msra.gmra.mrb[40].mxu1 %vm7176_vm3, %v2695_v32  ;;  %v6658_v55 = vpack.c.bf16 %v2964_v26, %v2963_v23  ;;  %v3000_v32 = vld [vmem:[#allocation5 + $0x14e8] sm:$0xff]  ;;  %v2967_v42 = vld [vmem:[#allocation5 + $0x13e0] sm:$0xff] }
 0x98e   :  { %v2681_v37 = vrot.slane %v7546_v12, 7  ;;  %v2693_v38 = vrot.slane %v7546_v12, 1  ;;  %6675 = vmatpush3.bf16.msra.mxu1 %v6672_v58  ;;  %v2957_v58 = vld [vmem:[#allocation5 + $0x1390] sm:$0xff]  ;;  %v4274_v18 = vld [vmem:[#allocation7 + $0x5] ss:$0 sm:$0xff] }
 0x98f   :  { %6677 = vmatprep.subr.bf16.mxu1 %v6676_v30  ;;  %v6646_v62 = vpack.c.bf16 %v2958_v59, %v2957_v58  ;;  %v3243_v58 = vld [vmem:[#allocation5 + $0xa00] sm:$0xff]  ;;  %v3244_v59 = vld [vmem:[#allocation5 + $0xa08] sm:$0xff] }
 0x990   :  { %v2685_v40 = vsel %vm125_vm1, %v2681_v37, %v2678_v35  ;;  %v2694_v52 = vsel %vm146_vm0, %v2692_v29, %v2693_v38  ;;  %v2697_v41 = vsel %vm146_vm0, %v2693_v38, %v2690_v48  ;;  %v2682_v50 = vsel %vm125_vm1, %v2680_v47, %v2681_v37  ;;  %v2998_v48 = vld [vmem:[#allocation5 + $0x14d8] sm:$0xff]  ;;  %v2999_v29 = vld [vmem:[#allocation5 + $0x14e0] sm:$0xff] }
 0x991   :  { %4275 = vmatmul.mubr.msk.f32.vlgmr.msra.gmra.mrb[80].mxu0 %vm7167_vm2, %v2685_v40  ;;  %5743 = vmatprep.mubr.f32.mxu1 %v2694_v52  ;;  %v6692_v5 = vpack.c.bf16 %v2998_v48, %v2997_v21  ;;  %v6696_v35 = vpack.c.bf16 %v3000_v32, %v2999_v29  ;;  %v6662_v37 = vpack.c.bf16 %v2966_v34, %v2965_v33  ;;  %v2983_v38 = vld [vmem:[#allocation5 + $0x1460] sm:$0xff]  ;;  %v3001_v40 = vld [vmem:[#allocation5 + $0x14f0] sm:$0xff] }
 0x992   :  { %2825 = vmatprep.mubr.f32.mxu0 %v7535_v16  ;;  %5744 = vmatmul.mubr.msk.f32.gmra.mrb[42].mxu1 %vm7194_vm4, %v2697_v41  ;;  %v3002_v41 = vld [vmem:[#allocation5 + $0x14f8] sm:$0xff] }
 0x993   :  { %6643 = vmatpush3.bf16.msra.mxu0 %v6642_v2  ;;  %6679 = vmatpush3.bf16.msra.mxu1 %v6676_v30  ;;  %v6660_v30 = vpack.c.bf16 %v2982_v28, %v2981_v27  ;;  %v2984_v2 = vld [vmem:[#allocation5 + $0x1468] sm:$0xff]  ;;  %v6700_v47 = vpack.c.bf16 %v3002_v41, %v3001_v40 }
 0x994   :  { %6645 = vmatprep.subr.bf16.mxu0 %v6644_v31  ;;  %6681 = vmatprep.subr.bf16.mxu1 %v6680_v61  ;;  %v6664_v52 = vpack.c.bf16 %v2984_v2, %v2983_v38  ;;  %v2970_v31 = vld [vmem:[#allocation5 + $0x13f8] sm:$0xff] }
 0x995   :  { %2826 = vmatmul.mubr.f32.gmra.mrb[82].mxu0 %v2684_v44  ;;  %v2968_v44 = vld [vmem:[#allocation5 + $0x13e8] sm:$0xff]  ;;  %v6670_v13 = vpack.c.bf16 %v2970_v31, %v2969_v56  ;;  %v3246_v38 = vld [vmem:[#allocation5 + $0xa18] sm:$0xff] }
 0x996   :  { %2830 = vmatprep.mubr.f32.mxu0 %v7540_v24 }
 0x997   :  { %6647 = vmatpush3.bf16.msra.mxu0 %v6646_v62  ;;  %6683 = vmatpush3.bf16.msra.mxu1 %v6680_v61  ;;  %v3227_v61 = vld [vmem:[#allocation5 + $0x980] sm:$0xff]  ;;  %v6736_v62 = vpack.c.bf16 %v3244_v59, %v3243_v58 }
 0x998   :  { %6649 = vmatprep.subr.bf16.mxu0 %v6648_v3  ;;  %6685 = vmatprep.subr.bf16.mxu1 %v6684_v6  ;;  %v6704_v53 = vpack.c.bf16 %v3228_v0, %v3227_v61  ;;  %v3229_v61 = vld [vmem:[#allocation5 + $0x990] sm:$0xff]  ;;  %v3247_v0 = vld [vmem:[#allocation5 + $0xa20] sm:$0xff] }
 0x999   :  { %4276 = vmatmul.mubr.msk.f32.gmra.mrb[84].mxu0 %vm7203_vm5, %v2683_v49  ;;  %v6666_v49 = vpack.c.bf16 %v2968_v44, %v2967_v42 }
 0x99a   :  { %2835 = vmatprep.mubr.f32.mxu0 %v7546_v12 }
 0x99b   :  { %6651 = vmatpush3.bf16.msra.mxu0 %v6650_v7  ;;  %6687 = vmatpush3.bf16.msra.mxu1 %v6684_v6 }
 0x99c   :  { %6653 = vmatprep.subr.bf16.mxu0 %v6652_v11  ;;  %6689 = vmatprep.subr.bf16.mxu1 %v6688_v15 }
 0x99d   :  { %2836 = vmatmul.mubr.f32.gmra.mrb[86].mxu0 %v2682_v50  ;;  %v2985_v50 = vld [vmem:[#allocation5 + $0x1470] sm:$0xff] }
 0x99e   :  { %v6668_v54 = vpack.c.bf16 %v2986_v51, %v2985_v50  ;;  %v3212_v50 = vld [vmem:[#allocation5 + $0x908] sm:$0xff] }
 0x99f   :  { %6655 = vmatpush3.bf16.msra.mxu0 %v6654_v17  ;;  %6691 = vmatpush3.bf16.msra.mxu1 %v6688_v15 }
 0x9a0   :  { %6657 = vmatprep.subr.bf16.mxu0 %v6656_v22  ;;  %6693 = vmatprep.subr.bf16.mxu1 %v6692_v5 }
 0x9a3   :  { %6659 = vmatpush3.bf16.msra.mxu0 %v6658_v55  ;;  %6695 = vmatpush3.bf16.msra.mxu1 %v6692_v5 }
 0x9a4   :  { %6661 = vmatprep.subr.bf16.mxu0 %v6660_v30  ;;  %6697 = vmatprep.subr.bf16.mxu1 %v6696_v35 }
 0x9a7   :  { %6663 = vmatpush3.bf16.msra.mxu0 %v6662_v37  ;;  %6699 = vmatpush3.bf16.msra.mxu1 %v6696_v35  ;;  %v3245_v37 = vld [vmem:[#allocation5 + $0xa10] sm:$0xff] }
 0x9a8   :  { %6665 = vmatprep.subr.bf16.mxu0 %v6664_v52  ;;  %6701 = vmatprep.subr.bf16.mxu1 %v6700_v47  ;;  %v6740_v41 = vpack.c.bf16 %v3246_v38, %v3245_v37  ;;  %v3238_v37 = vld [vmem:[#allocation5 + $0x9d8] sm:$0xff]  ;;  %v3255_v38 = vld [vmem:[#allocation5 + $0xa60] sm:$0xff] }
 0x9ab   :  { %6667 = vmatpush3.bf16.msra.mxu0 %v6666_v49  ;;  %6703 = vmatpush3.bf16.msra.mxu1 %v6700_v47  ;;  %v3211_v49 = vld [vmem:[#allocation5 + $0x900] sm:$0xff] }
 0x9ac   :  { %6669 = vmatprep.subr.bf16.mxu0 %v6668_v54  ;;  %6737 = vmatprep.subr.bf16.mxu1 %v6736_v62  ;;  %v6706_v56 = vpack.c.bf16 %v3212_v50, %v3211_v49  ;;  %v3240_v49 = vld [vmem:[#allocation5 + $0x9e8] sm:$0xff]  ;;  %v3257_v50 = vld [vmem:[#allocation5 + $0xa70] sm:$0xff] }
 0x9af   :  { %6671 = vmatpush3.bf16.msra.mxu0 %v6670_v13 }
 0x9b0   :  { %6705 = vmatprep.subr.bf16.mxu0 %v6704_v53 }
 0xa60   :  { %v5742_v1 = vpop.f32.mrb[40].mxu1 }
 0xa61   :  { %v2907_v3 = vpop.f32.mrb[41].mxu1 }
 0xa64   :  { %v4976_v43 = vpop.f32.mrb[80].mxu0 }
 0xa65   :  { %v4977_v4 = vpop.f32.mrb[81].mxu0  ;;  %v5745_v6 = vpop.f32.mrb[42].mxu1 }
 0xa66   :  { %v4978_v7 = vadd.f32 %v4977_v4, %v4976_v43  ;;  %v2917_v8 = vpop.f32.mrb[43].mxu1  ;;  %v3214_v43 = vld [vmem:[#allocation5 + $0x918] sm:$0xff] }
 0xa68   :  { %v2823_v9 = vadd.f32 %v4978_v7, %v4274_v18  ;;  %v4979_v10 = vpop.f32.mrb[82].mxu0  ;;  %v3232_v7 = vld [vmem:[#allocation5 + $0x9a8] sm:$0xff] }
 0xa69   :  { %v4980_v11 = vpop.f32.mrb[83].mxu0 }
 0xa6a   :  { %v4981_v14 = vadd.f32 %v4980_v11, %v4979_v10  ;;  %v2908_v57 = vadd.f32 %v2907_v3, %v2823_v9  ;;  %v3213_v3 = vld [vmem:[#allocation5 + $0x910] sm:$0xff]  ;;  %v3250_v10 = vld [vmem:[#allocation5 + $0xa38] sm:$0xff]  ;;  %v3215_v11 = vld [vmem:[#allocation5 + $0x920] sm:$0xff] }
 0xa6b   :  { %v6710_v4 = vpack.c.bf16 %v3214_v43, %v3213_v3  ;;  %v3495_v3 = vld [vmem:[#allocation5 + $0x1600] sm:$0xff]  ;;  %v3496_v43 = vld [vmem:[#allocation5 + $0x1608] sm:$0xff] }
 0xa6c   :  { %v2828_v39 = vadd.f32 %v4981_v14, %v4274_v18  ;;  %v4982_v15 = vpop.f32.mrb[84].mxu0  ;;  %v2926_v17 = vmax.f32 %v2908_v57, 0.0  ;;  %v3216_v14 = vld [vmem:[#allocation5 + $0x928] sm:$0xff] }
 0xa6d   :  { %v4983_v19 = vpop.f32.mrb[85].mxu0 }
 0xa6e   :  { %v2913_v20 = vadd.f32 %v5742_v1, %v2828_v39  ;;  %v4984_v21 = vadd.f32 %v4983_v19, %v4982_v15  ;;  %3067 = vmatprep.mubr.f32.mxu0 %v2926_v17  ;;  %v2930_v26 = vrot.slane %v2926_v17, 7  ;;  %v2942_v55 = vrot.slane %v2926_v17, 1  ;;  %v3248_v1 = vld [vmem:[#allocation5 + $0xa28] sm:$0xff]  ;;  %v3233_v15 = vld [vmem:[#allocation5 + $0x9b0] sm:$0xff]  ;;  %v3234_v17 = vld [vmem:[#allocation5 + $0x9b8] sm:$0xff] }
 0xa6f   :  { %v6714_v39 = vpack.c.bf16 %v3216_v14, %v3215_v11  ;;  %v3251_v19 = vld [vmem:[#allocation5 + $0xa40] sm:$0xff] }
 0xa70   :  { %v2927_v22 = vmax.f32 %v2913_v20, 0.0  ;;  %v2833_v48 = vadd.f32 %v4984_v21, %v4274_v18  ;;  %v4985_v23 = vpop.f32.mrb[86].mxu0  ;;  %v6716_v20 = vpack.c.bf16 %v3234_v17, %v3233_v15  ;;  %v3252_v21 = vld [vmem:[#allocation5 + $0xa48] sm:$0xff] }
 0xa71   :  { %v4986_v5 = vpop.f32.mrb[87].mxu0 }
 0xa72   :  { %v2918_v27 = vadd.f32 %v2917_v8, %v2833_v48  ;;  %v4987_v28 = vadd.f32 %v4986_v5, %v4985_v23  ;;  %v2943_v29 = vrot.slane %v2927_v22, 1  ;;  %v2931_v30 = vrot.slane %v2927_v22, 7  ;;  %v3249_v8 = vld [vmem:[#allocation5 + $0xa30] sm:$0xff]  ;;  %v3218_v48 = vld [vmem:[#allocation5 + $0x938] sm:$0xff]  ;;  %v3235_v5 = vld [vmem:[#allocation5 + $0x9c0] sm:$0xff] }
 0xa73   :  { %v6748_v57 = vpack.c.bf16 %v3250_v10, %v3249_v8  ;;  %v6752_v23 = vpack.c.bf16 %v3252_v21, %v3251_v19  ;;  %v4283_v19 = vld [vmem:[#allocation7 + $0xd] ss:$0 sm:$0xff] }
 0xa74   :  { %v2928_v32 = vmax.f32 %v2918_v27, 0.0  ;;  %v2838_v33 = vadd.f32 %v4987_v28, %v4274_v18  ;;  %v2948_v34 = vsel %vm146_vm0, %v2942_v55, %v2943_v29  ;;  %v2936_v35 = vsel %vm125_vm1, %v2930_v26, %v2931_v30  ;;  %v3253_v28 = vld [vmem:[#allocation5 + $0xa50] sm:$0xff] }
 0xa75   :  { %5778 = vmatprep.mubr.f32.mxu1 %v2948_v34  ;;  %v6744_v18 = vpack.c.bf16 %v3248_v1, %v3247_v0  ;;  %v3225_v0 = vld [vmem:[#allocation5 + $0x970] sm:$0xff] }
 0xa76   :  { %v2944_v2 = vrot.slane %v2928_v32, 1  ;;  %v2923_v40 = vadd.f32 %v5745_v6, %v2838_v33  ;;  %v2932_v52 = vrot.slane %v2928_v32, 7  ;;  %v3231_v6 = vld [vmem:[#allocation5 + $0x9a0] sm:$0xff]  ;;  %v3220_v33 = vld [vmem:[#allocation5 + $0x948] sm:$0xff] }
 0xa77   :  { %v6712_v9 = vpack.c.bf16 %v3232_v7, %v3231_v6  ;;  %v3480_v6 = vld [vmem:[#allocation5 + $0x1588] sm:$0xff] }
 0xa78   :  { %v2929_v42 = vmax.f32 %v2923_v40, 0.0  ;;  %v2947_v44 = vsel %vm146_vm0, %v2943_v29, %v2944_v2  ;;  %v2935_v47 = vsel %vm125_vm1, %v2931_v30, %v2932_v52  ;;  %v3254_v29 = vld [vmem:[#allocation5 + $0xa58] sm:$0xff]  ;;  %v3219_v30 = vld [vmem:[#allocation5 + $0x940] sm:$0xff]  ;;  %v3256_v40 = vld [vmem:[#allocation5 + $0xa68] sm:$0xff] }
 0xa79   :  { %5779 = vmatmul.mubr.msk.f32.vlgmr.msra.gmra.mrb[44].mxu1 %vm7176_vm3, %v2947_v44  ;;  %v6722_v34 = vpack.c.bf16 %v3220_v33, %v3219_v30 }
 0xa7a   :  { %v2933_v51 = vrot.slane %v2929_v42, 7  ;;  %v2945_v54 = vrot.slane %v2929_v42, 1  ;;  %6739 = vmatpush3.bf16.msra.mxu1 %v6736_v62  ;;  %v3230_v62 = vld [vmem:[#allocation5 + $0x998] sm:$0xff] }
 0xa7b   :  { %6741 = vmatprep.subr.bf16.mxu1 %v6740_v41  ;;  %v6708_v53 = vpack.c.bf16 %v3230_v62, %v3229_v61  ;;  %v3242_v61 = vld [vmem:[#allocation5 + $0x9f8] sm:$0xff] }
 0xa7c   :  { %v2937_v31 = vsel %vm125_vm1, %v2933_v51, %v2930_v26  ;;  %v2946_v13 = vsel %vm146_vm0, %v2944_v2, %v2945_v54  ;;  %v2949_v58 = vsel %vm146_vm0, %v2945_v54, %v2942_v55  ;;  %v2934_v59 = vsel %vm125_vm1, %v2932_v52, %v2933_v51  ;;  %v3236_v55 = vld [vmem:[#allocation5 + $0x9c8] sm:$0xff]  ;;  %v3221_v52 = vld [vmem:[#allocation5 + $0x950] sm:$0xff]  ;;  %v3258_v54 = vld [vmem:[#allocation5 + $0xa78] sm:$0xff] }
 0xa7d   :  { %4279 = vmatmul.mubr.msk.f32.vlgmr.msra.gmra.mrb[88].mxu0 %vm7167_vm2, %v2937_v31  ;;  %5781 = vmatprep.mubr.f32.mxu1 %v2946_v13  ;;  %v6720_v27 = vpack.c.bf16 %v3236_v55, %v3235_v5  ;;  %v3224_v31 = vld [vmem:[#allocation5 + $0x968] sm:$0xff]  ;;  %v6764_v13 = vpack.c.bf16 %v3258_v54, %v3257_v50 }
 0xa7e   :  { %3072 = vmatprep.mubr.f32.mxu0 %v2927_v22  ;;  %5782 = vmatmul.mubr.msk.f32.gmra.mrb[46].mxu1 %vm7194_vm4, %v2949_v58  ;;  %v3217_v22 = vld [vmem:[#allocation5 + $0x930] sm:$0xff] }
 0xa7f   :  { %6707 = vmatpush3.bf16.msra.mxu0 %v6706_v56  ;;  %6743 = vmatpush3.bf16.msra.mxu1 %v6740_v41  ;;  %v6718_v26 = vpack.c.bf16 %v3218_v48, %v3217_v22  ;;  %v3222_v41 = vld [vmem:[#allocation5 + $0x958] sm:$0xff]  ;;  %v3223_v56 = vld [vmem:[#allocation5 + $0x960] sm:$0xff] }
 0xa80   :  { %6709 = vmatprep.subr.bf16.mxu0 %v6708_v53  ;;  %6745 = vmatprep.subr.bf16.mxu1 %v6744_v18  ;;  %v6726_v44 = vpack.c.bf16 %v3222_v41, %v3221_v52  ;;  %v6730_v58 = vpack.c.bf16 %v3224_v31, %v3223_v56  ;;  %v3226_v53 = vld [vmem:[#allocation5 + $0x978] sm:$0xff] }
 0xa81   :  { %3073 = vmatmul.mubr.f32.gmra.mrb[90].mxu0 %v2936_v35  ;;  %v3237_v35 = vld [vmem:[#allocation5 + $0x9d0] sm:$0xff]  ;;  %v6734_v1 = vpack.c.bf16 %v3226_v53, %v3225_v0 }
 0xa82   :  { %3077 = vmatprep.mubr.f32.mxu0 %v2928_v32  ;;  %v6756_v32 = vpack.c.bf16 %v3254_v29, %v3253_v28  ;;  %v6724_v2 = vpack.c.bf16 %v3238_v37, %v3237_v35  ;;  %v3481_v53 = vld [vmem:[#allocation5 + $0x1590] sm:$0xff] }
 0xa83   :  { %6711 = vmatpush3.bf16.msra.mxu0 %v6710_v4  ;;  %6747 = vmatpush3.bf16.msra.mxu1 %v6744_v18  ;;  %v3479_v18 = vld [vmem:[#allocation5 + $0x1580] sm:$0xff]  ;;  %v6800_v4 = vpack.c.bf16 %v3496_v43, %v3495_v3 }
 0xa84   :  { %6713 = vmatprep.subr.bf16.mxu0 %v6712_v9  ;;  %6749 = vmatprep.subr.bf16.mxu1 %v6748_v57  ;;  %v6768_v7 = vpack.c.bf16 %v3480_v6, %v3479_v18  ;;  %v3499_v3 = vld [vmem:[#allocation5 + $0x1620] sm:$0xff]  ;;  %v3500_v18 = vld [vmem:[#allocation5 + $0x1628] sm:$0xff]  ;;  %v3466_v6 = vld [vmem:[#allocation5 + $0x1518] sm:$0xff] }
 0xa85   :  { %4280 = vmatmul.mubr.msk.f32.gmra.mrb[92].mxu0 %vm7203_vm5, %v2935_v47  ;;  %v3239_v47 = vld [vmem:[#allocation5 + $0x9e0] sm:$0xff] }
 0xa86   :  { %3082 = vmatprep.mubr.f32.mxu0 %v2929_v42  ;;  %v6760_v42 = vpack.c.bf16 %v3256_v40, %v3255_v38  ;;  %v6728_v51 = vpack.c.bf16 %v3240_v49, %v3239_v47  ;;  %v3498_v40 = vld [vmem:[#allocation5 + $0x1618] sm:$0xff]  ;;  %v3463_v47 = vld [vmem:[#allocation5 + $0x1500] sm:$0xff]  ;;  %v3464_v49 = vld [vmem:[#allocation5 + $0x1508] sm:$0xff] }
 0xa87   :  { %6715 = vmatpush3.bf16.msra.mxu0 %v6714_v39  ;;  %6751 = vmatpush3.bf16.msra.mxu1 %v6748_v57 }
 0xa88   :  { %6717 = vmatprep.subr.bf16.mxu0 %v6716_v20  ;;  %6753 = vmatprep.subr.bf16.mxu1 %v6752_v23 }
 0xa89   :  { %3083 = vmatmul.mubr.f32.gmra.mrb[94].mxu0 %v2934_v59  ;;  %v3241_v59 = vld [vmem:[#allocation5 + $0x9f0] sm:$0xff] }
 0xa8a   :  { %v6732_v62 = vpack.c.bf16 %v3242_v61, %v3241_v59 }
 0xa8b   :  { %6719 = vmatpush3.bf16.msra.mxu0 %v6718_v26  ;;  %6755 = vmatpush3.bf16.msra.mxu1 %v6752_v23 }
 0xa8c   :  { %6721 = vmatprep.subr.bf16.mxu0 %v6720_v27  ;;  %6757 = vmatprep.subr.bf16.mxu1 %v6756_v32 }
 0xa8f   :  { %6723 = vmatpush3.bf16.msra.mxu0 %v6722_v34  ;;  %6759 = vmatpush3.bf16.msra.mxu1 %v6756_v32 }
 0xa90   :  { %6725 = vmatprep.subr.bf16.mxu0 %v6724_v2  ;;  %6761 = vmatprep.subr.bf16.mxu1 %v6760_v42  ;;  %v3497_v2 = vld [vmem:[#allocation5 + $0x1610] sm:$0xff] }
 0xa93   :  { %6727 = vmatpush3.bf16.msra.mxu0 %v6726_v44  ;;  %6763 = vmatpush3.bf16.msra.mxu1 %v6760_v42  ;;  %v6804_v42 = vpack.c.bf16 %v3498_v40, %v3497_v2  ;;  %v3489_v40 = vld [vmem:[#allocation5 + $0x15d0] sm:$0xff] }
 0xa94   :  { %6729 = vmatprep.subr.bf16.mxu0 %v6728_v51  ;;  %6765 = vmatprep.subr.bf16.mxu1 %v6764_v13 }
 0xa97   :  { %6731 = vmatpush3.bf16.msra.mxu0 %v6730_v58  ;;  %6767 = vmatpush3.bf16.msra.mxu1 %v6764_v13 }
 0xa98   :  { %6733 = vmatprep.subr.bf16.mxu0 %v6732_v62  ;;  %6801 = vmatprep.subr.bf16.mxu1 %v6800_v4 }
 0xa9b   :  { %6735 = vmatpush3.bf16.msra.mxu0 %v6734_v1  ;;  %v3482_v1 = vld [vmem:[#allocation5 + $0x1598] sm:$0xff] }
 0xa9c   :  { %6769 = vmatprep.subr.bf16.mxu0 %v6768_v7  ;;  %v6772_v43 = vpack.c.bf16 %v3482_v1, %v3481_v53  ;;  %v6808_v7 = vpack.c.bf16 %v3500_v18, %v3499_v3  ;;  %v3494_v53 = vld [vmem:[#allocation5 + $0x15f8] sm:$0xff]  ;;  %v3477_v3 = vld [vmem:[#allocation5 + $0x1570] sm:$0xff] }
 0xb4c   :  { %v5780_v8 = vpop.f32.mrb[44].mxu1 }
 0xb4d   :  { %v3154_v9 = vpop.f32.mrb[45].mxu1 }
 0xb50   :  { %v5040_v10 = vpop.f32.mrb[88].mxu0 }
 0xb51   :  { %v5041_v11 = vpop.f32.mrb[89].mxu0  ;;  %v5783_v14 = vpop.f32.mrb[46].mxu1 }
 0xb52   :  { %v5042_v57 = vadd.f32 %v5041_v11, %v5040_v10  ;;  %v3164_v39 = vpop.f32.mrb[47].mxu1  ;;  %v3484_v10 = vld [vmem:[#allocation5 + $0x15a8] sm:$0xff]  ;;  %v3501_v11 = vld [vmem:[#allocation5 + $0x1630] sm:$0xff] }
 0xb54   :  { %v3155_v15 = vadd.f32 %v5042_v57, %v3154_v9  ;;  %v5043_v17 = vpop.f32.mrb[90].mxu0  ;;  %v3483_v9 = vld [vmem:[#allocation5 + $0x15a0] sm:$0xff]  ;;  %v3502_v57 = vld [vmem:[#allocation5 + $0x1638] sm:$0xff] }
 0xb55   :  { %v5044_v20 = vpop.f32.mrb[91].mxu0 }
 0xb56   :  { %v3173_v21 = vadd.f32 %v3155_v15, %v7531_v25  ;;  %v5045_v22 = vadd.f32 %v5044_v20, %v5043_v17  ;;  %v3468_v15 = vld [vmem:[#allocation5 + $0x1528] sm:$0xff]  ;;  %v6812_v17 = vpack.c.bf16 %v3502_v57, %v3501_v11  ;;  %v3485_v20 = vld [vmem:[#allocation5 + $0x15b0] sm:$0xff] }
 0xb58   :  { %v7603_v48 = vadd.f32 %v4283_v19, %v3173_v21  ;;  %v3160_v23 = vadd.f32 %v5780_v8, %v5045_v22  ;;  %v5046_v26 = vpop.f32.mrb[92].mxu0  ;;  %v3486_v21 = vld [vmem:[#allocation5 + $0x15b8] sm:$0xff]  ;;  %v3503_v22 = vld [vmem:[#allocation5 + $0x1640] sm:$0xff] }
 0xb59   :  { %v5047_v5 = vpop.f32.mrb[93].mxu0 }
 0xb5a   :  { %v3174_v55 = vadd.f32 %v3160_v23, %v7535_v16  ;;  %v5048_v27 = vadd.f32 %v5047_v5, %v5046_v26  ;;  %3328 = vmatprep.mubr.f32.mxu0 %v7603_v48  ;;  %v3198_v25 = vrot.slane %v7603_v48, 1  ;;  %v3186_v50 = vrot.slane %v7603_v48, 7  ;;  %v3504_v26 = vld [vmem:[#allocation5 + $0x1648] sm:$0xff]  ;;  %v3469_v5 = vld [vmem:[#allocation5 + $0x1530] sm:$0xff] }
 0xb5b   :  { %v6780_v23 = vpack.c.bf16 %v3486_v21, %v3485_v20 }
 0xb5c   :  { %v7607_v28 = vadd.f32 %v4283_v19, %v3174_v55  ;;  %v3165_v29 = vadd.f32 %v5048_v27, %v3164_v39  ;;  %v5049_v30 = vpop.f32.mrb[94].mxu0  ;;  %v3467_v39 = vld [vmem:[#allocation5 + $0x1520] sm:$0xff]  ;;  %v3470_v55 = vld [vmem:[#allocation5 + $0x1538] sm:$0xff]  ;;  %v6816_v27 = vpack.c.bf16 %v3504_v26, %v3503_v22 }
 0xb5d   :  { %v5050_v32 = vpop.f32.mrb[95].mxu0 }
 0xb5e   :  { %v3175_v33 = vadd.f32 %v3165_v29, %v7540_v24  ;;  %v5051_v34 = vadd.f32 %v5050_v32, %v5049_v30  ;;  %v3199_v35 = vrot.slane %v7607_v28, 1  ;;  %v3187_v58 = vrot.slane %v7607_v28, 7  ;;  %v3487_v30 = vld [vmem:[#allocation5 + $0x15c0] sm:$0xff]  ;;  %v3488_v32 = vld [vmem:[#allocation5 + $0x15c8] sm:$0xff] }
 0xb5f   :  { %v6782_v29 = vpack.c.bf16 %v3470_v55, %v3469_v5 }
 0xb60   :  { %v7612_v37 = vadd.f32 %v4283_v19, %v3175_v33  ;;  %v3170_v38 = vadd.f32 %v5783_v14, %v5051_v34  ;;  %v3204_v16 = vsel %vm146_vm0, %v3198_v25, %v3199_v35  ;;  %v3192_v59 = vsel %vm125_vm1, %v3186_v50, %v3187_v58  ;;  %v3505_v33 = vld [vmem:[#allocation5 + $0x1650] sm:$0xff] }
 0xb61   :  { %5816 = vmatprep.mubr.f32.mxu1 %v3204_v16  ;;  %v6776_v14 = vpack.c.bf16 %v3484_v10, %v3483_v9  ;;  %v6784_v34 = vpack.c.bf16 %v3488_v32, %v3487_v30  ;;  %v3736_v9 = vld [vmem:[#allocation5 + $0xb08] sm:$0xff] }
 0xb62   :  { %v3176_v52 = vadd.f32 %v3170_v38, %v7546_v12  ;;  %v3200_v41 = vrot.slane %v7612_v37, 1  ;;  %v6770_v12 = vpack.c.bf16 %v3464_v49, %v3463_v47  ;;  %v3188_v61 = vrot.slane %v7612_v37, 7  ;;  %v3472_v38 = vld [vmem:[#allocation5 + $0x1548] sm:$0xff]  ;;  %v3473_v47 = vld [vmem:[#allocation5 + $0x1550] sm:$0xff]  ;;  %v3474_v49 = vld [vmem:[#allocation5 + $0x1558] sm:$0xff] }
 0xb64   :  { %v7618_v24 = vadd.f32 %v4283_v19, %v3176_v52  ;;  %v3203_v44 = vsel %vm146_vm0, %v3199_v35, %v3200_v41  ;;  %v3191_v62 = vsel %vm125_vm1, %v3187_v58, %v3188_v61  ;;  %v6778_v19 = vpack.c.bf16 %v3468_v15, %v3467_v39  ;;  %v3471_v35 = vld [vmem:[#allocation5 + $0x1540] sm:$0xff]  ;;  %v3490_v52 = vld [vmem:[#allocation5 + $0x15d8] sm:$0xff] }
 0xb65   :  { %5817 = vmatmul.mubr.msk.f32.vlgmr.msra.gmra.mrb[48].mxu1 %vm7176_vm3, %v3203_v44  ;;  %v6786_v2 = vpack.c.bf16 %v3472_v38, %v3471_v35  ;;  %v3508_v44 = vld [vmem:[#allocation5 + $0x1668] sm:$0xff]  ;;  %v3475_v58 = vld [vmem:[#allocation5 + $0x1560] sm:$0xff] }
 0xb66   :  { %v3189_v51 = vrot.slane %v7618_v24, 7  ;;  %v3201_v54 = vrot.slane %v7618_v24, 1  ;;  %6803 = vmatpush3.bf16.msra.mxu1 %v6800_v4  ;;  %v3465_v4 = vld [vmem:[#allocation5 + $0x1510] sm:$0xff]  ;;  %v4284_v39 = vld [vmem:[#allocation7 + $0x6] ss:$0 sm:$0xff] }
 0xb67   :  { %6805 = vmatprep.subr.bf16.mxu1 %v6804_v42  ;;  %v6774_v8 = vpack.c.bf16 %v3466_v6, %v3465_v4  ;;  %v3751_v4 = vld [vmem:[#allocation5 + $0xb80] sm:$0xff]  ;;  %v3752_v6 = vld [vmem:[#allocation5 + $0xb88] sm:$0xff] }
 0xb68   :  { %v3193_v56 = vsel %vm125_vm1, %v3189_v51, %v3186_v50  ;;  %v3202_v31 = vsel %vm146_vm0, %v3200_v41, %v3201_v54  ;;  %v3205_v13 = vsel %vm146_vm0, %v3201_v54, %v3198_v25  ;;  %v3190_v0 = vsel %vm125_vm1, %v3188_v61, %v3189_v51  ;;  %v3506_v25 = vld [vmem:[#allocation5 + $0x1658] sm:$0xff]  ;;  %v3507_v41 = vld [vmem:[#allocation5 + $0x1660] sm:$0xff] }
 0xb69   :  { %4285 = vmatmul.mubr.msk.f32.vlgmr.msra.gmra.mrb[96].mxu0 %vm7167_vm2, %v3193_v56  ;;  %5819 = vmatprep.mubr.f32.mxu1 %v3202_v31  ;;  %v6820_v16 = vpack.c.bf16 %v3506_v25, %v3505_v33  ;;  %v6824_v50 = vpack.c.bf16 %v3508_v44, %v3507_v41  ;;  %v6790_v51 = vpack.c.bf16 %v3474_v49, %v3473_v47  ;;  %v3491_v54 = vld [vmem:[#allocation5 + $0x15e0] sm:$0xff]  ;;  %v3509_v56 = vld [vmem:[#allocation5 + $0x1670] sm:$0xff] }
 0xb6a   :  { %3333 = vmatprep.mubr.f32.mxu0 %v7607_v28  ;;  %5820 = vmatmul.mubr.msk.f32.gmra.mrb[50].mxu1 %vm7194_vm4, %v3205_v13  ;;  %v3510_v13 = vld [vmem:[#allocation5 + $0x1678] sm:$0xff] }
 0xb6b   :  { %6771 = vmatpush3.bf16.msra.mxu0 %v6770_v12  ;;  %6807 = vmatpush3.bf16.msra.mxu1 %v6804_v42  ;;  %v6788_v42 = vpack.c.bf16 %v3490_v52, %v3489_v40  ;;  %v3492_v12 = vld [vmem:[#allocation5 + $0x15e8] sm:$0xff]  ;;  %v6828_v61 = vpack.c.bf16 %v3510_v13, %v3509_v56 }
 0xb6c   :  { %6773 = vmatprep.subr.bf16.mxu0 %v6772_v43  ;;  %6809 = vmatprep.subr.bf16.mxu1 %v6808_v7  ;;  %v6792_v31 = vpack.c.bf16 %v3492_v12, %v3491_v54  ;;  %v3478_v43 = vld [vmem:[#allocation5 + $0x1578] sm:$0xff] }
 0xb6d   :  { %3334 = vmatmul.mubr.f32.gmra.mrb[98].mxu0 %v3192_v59  ;;  %v3476_v59 = vld [vmem:[#allocation5 + $0x1568] sm:$0xff]  ;;  %v6798_v18 = vpack.c.bf16 %v3478_v43, %v3477_v3  ;;  %v3754_v54 = vld [vmem:[#allocation5 + $0xb98] sm:$0xff] }
 0xb6e   :  { %3338 = vmatprep.mubr.f32.mxu0 %v7612_v37 }
 0xb6f   :  { %6775 = vmatpush3.bf16.msra.mxu0 %v6774_v8  ;;  %6811 = vmatpush3.bf16.msra.mxu1 %v6808_v7  ;;  %v3735_v7 = vld [vmem:[#allocation5 + $0xb00] sm:$0xff]  ;;  %v6864_v8 = vpack.c.bf16 %v3752_v6, %v3751_v4 }
 0xb70   :  { %6777 = vmatprep.subr.bf16.mxu0 %v6776_v14  ;;  %6813 = vmatprep.subr.bf16.mxu1 %v6812_v17  ;;  %v6832_v10 = vpack.c.bf16 %v3736_v9, %v3735_v7  ;;  %v3737_v7 = vld [vmem:[#allocation5 + $0xb10] sm:$0xff]  ;;  %v3755_v9 = vld [vmem:[#allocation5 + $0xba0] sm:$0xff] }
 0xb71   :  { %4286 = vmatmul.mubr.msk.f32.gmra.mrb[100].mxu0 %vm7203_vm5, %v3191_v62  ;;  %v6794_v62 = vpack.c.bf16 %v3476_v59, %v3475_v58 }
 0xb72   :  { %3343 = vmatprep.mubr.f32.mxu0 %v7618_v24 }
 0xb73   :  { %6779 = vmatpush3.bf16.msra.mxu0 %v6778_v19  ;;  %6815 = vmatpush3.bf16.msra.mxu1 %v6812_v17 }
 0xb74   :  { %6781 = vmatprep.subr.bf16.mxu0 %v6780_v23  ;;  %6817 = vmatprep.subr.bf16.mxu1 %v6816_v27 }
 0xb75   :  { %3344 = vmatmul.mubr.f32.gmra.mrb[102].mxu0 %v3190_v0  ;;  %v3493_v0 = vld [vmem:[#allocation5 + $0x15f0] sm:$0xff] }
 0xb76   :  { %v6796_v1 = vpack.c.bf16 %v3494_v53, %v3493_v0  ;;  %v3720_v0 = vld [vmem:[#allocation5 + $0xa88] sm:$0xff] }
 0xb77   :  { %6783 = vmatpush3.bf16.msra.mxu0 %v6782_v29  ;;  %6819 = vmatpush3.bf16.msra.mxu1 %v6816_v27 }
 0xb78   :  { %6785 = vmatprep.subr.bf16.mxu0 %v6784_v34  ;;  %6821 = vmatprep.subr.bf16.mxu1 %v6820_v16 }
 0xb7b   :  { %6787 = vmatpush3.bf16.msra.mxu0 %v6786_v2  ;;  %6823 = vmatpush3.bf16.msra.mxu1 %v6820_v16 }
 0xb7c   :  { %6789 = vmatprep.subr.bf16.mxu0 %v6788_v42  ;;  %6825 = vmatprep.subr.bf16.mxu1 %v6824_v50 }
 0xb7f   :  { %6791 = vmatpush3.bf16.msra.mxu0 %v6790_v51  ;;  %6827 = vmatpush3.bf16.msra.mxu1 %v6824_v50  ;;  %v3753_v51 = vld [vmem:[#allocation5 + $0xb90] sm:$0xff] }
 0xb80   :  { %6793 = vmatprep.subr.bf16.mxu0 %v6792_v31  ;;  %6829 = vmatprep.subr.bf16.mxu1 %v6828_v61  ;;  %v6868_v13 = vpack.c.bf16 %v3754_v54, %v3753_v51  ;;  %v3746_v51 = vld [vmem:[#allocation5 + $0xb58] sm:$0xff]  ;;  %v3763_v54 = vld [vmem:[#allocation5 + $0xbe0] sm:$0xff] }
 0xb83   :  { %6795 = vmatpush3.bf16.msra.mxu0 %v6794_v62  ;;  %6831 = vmatpush3.bf16.msra.mxu1 %v6828_v61  ;;  %v3719_v62 = vld [vmem:[#allocation5 + $0xa80] sm:$0xff] }
 0xb84   :  { %6797 = vmatprep.subr.bf16.mxu0 %v6796_v1  ;;  %6865 = vmatprep.subr.bf16.mxu1 %v6864_v8  ;;  %v6834_v3 = vpack.c.bf16 %v3720_v0, %v3719_v62  ;;  %v3748_v62 = vld [vmem:[#allocation5 + $0xb68] sm:$0xff]  ;;  %v3765_v0 = vld [vmem:[#allocation5 + $0xbf0] sm:$0xff] }
 0xb87   :  { %6799 = vmatpush3.bf16.msra.mxu0 %v6798_v18 }
 0xb88   :  { %6833 = vmatprep.subr.bf16.mxu0 %v6832_v10 }
 0xc38   :  { %v5818_v11 = vpop.f32.mrb[48].mxu1 }
 0xc39   :  { %v3415_v14 = vpop.f32.mrb[49].mxu1 }
 0xc3c   :  { %v5104_v57 = vpop.f32.mrb[96].mxu0 }
 0xc3d   :  { %v5105_v15 = vpop.f32.mrb[97].mxu0  ;;  %v5821_v17 = vpop.f32.mrb[50].mxu1 }
 0xc3e   :  { %v5106_v19 = vadd.f32 %v5105_v15, %v5104_v57  ;;  %v3425_v20 = vpop.f32.mrb[51].mxu1  ;;  %v3722_v57 = vld [vmem:[#allocation5 + $0xa98] sm:$0xff] }
 0xc40   :  { %v3331_v21 = vadd.f32 %v5106_v19, %v4284_v39  ;;  %v5107_v22 = vpop.f32.mrb[98].mxu0  ;;  %v3740_v19 = vld [vmem:[#allocation5 + $0xb28] sm:$0xff] }
 0xc41   :  { %v5108_v23 = vpop.f32.mrb[99].mxu0 }
 0xc42   :  { %v5109_v26 = vadd.f32 %v5108_v23, %v5107_v22  ;;  %v3416_v5 = vadd.f32 %v3415_v14, %v3331_v21  ;;  %v3721_v14 = vld [vmem:[#allocation5 + $0xa90] sm:$0xff]  ;;  %v3758_v22 = vld [vmem:[#allocation5 + $0xbb8] sm:$0xff]  ;;  %v3723_v23 = vld [vmem:[#allocation5 + $0xaa0] sm:$0xff] }
 0xc43   :  { %v6838_v15 = vpack.c.bf16 %v3722_v57, %v3721_v14  ;;  %v4003_v14 = vld [vmem:[#allocation5 + $0x1780] sm:$0xff]  ;;  %v4004_v57 = vld [vmem:[#allocation5 + $0x1788] sm:$0xff] }
 0xc44   :  { %v3336_v55 = vadd.f32 %v5109_v26, %v4284_v39  ;;  %v5110_v27 = vpop.f32.mrb[100].mxu0  ;;  %v3434_v29 = vmax.f32 %v3416_v5, 0.0  ;;  %v3724_v26 = vld [vmem:[#allocation5 + $0xaa8] sm:$0xff] }
 0xc45   :  { %v5111_v30 = vpop.f32.mrb[101].mxu0 }
 0xc46   :  { %v3421_v32 = vadd.f32 %v5818_v11, %v3336_v55  ;;  %v5112_v33 = vadd.f32 %v5111_v30, %v5110_v27  ;;  %3575 = vmatprep.mubr.f32.mxu0 %v3434_v29  ;;  %v3438_v38 = vrot.slane %v3434_v29, 7  ;;  %v3450_v2 = vrot.slane %v3434_v29, 1  ;;  %v3756_v11 = vld [vmem:[#allocation5 + $0xba8] sm:$0xff]  ;;  %v3741_v27 = vld [vmem:[#allocation5 + $0xb30] sm:$0xff]  ;;  %v3742_v29 = vld [vmem:[#allocation5 + $0xb38] sm:$0xff] }
 0xc47   :  { %v6842_v55 = vpack.c.bf16 %v3724_v26, %v3723_v23  ;;  %v3759_v30 = vld [vmem:[#allocation5 + $0xbc0] sm:$0xff] }
 0xc48   :  { %v3435_v34 = vmax.f32 %v3421_v32, 0.0  ;;  %v3341_v25 = vadd.f32 %v5112_v33, %v4284_v39  ;;  %v5113_v35 = vpop.f32.mrb[102].mxu0  ;;  %v6844_v32 = vpack.c.bf16 %v3742_v29, %v3741_v27  ;;  %v3760_v33 = vld [vmem:[#allocation5 + $0xbc8] sm:$0xff] }
 0xc49   :  { %v5114_v16 = vpop.f32.mrb[103].mxu0 }
 0xc4a   :  { %v3426_v40 = vadd.f32 %v3425_v20, %v3341_v25  ;;  %v5115_v52 = vadd.f32 %v5114_v16, %v5113_v35  ;;  %v3451_v41 = vrot.slane %v3435_v34, 1  ;;  %v3439_v42 = vrot.slane %v3435_v34, 7  ;;  %v3757_v20 = vld [vmem:[#allocation5 + $0xbb0] sm:$0xff]  ;;  %v3726_v25 = vld [vmem:[#allocation5 + $0xab8] sm:$0xff]  ;;  %v3743_v16 = vld [vmem:[#allocation5 + $0xb40] sm:$0xff] }
 0xc4b   :  { %v6876_v5 = vpack.c.bf16 %v3758_v22, %v3757_v20  ;;  %v6880_v35 = vpack.c.bf16 %v3760_v33, %v3759_v30  ;;  %v4293_v30 = vld [vmem:[#allocation7 + $0xe] ss:$0 sm:$0xff] }
 0xc4c   :  { %v3436_v44 = vmax.f32 %v3426_v40, 0.0  ;;  %v3346_v47 = vadd.f32 %v5115_v52, %v4284_v39  ;;  %v3456_v49 = vsel %vm146_vm0, %v3450_v2, %v3451_v41  ;;  %v3444_v50 = vsel %vm125_vm1, %v3438_v38, %v3439_v42  ;;  %v3761_v52 = vld [vmem:[#allocation5 + $0xbd0] sm:$0xff] }
 0xc4d   :  { %5854 = vmatprep.mubr.f32.mxu1 %v3456_v49  ;;  %v6872_v39 = vpack.c.bf16 %v3756_v11, %v3755_v9  ;;  %v3733_v9 = vld [vmem:[#allocation5 + $0xaf0] sm:$0xff] }
 0xc4e   :  { %v3452_v12 = vrot.slane %v3436_v44, 1  ;;  %v3431_v56 = vadd.f32 %v5821_v17, %v3346_v47  ;;  %v3440_v31 = vrot.slane %v3436_v44, 7  ;;  %v3739_v17 = vld [vmem:[#allocation5 + $0xb20] sm:$0xff]  ;;  %v3728_v47 = vld [vmem:[#allocation5 + $0xac8] sm:$0xff] }
 0xc4f   :  { %v6840_v21 = vpack.c.bf16 %v3740_v19, %v3739_v17  ;;  %v3988_v17 = vld [vmem:[#allocation5 + $0x1708] sm:$0xff] }
 0xc50   :  { %v3437_v58 = vmax.f32 %v3431_v56, 0.0  ;;  %v3455_v59 = vsel %vm146_vm0, %v3451_v41, %v3452_v12  ;;  %v3443_v61 = vsel %vm125_vm1, %v3439_v42, %v3440_v31  ;;  %v3762_v41 = vld [vmem:[#allocation5 + $0xbd8] sm:$0xff]  ;;  %v3727_v42 = vld [vmem:[#allocation5 + $0xac0] sm:$0xff]  ;;  %v3764_v56 = vld [vmem:[#allocation5 + $0xbe8] sm:$0xff] }
 0xc51   :  { %5855 = vmatmul.mubr.msk.f32.vlgmr.msra.gmra.mrb[52].mxu1 %vm7176_vm3, %v3455_v59  ;;  %v6850_v49 = vpack.c.bf16 %v3728_v47, %v3727_v42 }
 0xc52   :  { %v3441_v53 = vrot.slane %v3437_v58, 7  ;;  %v3453_v1 = vrot.slane %v3437_v58, 1  ;;  %6867 = vmatpush3.bf16.msra.mxu1 %v6864_v8  ;;  %v3738_v8 = vld [vmem:[#allocation5 + $0xb18] sm:$0xff] }
 0xc53   :  { %6869 = vmatprep.subr.bf16.mxu1 %v6868_v13  ;;  %v6836_v10 = vpack.c.bf16 %v3738_v8, %v3737_v7  ;;  %v3750_v7 = vld [vmem:[#allocation5 + $0xb78] sm:$0xff] }
 0xc54   :  { %v3445_v43 = vsel %vm125_vm1, %v3441_v53, %v3438_v38  ;;  %v3454_v18 = vsel %vm146_vm0, %v3452_v12, %v3453_v1  ;;  %v3457_v4 = vsel %vm146_vm0, %v3453_v1, %v3450_v2  ;;  %v3442_v6 = vsel %vm125_vm1, %v3440_v31, %v3441_v53  ;;  %v3744_v2 = vld [vmem:[#allocation5 + $0xb48] sm:$0xff]  ;;  %v3729_v31 = vld [vmem:[#allocation5 + $0xad0] sm:$0xff]  ;;  %v3766_v1 = vld [vmem:[#allocation5 + $0xbf8] sm:$0xff] }
 0xc55   :  { %4289 = vmatmul.mubr.msk.f32.vlgmr.msra.gmra.mrb[104].mxu0 %vm7167_vm2, %v3445_v43  ;;  %5857 = vmatprep.mubr.f32.mxu1 %v3454_v18  ;;  %v6848_v40 = vpack.c.bf16 %v3744_v2, %v3743_v16  ;;  %v3732_v43 = vld [vmem:[#allocation5 + $0xae8] sm:$0xff]  ;;  %v6892_v18 = vpack.c.bf16 %v3766_v1, %v3765_v0 }
 0xc56   :  { %3580 = vmatprep.mubr.f32.mxu0 %v3435_v34  ;;  %5858 = vmatmul.mubr.msk.f32.gmra.mrb[54].mxu1 %vm7194_vm4, %v3457_v4  ;;  %v3725_v34 = vld [vmem:[#allocation5 + $0xab0] sm:$0xff] }
 0xc57   :  { %6835 = vmatpush3.bf16.msra.mxu0 %v6834_v3  ;;  %6871 = vmatpush3.bf16.msra.mxu1 %v6868_v13  ;;  %v6846_v38 = vpack.c.bf16 %v3726_v25, %v3725_v34  ;;  %v3730_v13 = vld [vmem:[#allocation5 + $0xad8] sm:$0xff]  ;;  %v3731_v3 = vld [vmem:[#allocation5 + $0xae0] sm:$0xff] }
 0xc58   :  { %6837 = vmatprep.subr.bf16.mxu0 %v6836_v10  ;;  %6873 = vmatprep.subr.bf16.mxu1 %v6872_v39  ;;  %v6854_v59 = vpack.c.bf16 %v3730_v13, %v3729_v31  ;;  %v6858_v4 = vpack.c.bf16 %v3732_v43, %v3731_v3  ;;  %v3734_v10 = vld [vmem:[#allocation5 + $0xaf8] sm:$0xff] }
 0xc59   :  { %3581 = vmatmul.mubr.f32.gmra.mrb[106].mxu0 %v3444_v50  ;;  %v3745_v50 = vld [vmem:[#allocation5 + $0xb50] sm:$0xff]  ;;  %v6862_v11 = vpack.c.bf16 %v3734_v10, %v3733_v9 }
 0xc5a   :  { %3585 = vmatprep.mubr.f32.mxu0 %v3436_v44  ;;  %v6884_v44 = vpack.c.bf16 %v3762_v41, %v3761_v52  ;;  %v6852_v12 = vpack.c.bf16 %v3746_v51, %v3745_v50  ;;  %v3989_v10 = vld [vmem:[#allocation5 + $0x1710] sm:$0xff] }
 0xc5b   :  { %6839 = vmatpush3.bf16.msra.mxu0 %v6838_v15  ;;  %6875 = vmatpush3.bf16.msra.mxu1 %v6872_v39  ;;  %v3987_v39 = vld [vmem:[#allocation5 + $0x1700] sm:$0xff]  ;;  %v6928_v15 = vpack.c.bf16 %v4004_v57, %v4003_v14 }
 0xc5c   :  { %6841 = vmatprep.subr.bf16.mxu0 %v6840_v21  ;;  %6877 = vmatprep.subr.bf16.mxu1 %v6876_v5  ;;  %v6896_v19 = vpack.c.bf16 %v3988_v17, %v3987_v39  ;;  %v4007_v14 = vld [vmem:[#allocation5 + $0x17a0] sm:$0xff]  ;;  %v4008_v39 = vld [vmem:[#allocation5 + $0x17a8] sm:$0xff]  ;;  %v3974_v17 = vld [vmem:[#allocation5 + $0x1698] sm:$0xff] }
 0xc5d   :  { %4290 = vmatmul.mubr.msk.f32.gmra.mrb[108].mxu0 %vm7203_vm5, %v3443_v61  ;;  %v3747_v61 = vld [vmem:[#allocation5 + $0xb60] sm:$0xff] }
 0xc5e   :  { %3590 = vmatprep.mubr.f32.mxu0 %v3437_v58  ;;  %v6888_v58 = vpack.c.bf16 %v3764_v56, %v3763_v54  ;;  %v6856_v53 = vpack.c.bf16 %v3748_v62, %v3747_v61  ;;  %v4006_v56 = vld [vmem:[#allocation5 + $0x1798] sm:$0xff]  ;;  %v3971_v61 = vld [vmem:[#allocation5 + $0x1680] sm:$0xff]  ;;  %v3972_v62 = vld [vmem:[#allocation5 + $0x1688] sm:$0xff] }
 0xc5f   :  { %6843 = vmatpush3.bf16.msra.mxu0 %v6842_v55  ;;  %6879 = vmatpush3.bf16.msra.mxu1 %v6876_v5 }
 0xc60   :  { %6845 = vmatprep.subr.bf16.mxu0 %v6844_v32  ;;  %6881 = vmatprep.subr.bf16.mxu1 %v6880_v35 }
 0xc61   :  { %3591 = vmatmul.mubr.f32.gmra.mrb[110].mxu0 %v3442_v6  ;;  %v3749_v6 = vld [vmem:[#allocation5 + $0xb70] sm:$0xff] }
 0xc62   :  { %v6860_v8 = vpack.c.bf16 %v3750_v7, %v3749_v6 }
 0xc63   :  { %6847 = vmatpush3.bf16.msra.mxu0 %v6846_v38  ;;  %6883 = vmatpush3.bf16.msra.mxu1 %v6880_v35 }
 0xc64   :  { %6849 = vmatprep.subr.bf16.mxu0 %v6848_v40  ;;  %6885 = vmatprep.subr.bf16.mxu1 %v6884_v44 }
 0xc67   :  { %6851 = vmatpush3.bf16.msra.mxu0 %v6850_v49  ;;  %6887 = vmatpush3.bf16.msra.mxu1 %v6884_v44 }
 0xc68   :  { %6853 = vmatprep.subr.bf16.mxu0 %v6852_v12  ;;  %6889 = vmatprep.subr.bf16.mxu1 %v6888_v58  ;;  %v4005_v12 = vld [vmem:[#allocation5 + $0x1790] sm:$0xff] }
 0xc6b   :  { %6855 = vmatpush3.bf16.msra.mxu0 %v6854_v59  ;;  %6891 = vmatpush3.bf16.msra.mxu1 %v6888_v58  ;;  %v6932_v58 = vpack.c.bf16 %v4006_v56, %v4005_v12  ;;  %v3997_v56 = vld [vmem:[#allocation5 + $0x1750] sm:$0xff] }
 0xc6c   :  { %6857 = vmatprep.subr.bf16.mxu0 %v6856_v53  ;;  %6893 = vmatprep.subr.bf16.mxu1 %v6892_v18 }
 0xc6f   :  { %6859 = vmatpush3.bf16.msra.mxu0 %v6858_v4  ;;  %6895 = vmatpush3.bf16.msra.mxu1 %v6892_v18 }
 0xc70   :  { %6861 = vmatprep.subr.bf16.mxu0 %v6860_v8  ;;  %6929 = vmatprep.subr.bf16.mxu1 %v6928_v15 }
 0xc73   :  { %6863 = vmatpush3.bf16.msra.mxu0 %v6862_v11  ;;  %v3990_v11 = vld [vmem:[#allocation5 + $0x1718] sm:$0xff] }
 0xc74   :  { %6897 = vmatprep.subr.bf16.mxu0 %v6896_v19  ;;  %v6900_v57 = vpack.c.bf16 %v3990_v11, %v3989_v10  ;;  %v6936_v19 = vpack.c.bf16 %v4008_v39, %v4007_v14  ;;  %v4002_v10 = vld [vmem:[#allocation5 + $0x1778] sm:$0xff]  ;;  %v3985_v14 = vld [vmem:[#allocation5 + $0x16f0] sm:$0xff] }
 0xd24   :  { %v5856_v20 = vpop.f32.mrb[52].mxu1 }
 0xd25   :  { %v3662_v21 = vpop.f32.mrb[53].mxu1 }
 0xd28   :  { %v5168_v22 = vpop.f32.mrb[104].mxu0 }
 0xd29   :  { %v5169_v23 = vpop.f32.mrb[105].mxu0  ;;  %v5859_v26 = vpop.f32.mrb[54].mxu1 }
 0xd2a   :  { %v5170_v5 = vadd.f32 %v5169_v23, %v5168_v22  ;;  %v3672_v55 = vpop.f32.mrb[55].mxu1  ;;  %v3992_v22 = vld [vmem:[#allocation5 + $0x1728] sm:$0xff]  ;;  %v4009_v23 = vld [vmem:[#allocation5 + $0x17b0] sm:$0xff] }
 0xd2c   :  { %v3663_v27 = vadd.f32 %v5170_v5, %v3662_v21  ;;  %v5171_v29 = vpop.f32.mrb[106].mxu0  ;;  %v3991_v21 = vld [vmem:[#allocation5 + $0x1720] sm:$0xff]  ;;  %v4010_v5 = vld [vmem:[#allocation5 + $0x17b8] sm:$0xff] }
 0xd2d   :  { %v5172_v32 = vpop.f32.mrb[107].mxu0 }
 0xd2e   :  { %v3681_v33 = vadd.f32 %v3663_v27, %v7603_v48  ;;  %v5173_v34 = vadd.f32 %v5172_v32, %v5171_v29  ;;  %v3976_v27 = vld [vmem:[#allocation5 + $0x16a8] sm:$0xff]  ;;  %v6940_v29 = vpack.c.bf16 %v4010_v5, %v4009_v23  ;;  %v3993_v32 = vld [vmem:[#allocation5 + $0x1730] sm:$0xff] }
 0xd30   :  { %v7675_v25 = vadd.f32 %v4293_v30, %v3681_v33  ;;  %v3668_v35 = vadd.f32 %v5856_v20, %v5173_v34  ;;  %v5174_v38 = vpop.f32.mrb[108].mxu0  ;;  %v3994_v33 = vld [vmem:[#allocation5 + $0x1738] sm:$0xff]  ;;  %v4011_v34 = vld [vmem:[#allocation5 + $0x17c0] sm:$0xff] }
 0xd31   :  { %v5175_v16 = vpop.f32.mrb[109].mxu0 }
 0xd32   :  { %v3682_v2 = vadd.f32 %v3668_v35, %v7607_v28  ;;  %v5176_v40 = vadd.f32 %v5175_v16, %v5174_v38  ;;  %3836 = vmatprep.mubr.f32.mxu0 %v7675_v25  ;;  %v3706_v48 = vrot.slane %v7675_v25, 1  ;;  %v3694_v0 = vrot.slane %v7675_v25, 7  ;;  %v4012_v38 = vld [vmem:[#allocation5 + $0x17c8] sm:$0xff]  ;;  %v3977_v16 = vld [vmem:[#allocation5 + $0x16b0] sm:$0xff] }
 0xd33   :  { %v6908_v35 = vpack.c.bf16 %v3994_v33, %v3993_v32 }
 0xd34   :  { %v7679_v52 = vadd.f32 %v4293_v30, %v3682_v2  ;;  %v3673_v41 = vadd.f32 %v5176_v40, %v3672_v55  ;;  %v5177_v42 = vpop.f32.mrb[110].mxu0  ;;  %v3975_v55 = vld [vmem:[#allocation5 + $0x16a0] sm:$0xff]  ;;  %v3978_v2 = vld [vmem:[#allocation5 + $0x16b8] sm:$0xff]  ;;  %v6944_v40 = vpack.c.bf16 %v4012_v38, %v4011_v34 }
 0xd35   :  { %v5178_v44 = vpop.f32.mrb[111].mxu0 }
 0xd36   :  { %v3683_v47 = vadd.f32 %v3673_v41, %v7612_v37  ;;  %v5179_v49 = vadd.f32 %v5178_v44, %v5177_v42  ;;  %v3707_v50 = vrot.slane %v7679_v52, 1  ;;  %v3695_v4 = vrot.slane %v7679_v52, 7  ;;  %v3995_v42 = vld [vmem:[#allocation5 + $0x1740] sm:$0xff]  ;;  %v3996_v44 = vld [vmem:[#allocation5 + $0x1748] sm:$0xff] }
 0xd37   :  { %v6910_v41 = vpack.c.bf16 %v3978_v2, %v3977_v16 }
 0xd38   :  { %v7684_v51 = vadd.f32 %v4293_v30, %v3683_v47  ;;  %v3678_v54 = vadd.f32 %v5859_v26, %v5179_v49  ;;  %v3712_v28 = vsel %vm146_vm0, %v3706_v48, %v3707_v50  ;;  %v3700_v6 = vsel %vm125_vm1, %v3694_v0, %v3695_v4  ;;  %v4013_v47 = vld [vmem:[#allocation5 + $0x17d0] sm:$0xff] }
 0xd39   :  { %5892 = vmatprep.mubr.f32.mxu1 %v3712_v28  ;;  %v6904_v26 = vpack.c.bf16 %v3992_v22, %v3991_v21  ;;  %v6912_v49 = vpack.c.bf16 %v3996_v44, %v3995_v42 }
 0xd3a   :  { %v3684_v31 = vadd.f32 %v3678_v54, %v7618_v24  ;;  %v3708_v13 = vrot.slane %v7684_v51, 1  ;;  %v6898_v24 = vpack.c.bf16 %v3972_v62, %v3971_v61  ;;  %v3696_v7 = vrot.slane %v7684_v51, 7  ;;  %v3980_v54 = vld [vmem:[#allocation5 + $0x16c8] sm:$0xff]  ;;  %v3981_v61 = vld [vmem:[#allocation5 + $0x16d0] sm:$0xff]  ;;  %v3982_v62 = vld [vmem:[#allocation5 + $0x16d8] sm:$0xff] }
 0xd3c   :  { %v7690_v37 = vadd.f32 %v4293_v30, %v3684_v31  ;;  %v3711_v59 = vsel %vm146_vm0, %v3707_v50, %v3708_v13  ;;  %v3699_v8 = vsel %vm125_vm1, %v3695_v4, %v3696_v7  ;;  %v6906_v30 = vpack.c.bf16 %v3976_v27, %v3975_v55  ;;  %v3979_v50 = vld [vmem:[#allocation5 + $0x16c0] sm:$0xff]  ;;  %v3998_v31 = vld [vmem:[#allocation5 + $0x1758] sm:$0xff] }
 0xd3d   :  { %5893 = vmatmul.mubr.msk.f32.vlgmr.msra.gmra.mrb[56].mxu1 %vm7176_vm3, %v3711_v59  ;;  %v6914_v12 = vpack.c.bf16 %v3980_v54, %v3979_v50  ;;  %v4016_v59 = vld [vmem:[#allocation5 + $0x17e8] sm:$0xff]  ;;  %v3983_v4 = vld [vmem:[#allocation5 + $0x16e0] sm:$0xff] }
 0xd3e   :  { %v3697_v53 = vrot.slane %v7690_v37, 7  ;;  %v3709_v1 = vrot.slane %v7690_v37, 1  ;;  %6931 = vmatpush3.bf16.msra.mxu1 %v6928_v15  ;;  %v3973_v15 = vld [vmem:[#allocation5 + $0x1690] sm:$0xff] }
 0xd3f   :  { %6933 = vmatprep.subr.bf16.mxu1 %v6932_v58  ;;  %v6902_v20 = vpack.c.bf16 %v3974_v17, %v3973_v15 }
 0xd40   :  { %v3701_v3 = vsel %vm125_vm1, %v3697_v53, %v3694_v0  ;;  %v3710_v43 = vsel %vm146_vm0, %v3708_v13, %v3709_v1  ;;  %v3713_v18 = vsel %vm146_vm0, %v3709_v1, %v3706_v48  ;;  %v3698_v9 = vsel %vm125_vm1, %v3696_v7, %v3697_v53  ;;  %v4014_v48 = vld [vmem:[#allocation5 + $0x17d8] sm:$0xff]  ;;  %v4015_v13 = vld [vmem:[#allocation5 + $0x17e0] sm:$0xff] }
 0xd41   :  { %4295 = vmatmul.mubr.msk.f32.vlgmr.msra.gmra.mrb[112].mxu0 %vm7167_vm2, %v3701_v3  ;;  %5895 = vmatprep.mubr.f32.mxu1 %v3710_v43  ;;  %v6948_v28 = vpack.c.bf16 %v4014_v48, %v4013_v47  ;;  %v6952_v0 = vpack.c.bf16 %v4016_v59, %v4015_v13  ;;  %v6918_v53 = vpack.c.bf16 %v3982_v62, %v3981_v61  ;;  %v3999_v1 = vld [vmem:[#allocation5 + $0x1760] sm:$0xff]  ;;  %v4017_v3 = vld [vmem:[#allocation5 + $0x17f0] sm:$0xff] }
 0xd42   :  { %3841 = vmatprep.mubr.f32.mxu0 %v7679_v52  ;;  %5896 = vmatmul.mubr.msk.f32.gmra.mrb[58].mxu1 %vm7194_vm4, %v3713_v18  ;;  %v4018_v18 = vld [vmem:[#allocation5 + $0x17f8] sm:$0xff] }
 0xd43   :  { %6899 = vmatpush3.bf16.msra.mxu0 %v6898_v24  ;;  %6935 = vmatpush3.bf16.msra.mxu1 %v6932_v58  ;;  %v6916_v58 = vpack.c.bf16 %v3998_v31, %v3997_v56  ;;  %v4000_v24 = vld [vmem:[#allocation5 + $0x1768] sm:$0xff]  ;;  %v6956_v7 = vpack.c.bf16 %v4018_v18, %v4017_v3 }
 0xd44   :  { %6901 = vmatprep.subr.bf16.mxu0 %v6900_v57  ;;  %6937 = vmatprep.subr.bf16.mxu1 %v6936_v19  ;;  %v6920_v43 = vpack.c.bf16 %v4000_v24, %v3999_v1  ;;  %v3986_v57 = vld [vmem:[#allocation5 + $0x16f8] sm:$0xff] }
 0xd45   :  { %3842 = vmatmul.mubr.f32.gmra.mrb[114].mxu0 %v3700_v6  ;;  %v3984_v6 = vld [vmem:[#allocation5 + $0x16e8] sm:$0xff]  ;;  %v6926_v39 = vpack.c.bf16 %v3986_v57, %v3985_v14 }
 0xd46   :  { %3846 = vmatprep.mubr.f32.mxu0 %v7684_v51 }
 0xd47   :  { %6903 = vmatpush3.bf16.msra.mxu0 %v6902_v20  ;;  %6939 = vmatpush3.bf16.msra.mxu1 %v6936_v19  ;;  %v4294_v20 = vld [vmem:[#allocation7 + $0x7] ss:$0 sm:$0xff] }
 0xd48   :  { %6905 = vmatprep.subr.bf16.mxu0 %v6904_v26  ;;  %6941 = vmatprep.subr.bf16.mxu1 %v6940_v29 }
 0xd49   :  { %4296 = vmatmul.mubr.msk.f32.gmra.mrb[116].mxu0 %vm7203_vm5, %v3699_v8  ;;  %v6922_v8 = vpack.c.bf16 %v3984_v6, %v3983_v4 }
 0xd4a   :  { %3851 = vmatprep.mubr.f32.mxu0 %v7690_v37 }
 0xd4b   :  { %6907 = vmatpush3.bf16.msra.mxu0 %v6906_v30  ;;  %6943 = vmatpush3.bf16.msra.mxu1 %v6940_v29 }
 0xd4c   :  { %6909 = vmatprep.subr.bf16.mxu0 %v6908_v35  ;;  %6945 = vmatprep.subr.bf16.mxu1 %v6944_v40 }
 0xd4d   :  { %3852 = vmatmul.mubr.f32.gmra.mrb[118].mxu0 %v3698_v9  ;;  %v4001_v9 = vld [vmem:[#allocation5 + $0x1770] sm:$0xff] }
 0xd4e   :  { %v6924_v11 = vpack.c.bf16 %v4002_v10, %v4001_v9 }
 0xd4f   :  { %6911 = vmatpush3.bf16.msra.mxu0 %v6910_v41  ;;  %6947 = vmatpush3.bf16.msra.mxu1 %v6944_v40 }
 0xd50   :  { %6913 = vmatprep.subr.bf16.mxu0 %v6912_v49  ;;  %6949 = vmatprep.subr.bf16.mxu1 %v6948_v28 }
 0xd53   :  { %6915 = vmatpush3.bf16.msra.mxu0 %v6914_v12  ;;  %6951 = vmatpush3.bf16.msra.mxu1 %v6948_v28 }
 0xd54   :  { %6917 = vmatprep.subr.bf16.mxu0 %v6916_v58  ;;  %6953 = vmatprep.subr.bf16.mxu1 %v6952_v0 }
 0xd57   :  { %6919 = vmatpush3.bf16.msra.mxu0 %v6918_v53  ;;  %6955 = vmatpush3.bf16.msra.mxu1 %v6952_v0 }
 0xd58   :  { %6921 = vmatprep.subr.bf16.mxu0 %v6920_v43  ;;  %6957 = vmatprep.subr.bf16.mxu1 %v6956_v7 }
 0xd5b   :  { %6923 = vmatpush3.bf16.msra.mxu0 %v6922_v8  ;;  %6959 = vmatpush3.bf16.msra.mxu1 %v6956_v7 }
 0xd5c   :  { %6925 = vmatprep.subr.bf16.mxu0 %v6924_v11  ;;  %v4303_v11 = vld [vmem:[#allocation7 + $0xf] ss:$0 sm:$0xff] }
 0xd5f   :  { %6927 = vmatpush3.bf16.msra.mxu0 %v6926_v39 }
 0xe10   :  { %v5894_v15 = vpop.f32.mrb[56].mxu1 }
 0xe11   :  { %v3923_v17 = vpop.f32.mrb[57].mxu1 }
 0xe14   :  { %v5232_v19 = vpop.f32.mrb[112].mxu0 }
 0xe15   :  { %v5233_v21 = vpop.f32.mrb[113].mxu0  ;;  %v5897_v22 = vpop.f32.mrb[58].mxu1 }
 0xe16   :  { %v5234_v23 = vadd.f32 %v5233_v21, %v5232_v19  ;;  %v3933_v26 = vpop.f32.mrb[59].mxu1 }
 0xe18   :  { %v3839_v5 = vadd.f32 %v5234_v23, %v4294_v20  ;;  %v5235_v55 = vpop.f32.mrb[114].mxu0 }
 0xe19   :  { %v5236_v27 = vpop.f32.mrb[115].mxu0 }
 0xe1a   :  { %v5237_v29 = vadd.f32 %v5236_v27, %v5235_v55  ;;  %v3924_v30 = vadd.f32 %v3923_v17, %v3839_v5 }
 0xe1c   :  { %v3844_v32 = vadd.f32 %v5237_v29, %v4294_v20  ;;  %v5238_v33 = vpop.f32.mrb[116].mxu0  ;;  %v3942_v34 = vmax.f32 %v3924_v30, 0.0 }
 0xe1d   :  { %v5239_v35 = vpop.f32.mrb[117].mxu0 }
 0xe1e   :  { %v3929_v38 = vadd.f32 %v5894_v15, %v3844_v32  ;;  %v5240_v16 = vadd.f32 %v5239_v35, %v5238_v33  ;;  %4083 = vmatprep.mubr.f32.mxu0 %v3942_v34  ;;  %v3946_v42 = vrot.slane %v3942_v34, 7  ;;  %v3958_v47 = vrot.slane %v3942_v34, 1 }
 0xe20   :  { %v3943_v2 = vmax.f32 %v3929_v38, 0.0  ;;  %v3849_v40 = vadd.f32 %v5240_v16, %v4294_v20  ;;  %v5241_v41 = vpop.f32.mrb[118].mxu0 }
 0xe21   :  { %v5242_v44 = vpop.f32.mrb[119].mxu0 }
 0xe22   :  { %v3934_v49 = vadd.f32 %v3933_v26, %v3849_v40  ;;  %v5243_v48 = vadd.f32 %v5242_v44, %v5241_v41  ;;  %v3959_v50 = vrot.slane %v3943_v2, 1  ;;  %v3947_v54 = vrot.slane %v3943_v2, 7 }
 0xe24   :  { %v3944_v28 = vmax.f32 %v3934_v49, 0.0  ;;  %v3854_v12 = vadd.f32 %v5243_v48, %v4294_v20  ;;  %v3964_v56 = vsel %vm146_vm0, %v3958_v47, %v3959_v50  ;;  %v3952_v31 = vsel %vm125_vm1, %v3946_v42, %v3947_v54 }
 0xe25   :  { %5930 = vmatprep.mubr.f32.mxu1 %v3964_v56 }
 0xe26   :  { %v3960_v13 = vrot.slane %v3944_v28, 1  ;;  %v3939_v58 = vadd.f32 %v5897_v22, %v3854_v12  ;;  %v3948_v59 = vrot.slane %v3944_v28, 7 }
 0xe28   :  { %v3945_v61 = vmax.f32 %v3939_v58, 0.0  ;;  %v3963_v62 = vsel %vm146_vm0, %v3959_v50, %v3960_v13  ;;  %v3951_v0 = vsel %vm125_vm1, %v3947_v54, %v3948_v59 }
 0xe29   :  { %5931 = vmatmul.mubr.msk.f32.vlgmr.msra.gmra.mrb[60].mxu1 %vm7176_vm3, %v3963_v62 }
 0xe2a   :  { %v3949_v53 = vrot.slane %v3945_v61, 7  ;;  %v3961_v1 = vrot.slane %v3945_v61, 1 }
 0xe2c   :  { %v3953_v24 = vsel %vm125_vm1, %v3949_v53, %v3946_v42  ;;  %v3962_v3 = vsel %vm146_vm0, %v3960_v13, %v3961_v1  ;;  %v3965_v43 = vsel %vm146_vm0, %v3961_v1, %v3958_v47  ;;  %v3950_v18 = vsel %vm125_vm1, %v3948_v59, %v3949_v53 }
 0xe2d   :  { %4299 = vmatmul.mubr.msk.f32.vlgmr.msra.gmra.mrb[120].mxu0 %vm7167_vm2, %v3953_v24  ;;  %5933 = vmatprep.mubr.f32.mxu1 %v3962_v3 }
 0xe2e   :  { %4088 = vmatprep.mubr.f32.mxu0 %v3943_v2  ;;  %5934 = vmatmul.mubr.msk.f32.gmra.mrb[62].mxu1 %vm7194_vm4, %v3965_v43 }
 0xe31   :  { %4089 = vmatmul.mubr.f32.gmra.mrb[122].mxu0 %v3952_v31 }
 0xe32   :  { %4093 = vmatprep.mubr.f32.mxu0 %v3944_v28 }
 0xe35   :  { %4300 = vmatmul.mubr.msk.f32.gmra.mrb[124].mxu0 %vm7203_vm5, %v3951_v0 }
 0xe36   :  { %4098 = vmatprep.mubr.f32.mxu0 %v3945_v61 }
 0xe39   :  { %4099 = vmatmul.mubr.f32.gmra.mrb[126].mxu0 %v3950_v18 }
 0xefc   :  { %v5932_v45 = vpop.f32.mrb[60].mxu1 }
 0xefd   :  { %v4170_v4 = vpop.f32.mrb[61].mxu1 }
 0xf00   :  { %v5296_v6 = vpop.f32.mrb[120].mxu0 }
 0xf01   :  { %v5297_v46 = vpop.f32.mrb[121].mxu0  ;;  %v5935_v7 = vpop.f32.mrb[62].mxu1 }
 0xf02   :  { %v5298_v8 = vadd.f32 %v5297_v46, %v5296_v6  ;;  %v4180_v36 = vpop.f32.mrb[63].mxu1 }
 0xf04   :  { %v4171_v9 = vadd.f32 %v5298_v8, %v4170_v4  ;;  %v5299_v10 = vpop.f32.mrb[122].mxu0 }
 0xf05   :  { %v5300_v14 = vpop.f32.mrb[123].mxu0 }
 0xf06   :  { %v4189_v60 = vadd.f32 %v4171_v9, %v7675_v25  ;;  %v5301_v57 = vadd.f32 %v5300_v14, %v5299_v10 }
 0xf08   :  { %v4198_v39 = vadd.f32 %v4303_v11, %v4189_v60  ;;  %v4176_v15 = vadd.f32 %v5932_v45, %v5301_v57  ;;  %v5302_v63 = vpop.f32.mrb[124].mxu0 }
 0xf09   :  { %v5303_v17 = vpop.f32.mrb[125].mxu0 }
 0xf0a   :  { %4202 = vst [vmem:[#allocation8] sm:$0xff] %v4198_v39  ;;  %v4190_v19 = vadd.f32 %v4176_v15, %v7679_v52  ;;  %v5304_v20 = vadd.f32 %v5303_v17, %v5302_v63 }
 0xf0c   :  { %v4199_v21 = vadd.f32 %v4303_v11, %v4190_v19  ;;  %v4181_v22 = vadd.f32 %v5304_v20, %v4180_v36  ;;  %v5305_v23 = vpop.f32.mrb[126].mxu0 }
 0xf0d   :  { %v5306_v26 = vpop.f32.mrb[127].mxu0 }
 0xf0e   :  { %4203 = vst [vmem:[#allocation8 + $0x8] sm:$0xff] %v4199_v21  ;;  %v4191_v5 = vadd.f32 %v4181_v22, %v7684_v51  ;;  %v5307_v55 = vadd.f32 %v5306_v26, %v5305_v23 }
 0xf10   :  { %v4200_v27 = vadd.f32 %v4303_v11, %v4191_v5  ;;  %v4186_v29 = vadd.f32 %v5935_v7, %v5307_v55 }
 0xf12   :  { %4204 = vst [vmem:[#allocation8 + $0x10] sm:$0xff] %v4200_v27  ;;  %v4192_v25 = vadd.f32 %v4186_v29, %v7690_v37 }
 0xf14   :  { %v4201_v30 = vadd.f32 %v4303_v11, %v4192_v25 }
 0xf16   :  { %4205 = vst [vmem:[#allocation8 + $0x18] sm:$0xff] %v4201_v30 }
 0xf17   :  { %7043 = shalt.err (!%p7040_p0)
}
 0xf18   :  { %s7044_s27 = scalar_lea.hbm %s7768_s3, 512 }
 0xf19   :  { %p7045_p1 = scmp.ne.s32.totalorder %s7768_s3, %s7044_s27  ;;  %p7048_p2 = scmp.lt.u32.totalorder %s7044_s27, %s7768_s3 }
 0xf1b   :  { %p7050_p3 = pnand %p7048_p2, %p7045_p1 }
 0xf1d   :  { %7053 = shalt.err (!%p7050_p3)
}
 0xf1e   :  { %4217 = dma.vmem_to_hbm [thread:$0]  %s4212_s21, 512, %s7768_s3, [#allocation4], %s7062_s24, %s7062_s24, %s7063_s25  }
 0xf1f   :  { %7058 = dma.done.wait [#allocation4], 512  }
 0xf20   :  { %7059 = vsyncadd [#allocation4], 4294966784 }
 0xf21   :  { %4221 = vsyncpa [#allocation3], 1 }
 0xf22   :  { %4222 = vsyncpa [#allocation6], 1 }
 0xf23   :  { %4223 = vsyncpa [#allocation4], 1 }

</bundles_post_ra>
